<compile_context>
chip_gen: v7x
topology: tpu7x:2x2x1
jax: 0.10.0
libtpu: 0.0.40
codegen_flags: <defaults>
</compile_context>

<pallas_src>
import functools
import math

import jax
import jax.numpy as jnp
from jax import lax
from jax.experimental import pallas as pl
from jax.experimental.pallas import tpu as pltpu


# ----------------------------------------------------------------------------
# Kernel: one grid step = one ResBlock applied to NB frames.
# ----------------------------------------------------------------------------
def _res_block_list_kernel(x_ref, tw_ref, b1_ref, b2_ref, alpha_ref,
                           out_ref, acc_ref, *, nres, H, K, p):
    """Refs:
      x_ref    : (NB, H, W*C) f32       input frames (consumed only at block r == 0)
      tw_ref   : (1, 2K, W*C, W*C) bf16 row-Toeplitz weights of this block (conv1, conv2)
      b1_ref   : (1, 1, W*C) f32        conv1 bias tiled along W
      b2_ref   : (1, 1, W*C) f32        conv2 bias tiled along W
      alpha_ref: (nres,) f32 SMEM       PReLU alphas
      out_ref  : (NB, H, W*C) f32       written at the last block only
      acc_ref  : (NB, H, W*C) f32 VMEM  running-activation carry across the block axis
    """
    NB = x_ref.shape[0]
    WC = x_ref.shape[-1]
    r = pl.program_id(1)

    @pl.when(r == 0)
    def _():
        acc_ref[...] = x_ref[...]

    x = acc_ref[...]                                            # (NB, H, WC) f32

    def conv3x3(xin, w_idx0, bias):
        # Single bf16 cast per conv; three lane-dense matmuls (one per kh); the kh
        # row shift is applied to the f32 partials with zero rows at the H border.
        xb = xin.astype(jnp.bfloat16).reshape(NB * H, WC)
        y = jnp.broadcast_to(bias, (NB, H, WC))                 # start from the bias
        for kh in range(K):
            t = tw_ref[0, w_idx0 + kh]                          # (WC, WC) bf16
            pk = jnp.dot(xb, t, preferred_element_type=jnp.float32)
            pk = pk.reshape(NB, H, WC)
            d = kh - p                                          # out row h reads partial row h + d
            if d < 0:
                z = jnp.zeros((NB, -d, WC), jnp.float32)
                pk = jnp.concatenate([z, pk[:, :H + d, :]], axis=1)
            elif d > 0:
                z = jnp.zeros((NB, d, WC), jnp.float32)
                pk = jnp.concatenate([pk[:, d:, :], z], axis=1)
            y = y + pk
        return y

    a = alpha_ref[r]                                            # shared scalar PReLU alpha
    y = conv3x3(x, 0, b1_ref[...])
    y = jnp.where(y >= 0.0, y, y * a)
    z = conv3x3(y, K, b2_ref[...])
    xn = z + x                                                  # res_scale == 1.0 -> no multiply
    acc_ref[...] = xn

    @pl.when(r == nres - 1)
    def _():
        out_ref[...] = xn.astype(out_ref.dtype)


# ----------------------------------------------------------------------------
# Host-side helpers
# ----------------------------------------------------------------------------
def _toeplitz_bands(w_hwio, W):
    """(K, K, Cin, Cout) conv weight -> (K, W*Cin, W*Cout) row block-Toeplitz matrices.

    T_kh[w_in*Cin + ci, w_out*Cout + co] = w[kh, w_in - w_out + p, ci, co]
    (zero outside the K band), so  out_row[h] = sum_kh x_row[h + kh - p] @ T_kh
    reproduces a 'same'-padded KxK conv on NHWC rows flattened to W*C lanes.
    """
    K, _, Cin, Cout = w_hwio.shape
    p = K // 2
    mats = []
    for kh in range(K):
        t = jnp.zeros((W, Cin, W, Cout), jnp.float32)
        for kw in range(K):
            band = jnp.eye(W, W, k=p - kw, dtype=jnp.float32)   # [w_in, w_out]
            t = t + jnp.einsum('ab,cd->acbd', band, w_hwio[kh, kw].astype(jnp.float32))
        mats.append(t.reshape(W * Cin, W * Cout))
    return jnp.stack(mats)                                      # (K, W*Cin, W*Cout)


def _pick_nb(n_images, H, max_rows=512):
    """Largest NB dividing N with NB*H <= max_rows, preferring an even outer grid
    (v7x has two TensorCores sharing the 'parallel' axis)."""
    cap = max(1, min(n_images, max_rows // max(H, 1)))
    divisors = [d for d in range(1, cap + 1) if n_images % d == 0]
    best = divisors[-1]
    for d in reversed(divisors):
        if (n_images // d) % 2 == 0:
            return d
    return best


def init_res_block_list_params(key, nres, n_feats, kernel_size):
    """Synthetic init mimicking Conv2d default (uniform +/- 1/sqrt(fan_in)).
    All PReLU alphas are the shared nn.PReLU() default (0.25)."""
    params = []
    bound = 1.0 / math.sqrt(n_feats * kernel_size * kernel_size)
    for _ in range(nres):
        key, k1, k2, k3, k4 = jax.random.split(key, 5)
        params.append(dict(
            w1=jax.random.uniform(k1, (kernel_size, kernel_size, n_feats, n_feats),
                                  jnp.float32, -bound, bound),
            b1=jax.random.uniform(k2, (n_feats,), jnp.float32, -bound, bound),
            alpha=jnp.array([0.25], jnp.float32),   # shared nn.PReLU() scalar
            w2=jax.random.uniform(k3, (kernel_size, kernel_size, n_feats, n_feats),
                                  jnp.float32, -bound, bound),
            b2=jax.random.uniform(k4, (n_feats,), jnp.float32, -bound, bound),
        ))
    return params


# ----------------------------------------------------------------------------
# ResBlockList forward (Pallas)
# ----------------------------------------------------------------------------
def res_block_list_forward(vid, params, kernel_size):
    """vid: (B, T, C, H, W) float32, NCHW per frame (PyTorch convention)."""
    B, T, C, H, W = vid.shape
    nres = len(params)
    if nres == 0:
        return vid
    K = kernel_size
    p = K // 2
    N = B * T
    WC = W * C

    # NCHW -> lane-dense (N, H, W*C) rows (one fused XLA copy each way).
    x = vid.reshape(N, C, H, W).transpose(0, 2, 3, 1).reshape(N, H, WC).astype(jnp.float32)

    # Per-block row-Toeplitz weights (bf16) and W-tiled biases / alphas.
    tw = jnp.stack([
        jnp.concatenate([_toeplitz_bands(blk["w1"], W),
                         _toeplitz_bands(blk["w2"], W)], axis=0)      # (2K, WC, WC)
        for blk in params
    ]).astype(jnp.bfloat16)                                           # (nres, 2K, WC, WC)
    b1r = jnp.stack([jnp.tile(blk["b1"], W).reshape(1, WC) for blk in params]).astype(jnp.float32)
    b2r = jnp.stack([jnp.tile(blk["b2"], W).reshape(1, WC) for blk in params]).astype(jnp.float32)
    alphas = jnp.stack([blk["alpha"].reshape(()) for blk in params]).astype(jnp.float32)

    NB = _pick_nb(N, H)
    grid = (N // NB, nres)

    # Explicit per-step VMEM budget: double-buffered weight block + activation blocks
    # + carry + intermediates.  Well under v7x's 64 MiB physical VMEM at these shapes.
    blk_w_bytes = 2 * K * WC * WC * 2                 # one block's bf16 Toeplitz weights
    act_bytes = NB * H * WC * 4                       # one f32 activation tile
    vmem_limit = int(min(48 << 20, max(32 << 20, 2 * (2 * blk_w_bytes + 8 * act_bytes))))

    kernel = functools.partial(_res_block_list_kernel, nres=nres, H=H, K=K, p=p)

    out = pl.pallas_call(
        kernel,
        out_shape=jax.ShapeDtypeStruct((N, H, WC), jnp.float32),
        grid=grid,
        in_specs=[
            pl.BlockSpec((NB, H, WC), lambda n, r: (n, 0, 0)),            # frames
            pl.BlockSpec((1, 2 * K, WC, WC), lambda n, r: (r, 0, 0, 0)),  # block-r weights (streamed)
            pl.BlockSpec((1, 1, WC), lambda n, r: (r, 0, 0)),             # conv1 bias
            pl.BlockSpec((1, 1, WC), lambda n, r: (r, 0, 0)),             # conv2 bias
            pl.BlockSpec(memory_space=pltpu.MemorySpace.SMEM),            # PReLU alphas
        ],
        out_specs=pl.BlockSpec((NB, H, WC), lambda n, r: (n, 0, 0)),      # lane-dense output
        scratch_shapes=[pltpu.VMEM((NB, H, WC), jnp.float32)],            # activation carry
        compiler_params=pltpu.CompilerParams(
            dimension_semantics=("parallel", "arbitrary"),
            vmem_limit_bytes=vmem_limit),
    )(x, tw, b1r, b2r, alphas)

    # back to (B, T, C, H, W)
    return out.reshape(N, H, W, C).transpose(0, 3, 1, 2).reshape(B, T, C, H, W)


# ----------------------------------------------------------------------------
# Pure-JAX reference for verification
# ----------------------------------------------------------------------------
def _ref_conv(x_nchw, w_hwio, b):
    w_oihw = jnp.transpose(w_hwio, (3, 2, 0, 1))
    y = lax.conv_general_dilated(
        x_nchw, w_oihw, window_strides=(1, 1), padding="SAME",
        dimension_numbers=("NCHW", "OIHW", "NCHW"))
    return y + b[None, :, None, None]


def res_block_list_reference(vid, params, kernel_size):
    B, T, C, H, W = vid.shape
    x = vid.reshape(B * T, C, H, W)
    for blk in params:
        y = _ref_conv(x, blk["w1"], blk["b1"])
        a = blk["alpha"][0]
        y = jnp.where(y >= 0.0, y, a * y)
        y = _ref_conv(y, blk["w2"], blk["b2"])
        x = y + x
    return x.reshape(B, T, C, H, W)


# ----------------------------------------------------------------------------
if __name__ == "__main__":
    B, T, n_feats, H, W = 2, 2, 32, 16, 16
    kernel_size = 3
    nres = 2

    key = jax.random.PRNGKey(0)
    key, pkey, xkey = jax.random.split(key, 3)
    params = init_res_block_list_params(pkey, nres, n_feats, kernel_size)
    vid = jax.random.normal(xkey, (B, T, n_feats, H, W), jnp.float32)

    fwd = jax.jit(functools.partial(res_block_list_forward, kernel_size=kernel_size))
    out = jax.block_until_ready(fwd(vid, params))

    ref = jax.block_until_ready(res_block_list_reference(vid, params, kernel_size))

    assert out.shape == vid.shape and out.dtype == jnp.float32
    max_err = float(jnp.max(jnp.abs(out - ref)))
    assert max_err < 5e-2, f"max abs error too large: {max_err}"

    print("KERNEL_OK")
</pallas_src>

<mosaic_0001>
module attributes {stable_mosaic.version = 11 : i64} {
  func.func @_res_block_list_kernel(%arg0: i32, %arg1: i32, %arg2: memref<2x16x512xf32, #tpu.memory_space<vmem>>, %arg3: memref<1x6x512x512xbf16, #tpu.memory_space<vmem>>, %arg4: memref<1x1x512xf32, #tpu.memory_space<vmem>>, %arg5: memref<1x1x512xf32, #tpu.memory_space<vmem>>, %arg6: memref<2xf32, #tpu.memory_space<smem>>, %arg7: memref<2x16x512xf32, #tpu.memory_space<vmem>>, %arg8: memref<2x16x512xf32, #tpu.memory_space<vmem>>) attributes {dimension_semantics = [#tpu.dimension_semantics<parallel>, #tpu.dimension_semantics<arbitrary>], iteration_bounds = array<i64: 2, 2>, scalar_prefetch = 0 : i64, scratch_operands = 1 : i64, tpu.core_type = #tpu.core_type<tc>, window_params = [{transform_indices = @transform_0, window_bounds = array<i64: 2, 16, 512>}, {transform_indices = @transform_1, window_bounds = array<i64: 1, 6, 512, 512>}, {transform_indices = @transform_2, window_bounds = array<i64: 1, 1, 512>}, {transform_indices = @transform_3, window_bounds = array<i64: 1, 1, 512>}, {transform_indices = @transform_4, window_bounds = array<i64: 2>}, {transform_indices = @transform_5, window_bounds = array<i64: 2, 16, 512>}]} {
    %c0_i32 = arith.constant 0 : i32
    %0 = arith.cmpi eq, %arg1, %c0_i32 : i32
    %1 = arith.extui %0 : i1 to i32
    %c0_i32_0 = arith.constant 0 : i32
    %2 = arith.cmpi ne, %1, %c0_i32_0 : i32
    scf.if %2 {
      %c0_42 = arith.constant 0 : index
      %c0_43 = arith.constant 0 : index
      %c0_44 = arith.constant 0 : index
      %68 = vector.load %arg2[%c0_42, %c0_43, %c0_44] : memref<2x16x512xf32, #tpu.memory_space<vmem>>, vector<2x16x512xf32>
      %c0_45 = arith.constant 0 : index
      %c0_46 = arith.constant 0 : index
      %c0_47 = arith.constant 0 : index
      %69 = vector.load %arg8[%c0_45, %c0_46, %c0_47] : memref<2x16x512xf32, #tpu.memory_space<vmem>>, vector<2x16x512xf32>
      tpu.vector_store %arg8[%c0_45, %c0_46, %c0_47], %68 {strides = array<i32>} : memref<2x16x512xf32, #tpu.memory_space<vmem>>, vector<2x16x512xf32>,
    } else {
    }
    %c0 = arith.constant 0 : index
    %c0_1 = arith.constant 0 : index
    %c0_2 = arith.constant 0 : index
    %3 = vector.load %arg8[%c0, %c0_1, %c0_2] : memref<2x16x512xf32, #tpu.memory_space<vmem>>, vector<2x16x512xf32>
    %4 = arith.index_cast %arg1 : i32 to index
    %5 = memref.load %arg6[%4] : memref<2xf32, #tpu.memory_space<smem>>
    %c0_3 = arith.constant 0 : index
    %c0_4 = arith.constant 0 : index
    %c0_5 = arith.constant 0 : index
    %6 = vector.load %arg4[%c0_3, %c0_4, %c0_5] : memref<1x1x512xf32, #tpu.memory_space<vmem>>, vector<1x1x512xf32>
    %7 = arith.truncf %3 : vector<2x16x512xf32> to vector<2x16x512xbf16>
    %8 = vector.shape_cast %7 : vector<2x16x512xbf16> to vector<32x512xbf16>
    %9 = vector.shape_cast %6 : vector<1x1x512xf32> to vector<1x1x512xf32>
    %10 = vector.broadcast %9 : vector<1x1x512xf32> to vector<2x16x512xf32>
    %c0_6 = arith.constant 0 : index
    %c0_7 = arith.constant 0 : index
    %c0_8 = arith.constant 0 : index
    %c0_9 = arith.constant 0 : index
    %11 = vector.load %arg3[%c0_6, %c0_7, %c0_8, %c0_9] : memref<1x6x512x512xbf16, #tpu.memory_space<vmem>>, vector<1x1x512x512xbf16>
    %12 = vector.shape_cast %11 : vector<1x1x512x512xbf16> to vector<512x512xbf16>
    %cst = arith.constant dense<0.000000e+00> : vector<32x512xf32>
    %13 = tpu.matmul %8, %12, %cst {dimension_numbers = #tpu.dot_dimension_numbers<[1], [0], [0], [1], [0, 0, 1, 1], [], []>} : vector<32x512xbf16>, vector<512x512xbf16>, vector<32x512xf32> -> vector<32x512xf32>
    %14 = vector.shape_cast %13 : vector<32x512xf32> to vector<2x16x512xf32>
    %cst_10 = arith.constant 0.000000e+00 : f32
    %15 = vector.broadcast %cst_10 : f32 to vector<2x1x512xf32>
    %16 = vector.extract_strided_slice %14 {offsets = [0, 0, 0], sizes = [2, 15, 512], strides = [1, 1, 1]} : vector<2x16x512xf32> to vector<2x15x512xf32>
    %17 = tpu.concatenate %15, %16 in 1 : vector<2x1x512xf32>, vector<2x15x512xf32> -> vector<2x16x512xf32>
    %18 = arith.addf %10, %17 : vector<2x16x512xf32>
    %c0_11 = arith.constant 0 : index
    %c1 = arith.constant 1 : index
    %c0_12 = arith.constant 0 : index
    %c0_13 = arith.constant 0 : index
    %19 = vector.load %arg3[%c0_11, %c1, %c0_12, %c0_13] : memref<1x6x512x512xbf16, #tpu.memory_space<vmem>>, vector<1x1x512x512xbf16>
    %20 = vector.shape_cast %19 : vector<1x1x512x512xbf16> to vector<512x512xbf16>
    %cst_14 = arith.constant dense<0.000000e+00> : vector<32x512xf32>
    %21 = tpu.matmul %8, %20, %cst_14 {dimension_numbers = #tpu.dot_dimension_numbers<[1], [0], [0], [1], [0, 0, 1, 1], [], []>} : vector<32x512xbf16>, vector<512x512xbf16>, vector<32x512xf32> -> vector<32x512xf32>
    %22 = vector.shape_cast %21 : vector<32x512xf32> to vector<2x16x512xf32>
    %23 = arith.addf %18, %22 : vector<2x16x512xf32>
    %c0_15 = arith.constant 0 : index
    %c2 = arith.constant 2 : index
    %c0_16 = arith.constant 0 : index
    %c0_17 = arith.constant 0 : index
    %24 = vector.load %arg3[%c0_15, %c2, %c0_16, %c0_17] : memref<1x6x512x512xbf16, #tpu.memory_space<vmem>>, vector<1x1x512x512xbf16>
    %25 = vector.shape_cast %24 : vector<1x1x512x512xbf16> to vector<512x512xbf16>
    %cst_18 = arith.constant dense<0.000000e+00> : vector<32x512xf32>
    %26 = tpu.matmul %8, %25, %cst_18 {dimension_numbers = #tpu.dot_dimension_numbers<[1], [0], [0], [1], [0, 0, 1, 1], [], []>} : vector<32x512xbf16>, vector<512x512xbf16>, vector<32x512xf32> -> vector<32x512xf32>
    %27 = vector.shape_cast %26 : vector<32x512xf32> to vector<2x16x512xf32>
    %cst_19 = arith.constant 0.000000e+00 : f32
    %28 = vector.broadcast %cst_19 : f32 to vector<2x1x512xf32>
    %29 = vector.extract_strided_slice %27 {offsets = [0, 1, 0], sizes = [2, 15, 512], strides = [1, 1, 1]} : vector<2x16x512xf32> to vector<2x15x512xf32>
    %30 = tpu.concatenate %29, %28 in 1 : vector<2x15x512xf32>, vector<2x1x512xf32> -> vector<2x16x512xf32>
    %31 = arith.addf %23, %30 : vector<2x16x512xf32>
    %cst_20 = arith.constant 0.000000e+00 : f32
    %32 = vector.broadcast %cst_20 : f32 to vector<2x16x512xf32>
    %33 = arith.cmpf oge, %31, %32 : vector<2x16x512xf32>
    %34 = vector.broadcast %5 : f32 to vector<2x16x512xf32>
    %35 = arith.mulf %31, %34 : vector<2x16x512xf32>
    %36 = arith.select %33, %31, %35 : vector<2x16x512xi1>, vector<2x16x512xf32>
    %c0_21 = arith.constant 0 : index
    %c0_22 = arith.constant 0 : index
    %c0_23 = arith.constant 0 : index
    %37 = vector.load %arg5[%c0_21, %c0_22, %c0_23] : memref<1x1x512xf32, #tpu.memory_space<vmem>>, vector<1x1x512xf32>
    %38 = arith.truncf %36 : vector<2x16x512xf32> to vector<2x16x512xbf16>
    %39 = vector.shape_cast %38 : vector<2x16x512xbf16> to vector<32x512xbf16>
    %40 = vector.shape_cast %37 : vector<1x1x512xf32> to vector<1x1x512xf32>
    %41 = vector.broadcast %40 : vector<1x1x512xf32> to vector<2x16x512xf32>
    %c0_24 = arith.constant 0 : index
    %c3 = arith.constant 3 : index
    %c0_25 = arith.constant 0 : index
    %c0_26 = arith.constant 0 : index
    %42 = vector.load %arg3[%c0_24, %c3, %c0_25, %c0_26] : memref<1x6x512x512xbf16, #tpu.memory_space<vmem>>, vector<1x1x512x512xbf16>
    %43 = vector.shape_cast %42 : vector<1x1x512x512xbf16> to vector<512x512xbf16>
    %cst_27 = arith.constant dense<0.000000e+00> : vector<32x512xf32>
    %44 = tpu.matmul %39, %43, %cst_27 {dimension_numbers = #tpu.dot_dimension_numbers<[1], [0], [0], [1], [0, 0, 1, 1], [], []>} : vector<32x512xbf16>, vector<512x512xbf16>, vector<32x512xf32> -> vector<32x512xf32>
    %45 = vector.shape_cast %44 : vector<32x512xf32> to vector<2x16x512xf32>
    %cst_28 = arith.constant 0.000000e+00 : f32
    %46 = vector.broadcast %cst_28 : f32 to vector<2x1x512xf32>
    %47 = vector.extract_strided_slice %45 {offsets = [0, 0, 0], sizes = [2, 15, 512], strides = [1, 1, 1]} : vector<2x16x512xf32> to vector<2x15x512xf32>
    %48 = tpu.concatenate %46, %47 in 1 : vector<2x1x512xf32>, vector<2x15x512xf32> -> vector<2x16x512xf32>
    %49 = arith.addf %41, %48 : vector<2x16x512xf32>
    %c0_29 = arith.constant 0 : index
    %c4 = arith.constant 4 : index
    %c0_30 = arith.constant 0 : index
    %c0_31 = arith.constant 0 : index
    %50 = vector.load %arg3[%c0_29, %c4, %c0_30, %c0_31] : memref<1x6x512x512xbf16, #tpu.memory_space<vmem>>, vector<1x1x512x512xbf16>
    %51 = vector.shape_cast %50 : vector<1x1x512x512xbf16> to vector<512x512xbf16>
    %cst_32 = arith.constant dense<0.000000e+00> : vector<32x512xf32>
    %52 = tpu.matmul %39, %51, %cst_32 {dimension_numbers = #tpu.dot_dimension_numbers<[1], [0], [0], [1], [0, 0, 1, 1], [], []>} : vector<32x512xbf16>, vector<512x512xbf16>, vector<32x512xf32> -> vector<32x512xf32>
    %53 = vector.shape_cast %52 : vector<32x512xf32> to vector<2x16x512xf32>
    %54 = arith.addf %49, %53 : vector<2x16x512xf32>
    %c0_33 = arith.constant 0 : index
    %c5 = arith.constant 5 : index
    %c0_34 = arith.constant 0 : index
    %c0_35 = arith.constant 0 : index
    %55 = vector.load %arg3[%c0_33, %c5, %c0_34, %c0_35] : memref<1x6x512x512xbf16, #tpu.memory_space<vmem>>, vector<1x1x512x512xbf16>
    %56 = vector.shape_cast %55 : vector<1x1x512x512xbf16> to vector<512x512xbf16>
    %cst_36 = arith.constant dense<0.000000e+00> : vector<32x512xf32>
    %57 = tpu.matmul %39, %56, %cst_36 {dimension_numbers = #tpu.dot_dimension_numbers<[1], [0], [0], [1], [0, 0, 1, 1], [], []>} : vector<32x512xbf16>, vector<512x512xbf16>, vector<32x512xf32> -> vector<32x512xf32>
    %58 = vector.shape_cast %57 : vector<32x512xf32> to vector<2x16x512xf32>
    %cst_37 = arith.constant 0.000000e+00 : f32
    %59 = vector.broadcast %cst_37 : f32 to vector<2x1x512xf32>
    %60 = vector.extract_strided_slice %58 {offsets = [0, 1, 0], sizes = [2, 15, 512], strides = [1, 1, 1]} : vector<2x16x512xf32> to vector<2x15x512xf32>
    %61 = tpu.concatenate %60, %59 in 1 : vector<2x15x512xf32>, vector<2x1x512xf32> -> vector<2x16x512xf32>
    %62 = arith.addf %54, %61 : vector<2x16x512xf32>
    %63 = arith.addf %62, %3 : vector<2x16x512xf32>
    %c0_38 = arith.constant 0 : index
    %c0_39 = arith.constant 0 : index
    %c0_40 = arith.constant 0 : index
    %64 = vector.load %arg8[%c0_38, %c0_39, %c0_40] : memref<2x16x512xf32, #tpu.memory_space<vmem>>, vector<2x16x512xf32>
    tpu.vector_store %arg8[%c0_38, %c0_39, %c0_40], %63 {strides = array<i32>} : memref<2x16x512xf32, #tpu.memory_space<vmem>>, vector<2x16x512xf32>,
    %c1_i32 = arith.constant 1 : i32
    %65 = arith.cmpi eq, %arg1, %c1_i32 : i32
    %66 = arith.extui %65 : i1 to i32
    %c0_i32_41 = arith.constant 0 : i32
    %67 = arith.cmpi ne, %66, %c0_i32_41 : i32
    scf.if %67 {
      %c0_42 = arith.constant 0 : index
      %c0_43 = arith.constant 0 : index
      %c0_44 = arith.constant 0 : index
      %68 = vector.load %arg7[%c0_42, %c0_43, %c0_44] : memref<2x16x512xf32, #tpu.memory_space<vmem>>, vector<2x16x512xf32>
      tpu.vector_store %arg7[%c0_42, %c0_43, %c0_44], %63 {strides = array<i32>} : memref<2x16x512xf32, #tpu.memory_space<vmem>>, vector<2x16x512xf32>,
    } else {
    }
    return
  }
  func.func @transform_0(%arg0: i32, %arg1: i32) -> (i32, i32, i32) {
    %c0_i32 = arith.constant 0 : i32
    %c0_i32_0 = arith.constant 0 : i32
    %c0_i32_1 = arith.constant 0 : i32
    return %arg0, %c0_i32, %c0_i32_0 : i32, i32, i32
  }
  func.func @transform_1(%arg0: i32, %arg1: i32) -> (i32, i32, i32, i32) {
    %c0_i32 = arith.constant 0 : i32
    %c0_i32_0 = arith.constant 0 : i32
    %c0_i32_1 = arith.constant 0 : i32
    %c0_i32_2 = arith.constant 0 : i32
    return %arg1, %c0_i32, %c0_i32_0, %c0_i32_1 : i32, i32, i32, i32
  }
  func.func @transform_2(%arg0: i32, %arg1: i32) -> (i32, i32, i32) {
    %c0_i32 = arith.constant 0 : i32
    %c0_i32_0 = arith.constant 0 : i32
    %c0_i32_1 = arith.constant 0 : i32
    return %arg1, %c0_i32, %c0_i32_0 : i32, i32, i32
  }
  func.func @transform_3(%arg0: i32, %arg1: i32) -> (i32, i32, i32) {
    %c0_i32 = arith.constant 0 : i32
    %c0_i32_0 = arith.constant 0 : i32
    %c0_i32_1 = arith.constant 0 : i32
    return %arg1, %c0_i32, %c0_i32_0 : i32, i32, i32
  }
  func.func @transform_4(%arg0: i32, %arg1: i32) -> i32 {
    %c0_i32 = arith.constant 0 : i32
    %c0_i32_0 = arith.constant 0 : i32
    return %c0_i32 : i32
  }
  func.func @transform_5(%arg0: i32, %arg1: i32) -> (i32, i32, i32) {
    %c0_i32 = arith.constant 0 : i32
    %c0_i32_0 = arith.constant 0 : i32
    %c0_i32_1 = arith.constant 0 : i32
    return %arg0, %c0_i32, %c0_i32_0 : i32, i32, i32
  }
}

</mosaic_0001>

<bundles_post_ra>
// kernel: tile.23
= control target key start
LH: loop header
LB: loop body
LE: loop exit
PB: predicated region body
PF: predicated region fallthrough
CT: control target
= control target key end

     0   :  { %2 = vsyncpa [#allocation1], 0  ;;  %s47_s6 = smov [#allocation0]   ;;  %s76_s0 = inlined_call_operand.hbm [shape: f32[32], index: 0, kind: input, shape index: {}]   ;;  %s77_s1 = inlined_call_operand.vmem [shape: f32[16,32], index: 1, kind: output, shape index: {}]  }
   0x1   :  { %s9_s7 = sshll.u32 %s47_s6, 4  ;;  %s23_s10 = scalar_lea.hbm %s76_s0, 16  ;;  %s10_s7 = int_to_ptr.vmem [resolvable:$true] %s9_s7 }
   0x2   :  { %p24_p0 = scmp.ne.s32.totalorder %s76_s0, %s23_s10  ;;  %p27_p1 = scmp.lt.u32.totalorder %s23_s10, %s76_s0 }
   0x4   :  { %p29_p2 = pnand %p27_p1, %p24_p0 }
   0x6   :  { %32 = shalt.err (!%p29_p2)
}
   0x7   :  { %s33_s15 = scalar_lea.vmem %s10_s7, 16  ;;  %s37_s16 = scalar_lea.vmem %s10_s7, 32 }
   0x8   :  { %p34_p3 = scmp.ne.s32.totalorder %s10_s7, %s33_s15  ;;  %p38_p4 = scmp.lt.s32.totalorder %s10_s7, %s10_s7 }
   0x9   :  { %p39_p5 = scmp.lt.s32.totalorder %s37_s16, %s33_s15 }
   0xb   :  { %p40_p6 = por %p39_p5, %p38_p4 }
   0xd   :  { %p41_p7 = pnand %p40_p6, %p34_p3 }
   0xf   :  { %44 = shalt.err (!%p41_p7)
}
  0x10   :  { %12 = dma.hbm_to_vmem [thread:$0]  %s76_s0, 16, %s10_s7, [#allocation1]  }
  0x11   :  { %45 = dma.done.wait [#allocation1], 16  }
  0x12   :  { %46 = vsyncadd [#allocation1], 4294967280  ;;  %v16_v0 = vld [vmem:[#allocation0] ss:$0 sm:$0xff] }
  0x13   :  { %17 = vst [vmem:[%s77_s1] sm:$0xff] %v16_v0  ;;  %21 = vst [vmem:[%s77_s1 + $0x8] sm:$0xff] %v16_v0 }
  0x14   :  { %20 = vsyncpa [#allocation1], 1 }

// kernel: tile.28
= control target key start
LH: loop header
LB: loop body
LE: loop exit
PB: predicated region body
PF: predicated region fallthrough
CT: control target
= control target key end

     0   :  { %s57_s8 = smov 96   ;;  %vm3_vm0 = vcmask 261120   ;;  %s59_s15 = smov 64   ;;  %vm9_vm1 = vcmask 1048320   ;;  %vm15_vm2 = vcmask 785920   ;;  %vm21_vm3 = vcmask 523520   ;;  %s94_s0 = inlined_call_operand.vmem [shape: f32[16,32], index: 0, kind: input, shape index: {}]   ;;  %s95_s1 = inlined_call_operand.vmem [shape: f32[1,1,512], index: 1, kind: output, shape index: {}]  }
   0x1   :  { %v48_v0 = vld [vmem:[%s94_s0 + $0x3] ss:$4 sm:$0xf]   ;;  %v49_v1 = vld [vmem:[%s94_s0 + $0x2] ss:$4 sm:$0xf]  }
   0x2   :  { %7 = vrot.lane.b32.xlu0 %v48_v0, %s57_s8  ;;  %v50_v2 = vld [vmem:[%s94_s0 + $0x1] ss:$4 sm:$0xf]   ;;  %v2_v3 = vld [vmem:[%s94_s0] ss:$4 sm:$0xf]  }
   0x3   :  { %s58_s0 = smov 32   ;;  %4 = vst.msk [vmem:[#allocation0] ss:$8 sm:$0xf] %vm3_vm0, %v2_v3  }
   0x4   :  { %19 = vrot.lane.b32.xlu1 %v50_v2, %s58_s0 }
   0x6   :  { %13 = vrot.lane.b32.xlu0 %v49_v1, %s59_s15 }
  0x74   :  { %v8_v4 = vpop.permute.xlu0 %7  }
  0x75   :  { %10 = vst.msk [vmem:[#allocation0] ss:$8 sm:$0xf] %vm9_vm1, %v8_v4  }
  0x76   :  { %v20_v5 = vpop.permute.xlu1 %19  }
  0x78   :  { %v14_v6 = vpop.permute.xlu0 %13  }
  0x79   :  { %16 = vst.msk [vmem:[#allocation0] ss:$8 sm:$0xf] %vm15_vm2, %v14_v6  }
  0x7a   :  { %22 = vst.msk [vmem:[#allocation0] ss:$8 sm:$0xf] %vm21_vm3, %v20_v5  }
  0x81   :  { %v26_v7 = vld [vmem:[#allocation0] sm:$0x1]  ;;  %v30_v8 = vld [vmem:[#allocation0 + $0x8] sm:$0x1]  ;;  %v35_v9 = vld [vmem:[#allocation0 + $0x10] sm:$0x1] }
  0x82   :  { %28 = vst [vmem:[%s95_s1] sm:$0x1] %v26_v7  ;;  %51 = vst [vmem:[%s95_s1 + $0x1] sm:$0x1] %v30_v8  ;;  %v41_v10 = vld [vmem:[#allocation0 + $0x18] sm:$0x1] }
  0x83   :  { %52 = vst [vmem:[%s95_s1 + $0x2] sm:$0x1] %v35_v9  ;;  %53 = vst [vmem:[%s95_s1 + $0x3] sm:$0x1] %v41_v10 }

// kernel: res_block_list_forward.1
= control target key start
LH: loop header
LB: loop body
LE: loop exit
PB: predicated region body
PF: predicated region fallthrough
CT: control target
= control target key end

     0   :  { %10 = vsyncpa [#allocation4], 0  ;;  %s9720_s18 = smov 0   ;;  %s9722_s19 = smov 0   ;;  %s11134_s0 = inlined_call_operand.vmem [shape: f32[4,16,512], index: 0, kind: input, shape index: {}]   ;;  %s11135_s1 = inlined_call_operand.vmem [shape: bf16[2,6,512,512], index: 1, kind: input, shape index: {}]   ;;  %s11136_s2 = inlined_call_operand.vmem [shape: f32[2,1,512], index: 2, kind: input, shape index: {}]   ;;  %s11137_s3 = inlined_call_operand.vmem [shape: f32[2,1,512], index: 3, kind: input, shape index: {}]   ;;  %s11138_s4 = inlined_call_operand.vmem [shape: f32[2], index: 4, kind: input, shape index: {}]   ;;  %s11139_s5 = inlined_call_operand.vmem [shape: f32[4,16,512], index: 5, kind: output, shape index: {}]  }
   0x1   :  { %s9724_s20 = smov 0   ;;  %s9726_s21 = smov 0  }
   0x2   :  { %s9728_s22 = smov 0  }
   0x3 LB: > { %s6884_s23 = sadd.s32 4294967295, %s9687_s22   ;;  %s25_s24 = sadd.s32 1, %s9679_s20  ;;  %s9687_s22 = sphi %s9728_s22, %s16_s22   ;;  %s9683_s21 = sphi %s9726_s21, %s11145_s21   ;;  %s9679_s20 = sphi %s9724_s20, %s11144_s20   ;;  %s9675_s19 = sphi %s9722_s19, %s11143_s19   ;;  %s9671_s18 = sphi %s9720_s18, %s11142_s18  }
   0x4   : > { %p26_p0 = scmp.ge.s32.totalorder %s25_s24, 2  ;;  %s28_s25 = sadd.s32 1, %s9683_s21 }
   0x5   : > { %p6886_p1 = scmp.ge.s32.totalorder %s9687_s22, 1  ;;  %p184_p2 = scmp.lt.s32.totalorder %s9687_s22, 5 }
   0x6   : > { %s11147_s24 = smov (%p26_p0, %s25_s24), 0  ;;  %s11149_s25 = smov (!%p26_p0, %s28_s25), %s9683_s21 }
   0x7   : > { %p9753_p3 = pnand %p6886_p1, %p184_p2  ;;  %p30_p4 = scmp.ge.s32.totalorder %s11149_s25, 2 }
   0x8   : > { %p9757_p5 = scmp.eq.s32.totalorder %s6884_s23, 0  ;;  %s197_s30 = sshll.u32 %s11138_s4, 4  ;;  %s198_s30 = int_to_ptr.vmem [resolvable:$true] %s197_s30 }
   0x9   : > { %p8415_p6 = pneg %p9753_p3  ;;  %s11151_s25 = smov (%p30_p4, %s11149_s25), 0 }
   0xa   : > { %s9630_s6 = scalar_lea.vmem %s198_s30, 16  ;;  %p9638_p12 = scmp.lt.s32.totalorder %s198_s30, %s198_s30 }
   0xb   : > { %p8416_p7 = pnand %p9757_p5, %p8415_p6  ;;  %p9631_p8 = scmp.ne.s32.totalorder %s198_s30, %s9630_s6 }
   0xc   : > { %p9639_p13 = scmp.lt.s32.totalorder %s9630_s6, %s9630_s6 }
   0xd   : > { %p9632_p9 = pneg %p8416_p7 }
   0xe   : > { %p9640_p0 = por %p9639_p13, %p9638_p12 }
   0xf   : > { %p9633_p10 = pnand %p9632_p9, %p9631_p8 }
  0x11   : > { %p9634_p11 = pneg %p9633_p10 }
  0x13   : > { %p9641_p1 = pnand %p9640_p0, %p9634_p11 }
  0x15   : > { %9644 = shalt.err (!%p9641_p1)
}
  0x16   : > { %s9689_s7 = smov [#allocation3]   ;;  %242 = sbr.rel (%p9753_p3) target bundleno = 1226 (0x4ca), region = 40 }
  0x17   : > { %8418 = dma.vmem_to_smem (!%p8416_p7), %s198_s30, 16, %s9689_s7, [#allocation4]  }
  0x1d   : > { %9666 = dma.done.wait (%p9757_p5), [#allocation4], 16  }
  0x1e   : > { %9668 = vsyncadd (%p9757_p5), [#allocation4], 4294967280 }
  0x1f   : > { %248 = sfence }
  0x20   : > { %s6891_s8 = sshll.u32 %s9675_s19, 1  ;;  %p293_p2 = scmp.lt.s32.totalorder %s9671_s18, 1 }
  0x21   : > { %p287_p4 = scmp.lt.s32.totalorder %s6891_s8, 3  ;;  %p6900_p3 = scmp.ne.s32.totalorder %s9671_s18, 0 }
  0x22   : > { %s294_s9 = scalar_select %p293_p2, %s9671_s18, 1 }
  0x23   : > { %s11153_s8 = smov (!%p287_p4, %s6891_s8), 3  ;;  %316 = sbr.rel (%p6900_p3) target bundleno = 48 (0x30), region = 48 }
  0x24   : > { %s8410_s10 = smul.u32 6144, %s294_s9  ;;  %s6895_s11 = sshll.u32 %s294_s9, 2 }
  0x25   : > { %s8312_s12 = sshll.u32 %s11153_s8, 6  ;;  %s9782_s15 = scalar_lea.vmem %s11136_s2, %s6895_s11 }
  0x26   : > { %s9787_s23 = scalar_lea.vmem %s11134_s0, %s8312_s12  ;;  %s9792_s19 = scalar_lea.vmem %s11135_s1, %s8410_s10 }
  0x27   : > { %s9797_s30 = scalar_lea.vmem %s11137_s3, %s6895_s11  ;;  %s9802_s8 = scalar_lea.vmem %s11139_s5, %s8312_s12  ;;  %v317_v0 = vld [vmem:[%s9787_s23] sm:$0xff] (!%p6900_p3)  ;;  %v318_v1 = vld [vmem:[%s9787_s23 + $0x8] sm:$0xff] (!%p6900_p3)  ;;  %v319_v2 = vld [vmem:[%s9787_s23 + $0x10] sm:$0xff] (!%p6900_p3) }
  0x28   : > { %333 = vst [vmem:[#allocation2] sm:$0xff] (!%p6900_p3), %v317_v0  ;;  %334 = vst [vmem:[#allocation2 + $0x8] sm:$0xff] (!%p6900_p3), %v318_v1  ;;  %v320_v3 = vld [vmem:[%s9787_s23 + $0x18] sm:$0xff] (!%p6900_p3)  ;;  %v321_v4 = vld [vmem:[%s9787_s23 + $0x20] sm:$0xff] (!%p6900_p3) }
  0x29   : > { %335 = vst [vmem:[#allocation2 + $0x10] sm:$0xff] (!%p6900_p3), %v319_v2  ;;  %v322_v5 = vld [vmem:[%s9787_s23 + $0x28] sm:$0xff] (!%p6900_p3)  ;;  %336 = vst [vmem:[#allocation2 + $0x18] sm:$0xff] (!%p6900_p3), %v320_v3  ;;  %v323_v6 = vld [vmem:[%s9787_s23 + $0x30] sm:$0xff] (!%p6900_p3) }
  0x2a   : > { %337 = vst [vmem:[#allocation2 + $0x20] sm:$0xff] %v321_v4  ;;  %338 = vst [vmem:[#allocation2 + $0x28] sm:$0xff] %v322_v5  ;;  %v324_v7 = vld [vmem:[%s9787_s23 + $0x38] sm:$0xff]  ;;  %v325_v8 = vld [vmem:[%s9787_s23 + $0x40] sm:$0xff] }
  0x2b   : > { %339 = vst [vmem:[#allocation2 + $0x30] sm:$0xff] %v323_v6  ;;  %340 = vst [vmem:[#allocation2 + $0x38] sm:$0xff] %v324_v7  ;;  %v326_v9 = vld [vmem:[%s9787_s23 + $0x48] sm:$0xff]  ;;  %v327_v10 = vld [vmem:[%s9787_s23 + $0x50] sm:$0xff] }
  0x2c   : > { %341 = vst [vmem:[#allocation2 + $0x40] sm:$0xff] %v325_v8  ;;  %v328_v11 = vld [vmem:[%s9787_s23 + $0x58] sm:$0xff]  ;;  %342 = vst [vmem:[#allocation2 + $0x48] sm:$0xff] %v326_v9  ;;  %v329_v12 = vld [vmem:[%s9787_s23 + $0x60] sm:$0xff] }
  0x2d   : > { %343 = vst [vmem:[#allocation2 + $0x50] sm:$0xff] %v327_v10  ;;  %344 = vst [vmem:[#allocation2 + $0x58] sm:$0xff] %v328_v11  ;;  %v330_v13 = vld [vmem:[%s9787_s23 + $0x68] sm:$0xff]  ;;  %v331_v14 = vld [vmem:[%s9787_s23 + $0x70] sm:$0xff] }
  0x2e   : > { %345 = vst [vmem:[#allocation2 + $0x60] sm:$0xff] %v329_v12  ;;  %346 = vst [vmem:[#allocation2 + $0x68] sm:$0xff] %v330_v13  ;;  %v332_v15 = vld [vmem:[%s9787_s23 + $0x78] sm:$0xff] }
  0x2f   : > { %347 = vst [vmem:[#allocation2 + $0x70] sm:$0xff] %v331_v14  ;;  %348 = vst [vmem:[#allocation2 + $0x78] sm:$0xff] %v332_v15 }
  0x30 PF: > { %v8462_v16 = vld [vmem:[%s9792_s19 + $0x4] ss:$16 sps:$4 sm:$0xff]   ;;  %v8464_v17 = vld [vmem:[%s9792_s19 + $0xc] ss:$16 sps:$4 sm:$0xff]   ;;  %v8466_v18 = vld [vmem:[%s9792_s19] ss:$16 sps:$4 sm:$0xff]  }
  0x31   : > { %1164 = vmatprep.subr.bf16.mxu0 %v8462_v16  ;;  %v8467_v19 = vld [vmem:[%s9792_s19 + $0x8] ss:$16 sps:$4 sm:$0xff]   ;;  %1270 = vmatprep.subr.bf16.mxu1 %v8464_v17  ;;  %v8468_v20 = vld [vmem:[%s9792_s19 + $0x24] ss:$16 sps:$4 sm:$0xff]   ;;  %v8470_v21 = vld [vmem:[%s9792_s19 + $0x2c] ss:$16 sps:$4 sm:$0xff]  }
  0x32   : > { %1165 = vmatpush1.bf16.msra.mxu0 %v8466_v18  ;;  %1271 = vmatpush1.bf16.msra.mxu1 %v8467_v19  ;;  %v8472_v22 = vld [vmem:[%s9792_s19 + $0x20] ss:$16 sps:$4 sm:$0xff]   ;;  %v8473_v23 = vld [vmem:[%s9792_s19 + $0x28] ss:$16 sps:$4 sm:$0xff]   ;;  %v8474_v24 = vld [vmem:[%s9792_s19 + $0x44] ss:$16 sps:$4 sm:$0xff]  }
  0x33   : > { %1166 = vmatprep.subr.bf16.mxu0 %v8468_v20  ;;  %1272 = vmatprep.subr.bf16.mxu1 %v8470_v21  ;;  %v8476_v25 = vld [vmem:[%s9792_s19 + $0x4c] ss:$16 sps:$4 sm:$0xff]   ;;  %v8478_v26 = vld [vmem:[%s9792_s19 + $0x40] ss:$16 sps:$4 sm:$0xff]   ;;  %v8479_v27 = vld [vmem:[%s9792_s19 + $0x48] ss:$16 sps:$4 sm:$0xff]  }
  0x34   : > { %v8480_v28 = vld [vmem:[%s9792_s19 + $0x64] ss:$16 sps:$4 sm:$0xff]   ;;  %v8482_v29 = vld [vmem:[%s9792_s19 + $0x6c] ss:$16 sps:$4 sm:$0xff]   ;;  %v8484_v30 = vld [vmem:[%s9792_s19 + $0x60] ss:$16 sps:$4 sm:$0xff]  }
  0x35   : > { %v8485_v31 = vld [vmem:[%s9792_s19 + $0x68] ss:$16 sps:$4 sm:$0xff]   ;;  %v8486_v32 = vld [vmem:[%s9792_s19 + $0x84] ss:$16 sps:$4 sm:$0xff]   ;;  %v8488_v33 = vld [vmem:[%s9792_s19 + $0x8c] ss:$16 sps:$4 sm:$0xff]  }
  0x36   : > { %1167 = vmatpush1.bf16.msra.mxu0 %v8472_v22  ;;  %1273 = vmatpush1.bf16.msra.mxu1 %v8473_v23  ;;  %v8490_v34 = vld [vmem:[%s9792_s19 + $0x80] ss:$16 sps:$4 sm:$0xff]   ;;  %v8491_v35 = vld [vmem:[%s9792_s19 + $0x88] ss:$16 sps:$4 sm:$0xff]   ;;  %v8492_v36 = vld [vmem:[%s9792_s19 + $0xa4] ss:$16 sps:$4 sm:$0xff]  }
  0x37   : > { %1168 = vmatprep.subr.bf16.mxu0 %v8474_v24  ;;  %1274 = vmatprep.subr.bf16.mxu1 %v8476_v25  ;;  %v8494_v37 = vld [vmem:[%s9792_s19 + $0xac] ss:$16 sps:$4 sm:$0xff]   ;;  %v8496_v38 = vld [vmem:[%s9792_s19 + $0xa0] ss:$16 sps:$4 sm:$0xff]   ;;  %v8497_v39 = vld [vmem:[%s9792_s19 + $0xa8] ss:$16 sps:$4 sm:$0xff]  }
  0x38   : > { %v8498_v40 = vld [vmem:[%s9792_s19 + $0xc4] ss:$16 sps:$4 sm:$0xff]   ;;  %v8500_v41 = vld [vmem:[%s9792_s19 + $0xcc] ss:$16 sps:$4 sm:$0xff]   ;;  %v8502_v42 = vld [vmem:[%s9792_s19 + $0xc0] ss:$16 sps:$4 sm:$0xff]  }
  0x39   : > { %v8503_v43 = vld [vmem:[%s9792_s19 + $0xc8] ss:$16 sps:$4 sm:$0xff]   ;;  %v8504_v44 = vld [vmem:[%s9792_s19 + $0xe4] ss:$16 sps:$4 sm:$0xff]   ;;  %v8506_v45 = vld [vmem:[%s9792_s19 + $0xec] ss:$16 sps:$4 sm:$0xff]  }
  0x3a   : > { %1169 = vmatpush1.bf16.msra.mxu0 %v8478_v26  ;;  %1275 = vmatpush1.bf16.msra.mxu1 %v8479_v27  ;;  %v8508_v46 = vld [vmem:[%s9792_s19 + $0xe0] ss:$16 sps:$4 sm:$0xff]   ;;  %v8509_v47 = vld [vmem:[%s9792_s19 + $0xe8] ss:$16 sps:$4 sm:$0xff]   ;;  %v8510_v48 = vld [vmem:[%s9792_s19 + $0x104] ss:$16 sps:$4 sm:$0xff]  }
  0x3b   : > { %1170 = vmatprep.subr.bf16.mxu0 %v8480_v28  ;;  %1276 = vmatprep.subr.bf16.mxu1 %v8482_v29  ;;  %v8512_v49 = vld [vmem:[%s9792_s19 + $0x10c] ss:$16 sps:$4 sm:$0xff]   ;;  %v8514_v50 = vld [vmem:[%s9792_s19 + $0x100] ss:$16 sps:$4 sm:$0xff]   ;;  %v8515_v51 = vld [vmem:[%s9792_s19 + $0x108] ss:$16 sps:$4 sm:$0xff]  }
  0x3c   : > { %v8516_v52 = vld [vmem:[%s9792_s19 + $0x124] ss:$16 sps:$4 sm:$0xff]   ;;  %v8518_v53 = vld [vmem:[%s9792_s19 + $0x12c] ss:$16 sps:$4 sm:$0xff]   ;;  %v8520_v54 = vld [vmem:[%s9792_s19 + $0x120] ss:$16 sps:$4 sm:$0xff]  }
  0x3d   : > { %v8521_v55 = vld [vmem:[%s9792_s19 + $0x128] ss:$16 sps:$4 sm:$0xff]   ;;  %v8522_v56 = vld [vmem:[%s9792_s19 + $0x144] ss:$16 sps:$4 sm:$0xff]   ;;  %v8524_v57 = vld [vmem:[%s9792_s19 + $0x14c] ss:$16 sps:$4 sm:$0xff]  }
  0x3e   : > { %1171 = vmatpush1.bf16.msra.mxu0 %v8484_v30  ;;  %1277 = vmatpush1.bf16.msra.mxu1 %v8485_v31  ;;  %v8526_v58 = vld [vmem:[%s9792_s19 + $0x140] ss:$16 sps:$4 sm:$0xff]   ;;  %v8527_v59 = vld [vmem:[%s9792_s19 + $0x148] ss:$16 sps:$4 sm:$0xff]   ;;  %v8528_v60 = vld [vmem:[%s9792_s19 + $0x164] ss:$16 sps:$4 sm:$0xff]  }
  0x3f   : > { %1172 = vmatprep.subr.bf16.mxu0 %v8486_v32  ;;  %1278 = vmatprep.subr.bf16.mxu1 %v8488_v33  ;;  %v8530_v61 = vld [vmem:[%s9792_s19 + $0x16c] ss:$16 sps:$4 sm:$0xff]   ;;  %v8532_v0 = vld [vmem:[%s9792_s19 + $0x160] ss:$16 sps:$4 sm:$0xff]   ;;  %v8533_v1 = vld [vmem:[%s9792_s19 + $0x168] ss:$16 sps:$4 sm:$0xff]  }
  0x40   : > { %v350_v62 = vld [vmem:[#allocation2 + $0x8] sm:$0xff]  ;;  %v8534_v3 = vld [vmem:[%s9792_s19 + $0x184] ss:$16 sps:$4 sm:$0xff]   ;;  %v8538_v5 = vld [vmem:[%s9792_s19 + $0x180] ss:$16 sps:$4 sm:$0xff]   ;;  %vm1392_vm0 = vcmask 1040384  }
  0x41   : > { %v354_v63 = vld [vmem:[#allocation2 + $0x28] sm:$0xff]  ;;  %v8540_v7 = vld [vmem:[%s9792_s19 + $0x1a4] ss:$16 sps:$4 sm:$0xff]   ;;  %v8544_v9 = vld [vmem:[%s9792_s19 + $0x1a0] ss:$16 sps:$4 sm:$0xff]   ;;  %s365_s9 = sld [smem:[#allocation3 + %s9671_s18]] }
  0x42   : > { %1173 = vmatpush1.bf16.msra.mxu0 %v8490_v34  ;;  %1279 = vmatpush1.bf16.msra.mxu1 %v8491_v35  ;;  %v9869_v2 = vpack.c.bf16 %v354_v63, %v350_v62  ;;  %v8536_v4 = vld [vmem:[%s9792_s19 + $0x18c] ss:$16 sps:$4 sm:$0xff]   ;;  %v8539_v6 = vld [vmem:[%s9792_s19 + $0x188] ss:$16 sps:$4 sm:$0xff]   ;;  %v8546_v11 = vld [vmem:[%s9792_s19 + $0x1c4] ss:$16 sps:$4 sm:$0xff]  }
  0x43   : > { %1174 = vmatprep.subr.bf16.mxu0 %v8492_v36  ;;  %1280 = vmatprep.subr.bf16.mxu1 %v8494_v37  ;;  %v8542_v8 = vld [vmem:[%s9792_s19 + $0x1ac] ss:$16 sps:$4 sm:$0xff]   ;;  %v8545_v10 = vld [vmem:[%s9792_s19 + $0x1a8] ss:$16 sps:$4 sm:$0xff]   ;;  %v8550_v13 = vld [vmem:[%s9792_s19 + $0x1c0] ss:$16 sps:$4 sm:$0xff]  }
  0x44   : > { %1196 = vmatprep.mubr.bf16.mxu0 %v9869_v2  ;;  %1302 = vmatprep.mubr.bf16.mxu1 %v9869_v2  ;;  %v8548_v12 = vld [vmem:[%s9792_s19 + $0x1cc] ss:$16 sps:$4 sm:$0xff]   ;;  %v8551_v14 = vld [vmem:[%s9792_s19 + $0x1c8] ss:$16 sps:$4 sm:$0xff]   ;;  %v8552_v15 = vld [vmem:[%s9792_s19 + $0x1e4] ss:$16 sps:$4 sm:$0xff]  }
  0x45   : > { %v8554_v16 = vld [vmem:[%s9792_s19 + $0x1ec] ss:$16 sps:$4 sm:$0xff]   ;;  %v8556_v17 = vld [vmem:[%s9792_s19 + $0x1e0] ss:$16 sps:$4 sm:$0xff]   ;;  %v8557_v18 = vld [vmem:[%s9792_s19 + $0x1e8] ss:$16 sps:$4 sm:$0xff]  }
  0x46   : > { %1175 = vmatpush1.bf16.msra.mxu0 %v8496_v38  ;;  %1281 = vmatpush1.bf16.msra.mxu1 %v8497_v39  ;;  %v8560_v19 = vld [vmem:[%s9792_s19 + $0x204] ss:$16 sps:$4 sm:$0xff]   ;;  %v8563_v22 = vld [vmem:[%s9792_s19 + $0x20c] ss:$16 sps:$4 sm:$0xff]   ;;  %v8558_v23 = vld [vmem:[%s9792_s19 + $0x200] ss:$16 sps:$4 sm:$0xff]  }
  0x47   : > { %1176 = vmatprep.subr.bf16.mxu0 %v8498_v40  ;;  %1282 = vmatprep.subr.bf16.mxu1 %v8500_v41  ;;  %v349_v20 = vld [vmem:[#allocation2] sm:$0xff]  ;;  %v8561_v24 = vld [vmem:[%s9792_s19 + $0x208] ss:$16 sps:$4 sm:$0xff]   ;;  %v8569_v27 = vld [vmem:[%s9792_s19 + $0x22c] ss:$16 sps:$4 sm:$0xff]   ;;  %vm3451_vm1 = vcmask 1046528  }
  0x48   : > { %v353_v21 = vld [vmem:[#allocation2 + $0x20] sm:$0xff]  ;;  %v8567_v29 = vld [vmem:[%s9792_s19 + $0x228] ss:$16 sps:$4 sm:$0xff]   ;;  %v8575_v31 = vld [vmem:[%s9792_s19 + $0x24c] ss:$16 sps:$4 sm:$0xff]   ;;  %p8309_p5 = scmp.ne.s32.totalorder %s9671_s18, 1 }
  0x49   : > { %v9893_v25 = vpack.c.bf16 %v353_v21, %v349_v20  ;;  %v8566_v26 = vld [vmem:[%s9792_s19 + $0x224] ss:$16 sps:$4 sm:$0xff]   ;;  %v8564_v28 = vld [vmem:[%s9792_s19 + $0x220] ss:$16 sps:$4 sm:$0xff]   ;;  %v8573_v33 = vld [vmem:[%s9792_s19 + $0x248] ss:$16 sps:$4 sm:$0xff]  }
  0x4a   : > { %1177 = vmatpush1.bf16.msra.mxu0 %v8502_v42  ;;  %1283 = vmatpush1.bf16.msra.mxu1 %v8503_v43  ;;  %v8572_v30 = vld [vmem:[%s9792_s19 + $0x244] ss:$16 sps:$4 sm:$0xff]   ;;  %v8570_v32 = vld [vmem:[%s9792_s19 + $0x240] ss:$16 sps:$4 sm:$0xff]   ;;  %v8581_v35 = vld [vmem:[%s9792_s19 + $0x26c] ss:$16 sps:$4 sm:$0xff]  }
  0x4b   : > { %1178 = vmatprep.subr.bf16.mxu0 %v8504_v44  ;;  %1284 = vmatprep.subr.bf16.mxu1 %v8506_v45  ;;  %v8578_v34 = vld [vmem:[%s9792_s19 + $0x264] ss:$16 sps:$4 sm:$0xff]   ;;  %v8576_v36 = vld [vmem:[%s9792_s19 + $0x260] ss:$16 sps:$4 sm:$0xff]   ;;  %v8579_v37 = vld [vmem:[%s9792_s19 + $0x268] ss:$16 sps:$4 sm:$0xff]  }
  0x4c   : > { %v8584_v38 = vld [vmem:[%s9792_s19 + $0x284] ss:$16 sps:$4 sm:$0xff]   ;;  %v8587_v39 = vld [vmem:[%s9792_s19 + $0x28c] ss:$16 sps:$4 sm:$0xff]   ;;  %v8582_v40 = vld [vmem:[%s9792_s19 + $0x280] ss:$16 sps:$4 sm:$0xff]  }
  0x4d   : > { %v8585_v41 = vld [vmem:[%s9792_s19 + $0x288] ss:$16 sps:$4 sm:$0xff]   ;;  %v8590_v42 = vld [vmem:[%s9792_s19 + $0x2a4] ss:$16 sps:$4 sm:$0xff]   ;;  %v8593_v43 = vld [vmem:[%s9792_s19 + $0x2ac] ss:$16 sps:$4 sm:$0xff]  }
  0x4e   : > { %1179 = vmatpush1.bf16.msra.mxu0 %v8508_v46  ;;  %1285 = vmatpush1.bf16.msra.mxu1 %v8509_v47  ;;  %v358_v44 = vld [vmem:[#allocation2 + $0x48] sm:$0xff]  ;;  %v357_v47 = vld [vmem:[#allocation2 + $0x40] sm:$0xff] }
  0x4f   : > { %1180 = vmatprep.subr.bf16.mxu0 %v8510_v48  ;;  %1286 = vmatprep.subr.bf16.mxu1 %v8512_v49  ;;  %v362_v45 = vld [vmem:[#allocation2 + $0x68] sm:$0xff]  ;;  %v361_v48 = vld [vmem:[#allocation2 + $0x60] sm:$0xff] }
  0x50   : > { %v9915_v46 = vpack.c.bf16 %v362_v45, %v358_v44  ;;  %v8588_v49 = vld [vmem:[%s9792_s19 + $0x2a0] ss:$16 sps:$4 sm:$0xff]   ;;  %v8603_v62 = vld [vmem:[%s9792_s19 + $0x2e8] ss:$16 sps:$4 sm:$0xff]   ;;  %v8608_v63 = vld [vmem:[%s9792_s19 + $0x304] ss:$16 sps:$4 sm:$0xff]  }
  0x51   : > { %v8638_v20 = vld [vmem:[%s9792_s19 + $0x3a4] ss:$16 sps:$4 sm:$0xff]   ;;  %v8641_v21 = vld [vmem:[%s9792_s19 + $0x3ac] ss:$16 sps:$4 sm:$0xff]   ;;  %v8660_v44 = vld [vmem:[%s9792_s19 + $0x420] ss:$16 sps:$4 sm:$0xff]  }
  0x52   : > { %1181 = vmatpush1.bf16.msra.mxu0 %v8514_v50  ;;  %1287 = vmatpush1.bf16.msra.mxu1 %v8515_v51  ;;  %v8591_v50 = vld [vmem:[%s9792_s19 + $0x2a8] ss:$16 sps:$4 sm:$0xff]   ;;  %v9919_v51 = vpack.c.bf16 %v361_v48, %v357_v47  ;;  %v359_v48 = vld [vmem:[#allocation2 + $0x50] sm:$0xff] }
  0x53   : > { %1182 = vmatprep.subr.bf16.mxu0 %v8516_v52  ;;  %1288 = vmatprep.subr.bf16.mxu1 %v8518_v53  ;;  %v8596_v52 = vld [vmem:[%s9792_s19 + $0x2c4] ss:$16 sps:$4 sm:$0xff]   ;;  %v8599_v53 = vld [vmem:[%s9792_s19 + $0x2cc] ss:$16 sps:$4 sm:$0xff]   ;;  %v8663_v45 = vld [vmem:[%s9792_s19 + $0x428] ss:$16 sps:$4 sm:$0xff]  }
  0x56   : > { %1183 = vmatpush1.bf16.msra.mxu0 %v8520_v54  ;;  %1289 = vmatpush1.bf16.msra.mxu1 %v8521_v55  ;;  %v8594_v54 = vld [vmem:[%s9792_s19 + $0x2c0] ss:$16 sps:$4 sm:$0xff]   ;;  %v8597_v55 = vld [vmem:[%s9792_s19 + $0x2c8] ss:$16 sps:$4 sm:$0xff]  }
  0x57   : > { %1184 = vmatprep.subr.bf16.mxu0 %v8522_v56  ;;  %1290 = vmatprep.subr.bf16.mxu1 %v8524_v57  ;;  %v8602_v56 = vld [vmem:[%s9792_s19 + $0x2e4] ss:$16 sps:$4 sm:$0xff]   ;;  %v352_v57 = vld [vmem:[#allocation2 + $0x18] sm:$0xff] }
  0x5a   : > { %1185 = vmatpush1.bf16.msra.mxu0 %v8526_v58  ;;  %1291 = vmatpush1.bf16.msra.mxu1 %v8527_v59  ;;  %v356_v58 = vld [vmem:[#allocation2 + $0x38] sm:$0xff] }
  0x5b   : > { %1186 = vmatprep.subr.bf16.mxu0 %v8528_v60  ;;  %1292 = vmatprep.subr.bf16.mxu1 %v8530_v61  ;;  %v8605_v59 = vld [vmem:[%s9792_s19 + $0x2ec] ss:$16 sps:$4 sm:$0xff]   ;;  %v9931_v60 = vpack.c.bf16 %v356_v58, %v352_v57  ;;  %v8600_v61 = vld [vmem:[%s9792_s19 + $0x2e0] ss:$16 sps:$4 sm:$0xff]  }
  0x5c   : > { %v8677_v57 = vld [vmem:[%s9792_s19 + $0x46c] ss:$16 sps:$4 sm:$0xff]   ;;  %v8672_v58 = vld [vmem:[%s9792_s19 + $0x460] ss:$16 sps:$4 sm:$0xff]  }
  0x5e   : > { %1187 = vmatpush1.bf16.msra.mxu0 %v8532_v0  ;;  %1293 = vmatpush1.bf16.msra.mxu1 %v8533_v1  ;;  %v8611_v0 = vld [vmem:[%s9792_s19 + $0x30c] ss:$16 sps:$4 sm:$0xff]   ;;  %v8606_v1 = vld [vmem:[%s9792_s19 + $0x300] ss:$16 sps:$4 sm:$0xff]  }
  0x5f   : > { %1188 = vmatprep.subr.bf16.mxu0 %v8534_v3  ;;  %1294 = vmatprep.subr.bf16.mxu1 %v8536_v4  ;;  %v8609_v3 = vld [vmem:[%s9792_s19 + $0x308] ss:$16 sps:$4 sm:$0xff]   ;;  %v8614_v4 = vld [vmem:[%s9792_s19 + $0x324] ss:$16 sps:$4 sm:$0xff]  }
  0x62   : > { %1189 = vmatpush1.bf16.msra.mxu0 %v8538_v5  ;;  %1295 = vmatpush1.bf16.msra.mxu1 %v8539_v6  ;;  %v8617_v5 = vld [vmem:[%s9792_s19 + $0x32c] ss:$16 sps:$4 sm:$0xff]   ;;  %v8612_v6 = vld [vmem:[%s9792_s19 + $0x320] ss:$16 sps:$4 sm:$0xff]  }
  0x63   : > { %1190 = vmatprep.subr.bf16.mxu0 %v8540_v7  ;;  %1296 = vmatprep.subr.bf16.mxu1 %v8542_v8  ;;  %v8615_v7 = vld [vmem:[%s9792_s19 + $0x328] ss:$16 sps:$4 sm:$0xff]   ;;  %v8620_v8 = vld [vmem:[%s9792_s19 + $0x344] ss:$16 sps:$4 sm:$0xff]  }
  0x66   : > { %1191 = vmatpush1.bf16.msra.mxu0 %v8544_v9  ;;  %1297 = vmatpush1.bf16.msra.mxu1 %v8545_v10  ;;  %v8623_v9 = vld [vmem:[%s9792_s19 + $0x34c] ss:$16 sps:$4 sm:$0xff]   ;;  %v8618_v10 = vld [vmem:[%s9792_s19 + $0x340] ss:$16 sps:$4 sm:$0xff]  }
  0x67   : > { %1192 = vmatprep.subr.bf16.mxu0 %v8546_v11  ;;  %1298 = vmatprep.subr.bf16.mxu1 %v8548_v12  ;;  %v8621_v11 = vld [vmem:[%s9792_s19 + $0x348] ss:$16 sps:$4 sm:$0xff]   ;;  %v8626_v12 = vld [vmem:[%s9792_s19 + $0x364] ss:$16 sps:$4 sm:$0xff]  }
  0x6a   : > { %1193 = vmatpush1.bf16.msra.mxu0 %v8550_v13  ;;  %1299 = vmatpush1.bf16.msra.mxu1 %v8551_v14  ;;  %v8629_v13 = vld [vmem:[%s9792_s19 + $0x36c] ss:$16 sps:$4 sm:$0xff]   ;;  %v8624_v14 = vld [vmem:[%s9792_s19 + $0x360] ss:$16 sps:$4 sm:$0xff]  }
  0x6b   : > { %1194 = vmatprep.subr.bf16.mxu0 %v8552_v15  ;;  %1300 = vmatprep.subr.bf16.mxu1 %v8554_v16  ;;  %v8627_v15 = vld [vmem:[%s9792_s19 + $0x368] ss:$16 sps:$4 sm:$0xff]   ;;  %v8632_v16 = vld [vmem:[%s9792_s19 + $0x384] ss:$16 sps:$4 sm:$0xff]  }
  0x6e   : > { %1195 = vmatpush1.bf16.msra.mxu0 %v8556_v17  ;;  %1301 = vmatpush1.bf16.msra.mxu1 %v8557_v18  ;;  %v8635_v17 = vld [vmem:[%s9792_s19 + $0x38c] ss:$16 sps:$4 sm:$0xff]   ;;  %v8630_v18 = vld [vmem:[%s9792_s19 + $0x380] ss:$16 sps:$4 sm:$0xff]  }
  0x6f   : > { %1217 = vmatprep.subr.bf16.mxu0 %v8560_v19  ;;  %1323 = vmatprep.subr.bf16.mxu1 %v8563_v22  ;;  %v8633_v19 = vld [vmem:[%s9792_s19 + $0x388] ss:$16 sps:$4 sm:$0xff]   ;;  %v8636_v22 = vld [vmem:[%s9792_s19 + $0x3a0] ss:$16 sps:$4 sm:$0xff]  }
  0x71   : > { %1197 = vmatmul.mubr.bf16.vlgmr.msra.gmra.mrb[0].mxu0 %v9893_v25  ;;  %1303 = vmatmul.mubr.bf16.vlgmr.msra.gmra.mrb[0].mxu1 %v9893_v25 }
  0x72   : > { %1218 = vmatpush1.bf16.msra.mxu0 %v8558_v23  ;;  %1324 = vmatpush1.bf16.msra.mxu1 %v8561_v24  ;;  %v8639_v23 = vld [vmem:[%s9792_s19 + $0x3a8] ss:$16 sps:$4 sm:$0xff]   ;;  %v8644_v24 = vld [vmem:[%s9792_s19 + $0x3c4] ss:$16 sps:$4 sm:$0xff]  }
  0x73   : > { %1219 = vmatprep.subr.bf16.mxu0 %v8566_v26  ;;  %1325 = vmatprep.subr.bf16.mxu1 %v8569_v27  ;;  %v8647_v26 = vld [vmem:[%s9792_s19 + $0x3cc] ss:$16 sps:$4 sm:$0xff]   ;;  %v8642_v27 = vld [vmem:[%s9792_s19 + $0x3c0] ss:$16 sps:$4 sm:$0xff]  }
  0x74   : > { %1206 = vmatprep.mubr.bf16.mxu0 %v9915_v46  ;;  %1312 = vmatprep.mubr.bf16.mxu1 %v9915_v46 }
  0x76   : > { %1220 = vmatpush1.bf16.msra.mxu0 %v8564_v28  ;;  %1326 = vmatpush1.bf16.msra.mxu1 %v8567_v29  ;;  %v8645_v28 = vld [vmem:[%s9792_s19 + $0x3c8] ss:$16 sps:$4 sm:$0xff]   ;;  %v8650_v29 = vld [vmem:[%s9792_s19 + $0x3e4] ss:$16 sps:$4 sm:$0xff]  }
  0x77   : > { %1221 = vmatprep.subr.bf16.mxu0 %v8572_v30  ;;  %1327 = vmatprep.subr.bf16.mxu1 %v8575_v31  ;;  %v8653_v30 = vld [vmem:[%s9792_s19 + $0x3ec] ss:$16 sps:$4 sm:$0xff]   ;;  %v8648_v31 = vld [vmem:[%s9792_s19 + $0x3e0] ss:$16 sps:$4 sm:$0xff]  }
  0x79   : > { %1207 = vmatmul.mubr.bf16.gmra.mrb[4].mxu0 %v9919_v51  ;;  %1313 = vmatmul.mubr.bf16.gmra.mrb[4].mxu1 %v9919_v51 }
  0x7a   : > { %1222 = vmatpush1.bf16.msra.mxu0 %v8570_v32  ;;  %1328 = vmatpush1.bf16.msra.mxu1 %v8573_v33  ;;  %v8651_v32 = vld [vmem:[%s9792_s19 + $0x3e8] ss:$16 sps:$4 sm:$0xff]   ;;  %v351_v33 = vld [vmem:[#allocation2 + $0x10] sm:$0xff] }
  0x7b   : > { %1223 = vmatprep.subr.bf16.mxu0 %v8578_v34  ;;  %1329 = vmatprep.subr.bf16.mxu1 %v8581_v35  ;;  %v355_v34 = vld [vmem:[#allocation2 + $0x30] sm:$0xff] }
  0x7c   : > { %1249 = vmatprep.mubr.bf16.mxu0 %v9931_v60  ;;  %1355 = vmatprep.mubr.bf16.mxu1 %v9931_v60  ;;  %v8656_v35 = vld [vmem:[%s9792_s19 + $0x404] ss:$16 sps:$4 sm:$0xff]  }
  0x7e   : > { %1224 = vmatpush1.bf16.msra.mxu0 %v8576_v36  ;;  %1330 = vmatpush1.bf16.msra.mxu1 %v8579_v37  ;;  %v8659_v36 = vld [vmem:[%s9792_s19 + $0x40c] ss:$16 sps:$4 sm:$0xff]   ;;  %v8654_v37 = vld [vmem:[%s9792_s19 + $0x400] ss:$16 sps:$4 sm:$0xff]  }
  0x7f   : > { %1225 = vmatprep.subr.bf16.mxu0 %v8584_v38  ;;  %1331 = vmatprep.subr.bf16.mxu1 %v8587_v39  ;;  %v8657_v38 = vld [vmem:[%s9792_s19 + $0x408] ss:$16 sps:$4 sm:$0xff]   ;;  %v9973_v39 = vpack.c.bf16 %v355_v34, %v351_v33  ;;  %v8726_v33 = vld [vmem:[%s9792_s19 + $0x580] ss:$16 sps:$4 sm:$0xff]  }
  0x80   : > { %v8729_v34 = vld [vmem:[%s9792_s19 + $0x588] ss:$16 sps:$4 sm:$0xff]  }
  0x82   : > { %1226 = vmatpush1.bf16.msra.mxu0 %v8582_v40  ;;  %1332 = vmatpush1.bf16.msra.mxu1 %v8585_v41  ;;  %v360_v40 = vld [vmem:[#allocation2 + $0x58] sm:$0xff] }
  0x83   : > { %1227 = vmatprep.subr.bf16.mxu0 %v8590_v42  ;;  %1333 = vmatprep.subr.bf16.mxu1 %v8593_v43  ;;  %v364_v41 = vld [vmem:[#allocation2 + $0x78] sm:$0xff]  ;;  %v8662_v42 = vld [vmem:[%s9792_s19 + $0x424] ss:$16 sps:$4 sm:$0xff]  }
  0x84   : > { %v8665_v43 = vld [vmem:[%s9792_s19 + $0x42c] ss:$16 sps:$4 sm:$0xff]   ;;  %v9979_v47 = vpack.c.bf16 %v364_v41, %v360_v40  ;;  %v8740_v40 = vld [vmem:[%s9792_s19 + $0x5c4] ss:$16 sps:$4 sm:$0xff]  }
  0x85   : > { %v8743_v41 = vld [vmem:[%s9792_s19 + $0x5cc] ss:$16 sps:$4 sm:$0xff]  }
  0x86   : > { %1228 = vmatpush1.bf16.msra.mxu0 %v8588_v49  ;;  %1334 = vmatpush1.bf16.msra.mxu1 %v8591_v50  ;;  %v363_v49 = vld [vmem:[#allocation2 + $0x70] sm:$0xff] }
  0x87   : > { %1229 = vmatprep.subr.bf16.mxu0 %v8596_v52  ;;  %1335 = vmatprep.subr.bf16.mxu1 %v8599_v53  ;;  %v8668_v50 = vld [vmem:[%s9792_s19 + $0x444] ss:$16 sps:$4 sm:$0xff]   ;;  %v8671_v52 = vld [vmem:[%s9792_s19 + $0x44c] ss:$16 sps:$4 sm:$0xff]   ;;  %v9987_v53 = vpack.c.bf16 %v363_v49, %v359_v48  ;;  %v8744_v48 = vld [vmem:[%s9792_s19 + $0x5e0] ss:$16 sps:$4 sm:$0xff]  }
  0x88   : > { %v8747_v49 = vld [vmem:[%s9792_s19 + $0x5e8] ss:$16 sps:$4 sm:$0xff]  }
  0x8a   : > { %1230 = vmatpush1.bf16.msra.mxu0 %v8594_v54  ;;  %1336 = vmatpush1.bf16.msra.mxu1 %v8597_v55  ;;  %v8666_v54 = vld [vmem:[%s9792_s19 + $0x440] ss:$16 sps:$4 sm:$0xff]   ;;  %v8669_v55 = vld [vmem:[%s9792_s19 + $0x448] ss:$16 sps:$4 sm:$0xff]  }
  0x8b   : > { %1231 = vmatprep.subr.bf16.mxu0 %v8602_v56  ;;  %1337 = vmatprep.subr.bf16.mxu1 %v8605_v59  ;;  %v8674_v56 = vld [vmem:[%s9792_s19 + $0x464] ss:$16 sps:$4 sm:$0xff]   ;;  %v8675_v59 = vld [vmem:[%s9792_s19 + $0x468] ss:$16 sps:$4 sm:$0xff]  }
  0x8e   : > { %1232 = vmatpush1.bf16.msra.mxu0 %v8600_v61  ;;  %1338 = vmatpush1.bf16.msra.mxu1 %v8603_v62  ;;  %v8680_v61 = vld [vmem:[%s9792_s19 + $0x484] ss:$16 sps:$4 sm:$0xff]   ;;  %v8683_v62 = vld [vmem:[%s9792_s19 + $0x48c] ss:$16 sps:$4 sm:$0xff]  }
  0x8f   : > { %1233 = vmatprep.subr.bf16.mxu0 %v8608_v63  ;;  %1339 = vmatprep.subr.bf16.mxu1 %v8611_v0  ;;  %v8678_v63 = vld [vmem:[%s9792_s19 + $0x480] ss:$16 sps:$4 sm:$0xff]   ;;  %v8681_v0 = vld [vmem:[%s9792_s19 + $0x488] ss:$16 sps:$4 sm:$0xff]  }
  0x92   : > { %1234 = vmatpush1.bf16.msra.mxu0 %v8606_v1  ;;  %1340 = vmatpush1.bf16.msra.mxu1 %v8609_v3  ;;  %v8686_v1 = vld [vmem:[%s9792_s19 + $0x4a4] ss:$16 sps:$4 sm:$0xff]   ;;  %v8689_v3 = vld [vmem:[%s9792_s19 + $0x4ac] ss:$16 sps:$4 sm:$0xff]  }
  0x93   : > { %1235 = vmatprep.subr.bf16.mxu0 %v8614_v4  ;;  %1341 = vmatprep.subr.bf16.mxu1 %v8617_v5  ;;  %v8684_v4 = vld [vmem:[%s9792_s19 + $0x4a0] ss:$16 sps:$4 sm:$0xff]   ;;  %v8687_v5 = vld [vmem:[%s9792_s19 + $0x4a8] ss:$16 sps:$4 sm:$0xff]  }
  0x96   : > { %1236 = vmatpush1.bf16.msra.mxu0 %v8612_v6  ;;  %1342 = vmatpush1.bf16.msra.mxu1 %v8615_v7  ;;  %v8692_v6 = vld [vmem:[%s9792_s19 + $0x4c4] ss:$16 sps:$4 sm:$0xff]   ;;  %v8695_v7 = vld [vmem:[%s9792_s19 + $0x4cc] ss:$16 sps:$4 sm:$0xff]  }
  0x97   : > { %1237 = vmatprep.subr.bf16.mxu0 %v8620_v8  ;;  %1343 = vmatprep.subr.bf16.mxu1 %v8623_v9  ;;  %v8690_v8 = vld [vmem:[%s9792_s19 + $0x4c0] ss:$16 sps:$4 sm:$0xff]   ;;  %v8693_v9 = vld [vmem:[%s9792_s19 + $0x4c8] ss:$16 sps:$4 sm:$0xff]  }
  0x9a   : > { %1238 = vmatpush1.bf16.msra.mxu0 %v8618_v10  ;;  %1344 = vmatpush1.bf16.msra.mxu1 %v8621_v11  ;;  %v8698_v10 = vld [vmem:[%s9792_s19 + $0x4e4] ss:$16 sps:$4 sm:$0xff]   ;;  %v8701_v11 = vld [vmem:[%s9792_s19 + $0x4ec] ss:$16 sps:$4 sm:$0xff]  }
  0x9b   : > { %1239 = vmatprep.subr.bf16.mxu0 %v8626_v12  ;;  %1345 = vmatprep.subr.bf16.mxu1 %v8629_v13  ;;  %v8696_v12 = vld [vmem:[%s9792_s19 + $0x4e0] ss:$16 sps:$4 sm:$0xff]   ;;  %v8699_v13 = vld [vmem:[%s9792_s19 + $0x4e8] ss:$16 sps:$4 sm:$0xff]  }
  0x9e   : > { %1240 = vmatpush1.bf16.msra.mxu0 %v8624_v14  ;;  %1346 = vmatpush1.bf16.msra.mxu1 %v8627_v15  ;;  %v8704_v14 = vld [vmem:[%s9792_s19 + $0x504] ss:$16 sps:$4 sm:$0xff]   ;;  %v8707_v15 = vld [vmem:[%s9792_s19 + $0x50c] ss:$16 sps:$4 sm:$0xff]  }
  0x9f   : > { %1241 = vmatprep.subr.bf16.mxu0 %v8632_v16  ;;  %1347 = vmatprep.subr.bf16.mxu1 %v8635_v17  ;;  %v8702_v16 = vld [vmem:[%s9792_s19 + $0x500] ss:$16 sps:$4 sm:$0xff]   ;;  %v8705_v17 = vld [vmem:[%s9792_s19 + $0x508] ss:$16 sps:$4 sm:$0xff]  }
  0xa2   : > { %1242 = vmatpush1.bf16.msra.mxu0 %v8630_v18  ;;  %1348 = vmatpush1.bf16.msra.mxu1 %v8633_v19  ;;  %v8710_v18 = vld [vmem:[%s9792_s19 + $0x524] ss:$16 sps:$4 sm:$0xff]   ;;  %v8713_v19 = vld [vmem:[%s9792_s19 + $0x52c] ss:$16 sps:$4 sm:$0xff]  }
  0xa3   : > { %1243 = vmatprep.subr.bf16.mxu0 %v8638_v20  ;;  %1349 = vmatprep.subr.bf16.mxu1 %v8641_v21  ;;  %v8708_v20 = vld [vmem:[%s9792_s19 + $0x520] ss:$16 sps:$4 sm:$0xff]   ;;  %v8711_v21 = vld [vmem:[%s9792_s19 + $0x528] ss:$16 sps:$4 sm:$0xff]  }
  0xa6   : > { %1244 = vmatpush1.bf16.msra.mxu0 %v8636_v22  ;;  %1350 = vmatpush1.bf16.msra.mxu1 %v8639_v23  ;;  %v8716_v22 = vld [vmem:[%s9792_s19 + $0x544] ss:$16 sps:$4 sm:$0xff]   ;;  %v8719_v23 = vld [vmem:[%s9792_s19 + $0x54c] ss:$16 sps:$4 sm:$0xff]  }
  0xa7   : > { %1245 = vmatprep.subr.bf16.mxu0 %v8644_v24  ;;  %1351 = vmatprep.subr.bf16.mxu1 %v8647_v26  ;;  %v8714_v24 = vld [vmem:[%s9792_s19 + $0x540] ss:$16 sps:$4 sm:$0xff]   ;;  %v8717_v26 = vld [vmem:[%s9792_s19 + $0x548] ss:$16 sps:$4 sm:$0xff]  }
  0xaa   : > { %1246 = vmatpush1.bf16.msra.mxu0 %v8642_v27  ;;  %1352 = vmatpush1.bf16.msra.mxu1 %v8645_v28  ;;  %v8722_v27 = vld [vmem:[%s9792_s19 + $0x564] ss:$16 sps:$4 sm:$0xff]   ;;  %v8725_v28 = vld [vmem:[%s9792_s19 + $0x56c] ss:$16 sps:$4 sm:$0xff]  }
  0xab   : > { %1247 = vmatprep.subr.bf16.mxu0 %v8650_v29  ;;  %1353 = vmatprep.subr.bf16.mxu1 %v8653_v30  ;;  %v8720_v29 = vld [vmem:[%s9792_s19 + $0x560] ss:$16 sps:$4 sm:$0xff]   ;;  %v8723_v30 = vld [vmem:[%s9792_s19 + $0x568] ss:$16 sps:$4 sm:$0xff]  }
  0xae   : > { %1248 = vmatpush1.bf16.msra.mxu0 %v8648_v31  ;;  %1354 = vmatpush1.bf16.msra.mxu1 %v8651_v32  ;;  %v8728_v31 = vld [vmem:[%s9792_s19 + $0x584] ss:$16 sps:$4 sm:$0xff]   ;;  %v8731_v32 = vld [vmem:[%s9792_s19 + $0x58c] ss:$16 sps:$4 sm:$0xff]  }
  0xaf   : > { %2226 = vmatprep.subr.bf16.mxu0 %v8656_v35  ;;  %2332 = vmatprep.subr.bf16.mxu1 %v8659_v36  ;;  %v8734_v35 = vld [vmem:[%s9792_s19 + $0x5a4] ss:$16 sps:$4 sm:$0xff]   ;;  %v8737_v36 = vld [vmem:[%s9792_s19 + $0x5ac] ss:$16 sps:$4 sm:$0xff]  }
  0xb1   : > { %1250 = vmatmul.mubr.bf16.vlgmr.msra.gmra.mrb[0].mxu0 %v9973_v39  ;;  %1356 = vmatmul.mubr.bf16.vlgmr.msra.gmra.mrb[0].mxu1 %v9973_v39 }
  0xb2   : > { %2227 = vmatpush1.bf16.msra.mxu0 %v8654_v37  ;;  %2333 = vmatpush1.bf16.msra.mxu1 %v8657_v38  ;;  %v8732_v37 = vld [vmem:[%s9792_s19 + $0x5a0] ss:$16 sps:$4 sm:$0xff]   ;;  %v8735_v38 = vld [vmem:[%s9792_s19 + $0x5a8] ss:$16 sps:$4 sm:$0xff]  }
  0xb3   : > { %2228 = vmatprep.subr.bf16.mxu0 %v8662_v42  ;;  %2334 = vmatprep.subr.bf16.mxu1 %v8665_v43  ;;  %v8738_v42 = vld [vmem:[%s9792_s19 + $0x5c0] ss:$16 sps:$4 sm:$0xff]   ;;  %v8741_v43 = vld [vmem:[%s9792_s19 + $0x5c8] ss:$16 sps:$4 sm:$0xff]  }
  0xb4   : > { %1259 = vmatprep.mubr.bf16.mxu0 %v9979_v47  ;;  %1365 = vmatprep.mubr.bf16.mxu1 %v9979_v47 }
  0xb6   : > { %2229 = vmatpush1.bf16.msra.mxu0 %v8660_v44  ;;  %2335 = vmatpush1.bf16.msra.mxu1 %v8663_v45  ;;  %v8746_v44 = vld [vmem:[%s9792_s19 + $0x5e4] ss:$16 sps:$4 sm:$0xff]   ;;  %v8749_v45 = vld [vmem:[%s9792_s19 + $0x5ec] ss:$16 sps:$4 sm:$0xff]  }
  0xb7   : > { %2230 = vmatprep.subr.bf16.mxu0 %v8668_v50  ;;  %2336 = vmatprep.subr.bf16.mxu1 %v8671_v52  ;;  %v8752_v50 = vld [vmem:[%s9792_s19 + $0x604] ss:$16 sps:$4 sm:$0xff]   ;;  %v8755_v52 = vld [vmem:[%s9792_s19 + $0x60c] ss:$16 sps:$4 sm:$0xff]  }
  0xb9   : > { %1260 = vmatmul.mubr.bf16.gmra.mrb[4].mxu0 %v9987_v53  ;;  %1366 = vmatmul.mubr.bf16.gmra.mrb[4].mxu1 %v9987_v53 }
  0xba   : > { %2231 = vmatpush1.bf16.msra.mxu0 %v8666_v54  ;;  %2337 = vmatpush1.bf16.msra.mxu1 %v8669_v55  ;;  %v8750_v54 = vld [vmem:[%s9792_s19 + $0x600] ss:$16 sps:$4 sm:$0xff]   ;;  %v8753_v55 = vld [vmem:[%s9792_s19 + $0x608] ss:$16 sps:$4 sm:$0xff]  }
  0xbb   : > { %2232 = vmatprep.subr.bf16.mxu0 %v8674_v56  ;;  %2338 = vmatprep.subr.bf16.mxu1 %v8677_v57  ;;  %v8758_v56 = vld [vmem:[%s9792_s19 + $0x624] ss:$16 sps:$4 sm:$0xff]   ;;  %v8761_v57 = vld [vmem:[%s9792_s19 + $0x62c] ss:$16 sps:$4 sm:$0xff]  }
  0xbc   : > { %2258 = vmatprep.mubr.bf16.mxu0 %v9869_v2  ;;  %2364 = vmatprep.mubr.bf16.mxu1 %v9869_v2 }
  0xbe   : > { %2233 = vmatpush1.bf16.msra.mxu0 %v8672_v58  ;;  %2339 = vmatpush1.bf16.msra.mxu1 %v8675_v59  ;;  %v8756_v58 = vld [vmem:[%s9792_s19 + $0x620] ss:$16 sps:$4 sm:$0xff]   ;;  %v8759_v59 = vld [vmem:[%s9792_s19 + $0x628] ss:$16 sps:$4 sm:$0xff]  }
  0xbf   : > { %2234 = vmatprep.subr.bf16.mxu0 %v8680_v61  ;;  %2340 = vmatprep.subr.bf16.mxu1 %v8683_v62  ;;  %v8764_v61 = vld [vmem:[%s9792_s19 + $0x644] ss:$16 sps:$4 sm:$0xff]   ;;  %v8767_v62 = vld [vmem:[%s9792_s19 + $0x64c] ss:$16 sps:$4 sm:$0xff]  }
  0xc2   : > { %2235 = vmatpush1.bf16.msra.mxu0 %v8678_v63  ;;  %2341 = vmatpush1.bf16.msra.mxu1 %v8681_v0  ;;  %v8762_v63 = vld [vmem:[%s9792_s19 + $0x640] ss:$16 sps:$4 sm:$0xff]   ;;  %v8765_v0 = vld [vmem:[%s9792_s19 + $0x648] ss:$16 sps:$4 sm:$0xff]  }
  0xc3   : > { %2236 = vmatprep.subr.bf16.mxu0 %v8686_v1  ;;  %2342 = vmatprep.subr.bf16.mxu1 %v8689_v3  ;;  %v8770_v1 = vld [vmem:[%s9792_s19 + $0x664] ss:$16 sps:$4 sm:$0xff]   ;;  %v8773_v3 = vld [vmem:[%s9792_s19 + $0x66c] ss:$16 sps:$4 sm:$0xff]  }
  0xc6   : > { %2237 = vmatpush1.bf16.msra.mxu0 %v8684_v4  ;;  %2343 = vmatpush1.bf16.msra.mxu1 %v8687_v5  ;;  %v8768_v4 = vld [vmem:[%s9792_s19 + $0x660] ss:$16 sps:$4 sm:$0xff]   ;;  %v8771_v5 = vld [vmem:[%s9792_s19 + $0x668] ss:$16 sps:$4 sm:$0xff]  }
  0xc7   : > { %2238 = vmatprep.subr.bf16.mxu0 %v8692_v6  ;;  %2344 = vmatprep.subr.bf16.mxu1 %v8695_v7  ;;  %v8776_v6 = vld [vmem:[%s9792_s19 + $0x684] ss:$16 sps:$4 sm:$0xff]   ;;  %v8779_v7 = vld [vmem:[%s9792_s19 + $0x68c] ss:$16 sps:$4 sm:$0xff]  }
  0xca   : > { %2239 = vmatpush1.bf16.msra.mxu0 %v8690_v8  ;;  %2345 = vmatpush1.bf16.msra.mxu1 %v8693_v9  ;;  %v8774_v8 = vld [vmem:[%s9792_s19 + $0x680] ss:$16 sps:$4 sm:$0xff]   ;;  %v8777_v9 = vld [vmem:[%s9792_s19 + $0x688] ss:$16 sps:$4 sm:$0xff]  }
  0xcb   : > { %2240 = vmatprep.subr.bf16.mxu0 %v8698_v10  ;;  %2346 = vmatprep.subr.bf16.mxu1 %v8701_v11  ;;  %v8782_v10 = vld [vmem:[%s9792_s19 + $0x6a4] ss:$16 sps:$4 sm:$0xff]   ;;  %v8785_v11 = vld [vmem:[%s9792_s19 + $0x6ac] ss:$16 sps:$4 sm:$0xff]  }
  0xce   : > { %2241 = vmatpush1.bf16.msra.mxu0 %v8696_v12  ;;  %2347 = vmatpush1.bf16.msra.mxu1 %v8699_v13  ;;  %v8780_v12 = vld [vmem:[%s9792_s19 + $0x6a0] ss:$16 sps:$4 sm:$0xff]   ;;  %v8783_v13 = vld [vmem:[%s9792_s19 + $0x6a8] ss:$16 sps:$4 sm:$0xff]  }
  0xcf   : > { %2242 = vmatprep.subr.bf16.mxu0 %v8704_v14  ;;  %2348 = vmatprep.subr.bf16.mxu1 %v8707_v15  ;;  %v8788_v14 = vld [vmem:[%s9792_s19 + $0x6c4] ss:$16 sps:$4 sm:$0xff]   ;;  %v8791_v15 = vld [vmem:[%s9792_s19 + $0x6cc] ss:$16 sps:$4 sm:$0xff]  }
  0xd2   : > { %2243 = vmatpush1.bf16.msra.mxu0 %v8702_v16  ;;  %2349 = vmatpush1.bf16.msra.mxu1 %v8705_v17  ;;  %v8786_v16 = vld [vmem:[%s9792_s19 + $0x6c0] ss:$16 sps:$4 sm:$0xff]   ;;  %v8789_v17 = vld [vmem:[%s9792_s19 + $0x6c8] ss:$16 sps:$4 sm:$0xff]  }
  0xd3   : > { %2244 = vmatprep.subr.bf16.mxu0 %v8710_v18  ;;  %2350 = vmatprep.subr.bf16.mxu1 %v8713_v19  ;;  %v8794_v18 = vld [vmem:[%s9792_s19 + $0x6e4] ss:$16 sps:$4 sm:$0xff]   ;;  %v8797_v19 = vld [vmem:[%s9792_s19 + $0x6ec] ss:$16 sps:$4 sm:$0xff]  }
  0xd6   : > { %2245 = vmatpush1.bf16.msra.mxu0 %v8708_v20  ;;  %2351 = vmatpush1.bf16.msra.mxu1 %v8711_v21  ;;  %v8792_v20 = vld [vmem:[%s9792_s19 + $0x6e0] ss:$16 sps:$4 sm:$0xff]   ;;  %v8795_v21 = vld [vmem:[%s9792_s19 + $0x6e8] ss:$16 sps:$4 sm:$0xff]  }
  0xd7   : > { %2246 = vmatprep.subr.bf16.mxu0 %v8716_v22  ;;  %2352 = vmatprep.subr.bf16.mxu1 %v8719_v23  ;;  %v8800_v22 = vld [vmem:[%s9792_s19 + $0x704] ss:$16 sps:$4 sm:$0xff]   ;;  %v8803_v23 = vld [vmem:[%s9792_s19 + $0x70c] ss:$16 sps:$4 sm:$0xff]  }
  0xda   : > { %2247 = vmatpush1.bf16.msra.mxu0 %v8714_v24  ;;  %2353 = vmatpush1.bf16.msra.mxu1 %v8717_v26  ;;  %v8798_v24 = vld [vmem:[%s9792_s19 + $0x700] ss:$16 sps:$4 sm:$0xff]   ;;  %v8801_v26 = vld [vmem:[%s9792_s19 + $0x708] ss:$16 sps:$4 sm:$0xff]  }
  0xdb   : > { %2248 = vmatprep.subr.bf16.mxu0 %v8722_v27  ;;  %2354 = vmatprep.subr.bf16.mxu1 %v8725_v28  ;;  %v8806_v27 = vld [vmem:[%s9792_s19 + $0x724] ss:$16 sps:$4 sm:$0xff]   ;;  %v8809_v28 = vld [vmem:[%s9792_s19 + $0x72c] ss:$16 sps:$4 sm:$0xff]  }
  0xde   : > { %2249 = vmatpush1.bf16.msra.mxu0 %v8720_v29  ;;  %2355 = vmatpush1.bf16.msra.mxu1 %v8723_v30  ;;  %v8804_v29 = vld [vmem:[%s9792_s19 + $0x720] ss:$16 sps:$4 sm:$0xff]   ;;  %v8807_v30 = vld [vmem:[%s9792_s19 + $0x728] ss:$16 sps:$4 sm:$0xff]  }
  0xdf   : > { %2250 = vmatprep.subr.bf16.mxu0 %v8728_v31  ;;  %2356 = vmatprep.subr.bf16.mxu1 %v8731_v32  ;;  %v8812_v31 = vld [vmem:[%s9792_s19 + $0x744] ss:$16 sps:$4 sm:$0xff]   ;;  %v8815_v32 = vld [vmem:[%s9792_s19 + $0x74c] ss:$16 sps:$4 sm:$0xff]  }
  0xe2   : > { %2251 = vmatpush1.bf16.msra.mxu0 %v8726_v33  ;;  %2357 = vmatpush1.bf16.msra.mxu1 %v8729_v34  ;;  %v8810_v33 = vld [vmem:[%s9792_s19 + $0x740] ss:$16 sps:$4 sm:$0xff]   ;;  %v8813_v34 = vld [vmem:[%s9792_s19 + $0x748] ss:$16 sps:$4 sm:$0xff]  }
  0xe3   : > { %2252 = vmatprep.subr.bf16.mxu0 %v8734_v35  ;;  %2358 = vmatprep.subr.bf16.mxu1 %v8737_v36  ;;  %v8818_v35 = vld [vmem:[%s9792_s19 + $0x764] ss:$16 sps:$4 sm:$0xff]   ;;  %v8821_v36 = vld [vmem:[%s9792_s19 + $0x76c] ss:$16 sps:$4 sm:$0xff]  }
  0xe6   : > { %2253 = vmatpush1.bf16.msra.mxu0 %v8732_v37  ;;  %2359 = vmatpush1.bf16.msra.mxu1 %v8735_v38  ;;  %v8816_v37 = vld [vmem:[%s9792_s19 + $0x760] ss:$16 sps:$4 sm:$0xff]   ;;  %v8819_v38 = vld [vmem:[%s9792_s19 + $0x768] ss:$16 sps:$4 sm:$0xff]  }
  0xe7   : > { %2254 = vmatprep.subr.bf16.mxu0 %v8740_v40  ;;  %2360 = vmatprep.subr.bf16.mxu1 %v8743_v41  ;;  %v8824_v40 = vld [vmem:[%s9792_s19 + $0x784] ss:$16 sps:$4 sm:$0xff]   ;;  %v8827_v41 = vld [vmem:[%s9792_s19 + $0x78c] ss:$16 sps:$4 sm:$0xff]  }
  0xea   : > { %2255 = vmatpush1.bf16.msra.mxu0 %v8738_v42  ;;  %2361 = vmatpush1.bf16.msra.mxu1 %v8741_v43  ;;  %v8822_v42 = vld [vmem:[%s9792_s19 + $0x780] ss:$16 sps:$4 sm:$0xff]   ;;  %v8825_v43 = vld [vmem:[%s9792_s19 + $0x788] ss:$16 sps:$4 sm:$0xff]  }
  0xeb   : > { %2256 = vmatprep.subr.bf16.mxu0 %v8746_v44  ;;  %2362 = vmatprep.subr.bf16.mxu1 %v8749_v45  ;;  %v8830_v44 = vld [vmem:[%s9792_s19 + $0x7a4] ss:$16 sps:$4 sm:$0xff]   ;;  %v8833_v45 = vld [vmem:[%s9792_s19 + $0x7ac] ss:$16 sps:$4 sm:$0xff]  }
  0xee   : > { %2257 = vmatpush1.bf16.msra.mxu0 %v8744_v48  ;;  %2363 = vmatpush1.bf16.msra.mxu1 %v8747_v49  ;;  %v8828_v48 = vld [vmem:[%s9792_s19 + $0x7a0] ss:$16 sps:$4 sm:$0xff]   ;;  %v8831_v49 = vld [vmem:[%s9792_s19 + $0x7a8] ss:$16 sps:$4 sm:$0xff]  }
  0xef   : > { %2279 = vmatprep.subr.bf16.mxu0 %v8752_v50  ;;  %2385 = vmatprep.subr.bf16.mxu1 %v8755_v52  ;;  %v8836_v50 = vld [vmem:[%s9792_s19 + $0x7c4] ss:$16 sps:$4 sm:$0xff]   ;;  %v8839_v52 = vld [vmem:[%s9792_s19 + $0x7cc] ss:$16 sps:$4 sm:$0xff]  }
  0xf1   : > { %2259 = vmatmul.mubr.bf16.vlgmr.msra.gmra.mrb[8].mxu0 %v9893_v25  ;;  %2365 = vmatmul.mubr.bf16.vlgmr.msra.gmra.mrb[8].mxu1 %v9893_v25 }
  0xf2   : > { %2280 = vmatpush1.bf16.msra.mxu0 %v8750_v54  ;;  %2386 = vmatpush1.bf16.msra.mxu1 %v8753_v55  ;;  %v8834_v54 = vld [vmem:[%s9792_s19 + $0x7c0] ss:$16 sps:$4 sm:$0xff]   ;;  %v8837_v55 = vld [vmem:[%s9792_s19 + $0x7c8] ss:$16 sps:$4 sm:$0xff]  }
  0xf3   : > { %2281 = vmatprep.subr.bf16.mxu0 %v8758_v56  ;;  %2387 = vmatprep.subr.bf16.mxu1 %v8761_v57  ;;  %v8842_v56 = vld [vmem:[%s9792_s19 + $0x7e4] ss:$16 sps:$4 sm:$0xff]   ;;  %v8845_v57 = vld [vmem:[%s9792_s19 + $0x7ec] ss:$16 sps:$4 sm:$0xff]  }
  0xf4   : > { %2268 = vmatprep.mubr.bf16.mxu0 %v9915_v46  ;;  %2374 = vmatprep.mubr.bf16.mxu1 %v9915_v46 }
  0xf6   : > { %2282 = vmatpush1.bf16.msra.mxu0 %v8756_v58  ;;  %2388 = vmatpush1.bf16.msra.mxu1 %v8759_v59  ;;  %v8840_v58 = vld [vmem:[%s9792_s19 + $0x7e0] ss:$16 sps:$4 sm:$0xff]   ;;  %v8843_v59 = vld [vmem:[%s9792_s19 + $0x7e8] ss:$16 sps:$4 sm:$0xff]  }
  0xf7   : > { %2283 = vmatprep.subr.bf16.mxu0 %v8764_v61  ;;  %2389 = vmatprep.subr.bf16.mxu1 %v8767_v62  ;;  %v8848_v61 = vld [vmem:[%s9792_s19 + $0x804] ss:$16 sps:$4 sm:$0xff]   ;;  %v8851_v62 = vld [vmem:[%s9792_s19 + $0x80c] ss:$16 sps:$4 sm:$0xff]  }
  0xf9   : > { %2269 = vmatmul.mubr.bf16.gmra.mrb[12].mxu0 %v9919_v51  ;;  %2375 = vmatmul.mubr.bf16.gmra.mrb[12].mxu1 %v9919_v51 }
  0xfa   : > { %2284 = vmatpush1.bf16.msra.mxu0 %v8762_v63  ;;  %2390 = vmatpush1.bf16.msra.mxu1 %v8765_v0  ;;  %v8846_v63 = vld [vmem:[%s9792_s19 + $0x800] ss:$16 sps:$4 sm:$0xff]   ;;  %v8849_v0 = vld [vmem:[%s9792_s19 + $0x808] ss:$16 sps:$4 sm:$0xff]  }
  0xfb   : > { %2285 = vmatprep.subr.bf16.mxu0 %v8770_v1  ;;  %2391 = vmatprep.subr.bf16.mxu1 %v8773_v3  ;;  %v8854_v1 = vld [vmem:[%s9792_s19 + $0x824] ss:$16 sps:$4 sm:$0xff]   ;;  %v8857_v3 = vld [vmem:[%s9792_s19 + $0x82c] ss:$16 sps:$4 sm:$0xff]  }
  0xfc   : > { %2311 = vmatprep.mubr.bf16.mxu0 %v9931_v60  ;;  %2417 = vmatprep.mubr.bf16.mxu1 %v9931_v60 }
  0xfe   : > { %2286 = vmatpush1.bf16.msra.mxu0 %v8768_v4  ;;  %2392 = vmatpush1.bf16.msra.mxu1 %v8771_v5  ;;  %v8852_v4 = vld [vmem:[%s9792_s19 + $0x820] ss:$16 sps:$4 sm:$0xff]   ;;  %v8855_v5 = vld [vmem:[%s9792_s19 + $0x828] ss:$16 sps:$4 sm:$0xff]  }
  0xff   : > { %2287 = vmatprep.subr.bf16.mxu0 %v8776_v6  ;;  %2393 = vmatprep.subr.bf16.mxu1 %v8779_v7  ;;  %v8860_v6 = vld [vmem:[%s9792_s19 + $0x844] ss:$16 sps:$4 sm:$0xff]   ;;  %v8863_v7 = vld [vmem:[%s9792_s19 + $0x84c] ss:$16 sps:$4 sm:$0xff]  }
 0x102   : > { %2288 = vmatpush1.bf16.msra.mxu0 %v8774_v8  ;;  %2394 = vmatpush1.bf16.msra.mxu1 %v8777_v9  ;;  %v8858_v8 = vld [vmem:[%s9792_s19 + $0x840] ss:$16 sps:$4 sm:$0xff]   ;;  %v8861_v9 = vld [vmem:[%s9792_s19 + $0x848] ss:$16 sps:$4 sm:$0xff]  }
 0x103   : > { %2289 = vmatprep.subr.bf16.mxu0 %v8782_v10  ;;  %2395 = vmatprep.subr.bf16.mxu1 %v8785_v11  ;;  %v8866_v10 = vld [vmem:[%s9792_s19 + $0x864] ss:$16 sps:$4 sm:$0xff]   ;;  %v8869_v11 = vld [vmem:[%s9792_s19 + $0x86c] ss:$16 sps:$4 sm:$0xff]  }
 0x106   : > { %2290 = vmatpush1.bf16.msra.mxu0 %v8780_v12  ;;  %2396 = vmatpush1.bf16.msra.mxu1 %v8783_v13  ;;  %v8864_v12 = vld [vmem:[%s9792_s19 + $0x860] ss:$16 sps:$4 sm:$0xff]   ;;  %v8867_v13 = vld [vmem:[%s9792_s19 + $0x868] ss:$16 sps:$4 sm:$0xff]  }
 0x107   : > { %2291 = vmatprep.subr.bf16.mxu0 %v8788_v14  ;;  %2397 = vmatprep.subr.bf16.mxu1 %v8791_v15  ;;  %v8872_v14 = vld [vmem:[%s9792_s19 + $0x884] ss:$16 sps:$4 sm:$0xff]   ;;  %v8875_v15 = vld [vmem:[%s9792_s19 + $0x88c] ss:$16 sps:$4 sm:$0xff]  }
 0x10a   : > { %2292 = vmatpush1.bf16.msra.mxu0 %v8786_v16  ;;  %2398 = vmatpush1.bf16.msra.mxu1 %v8789_v17  ;;  %v8870_v16 = vld [vmem:[%s9792_s19 + $0x880] ss:$16 sps:$4 sm:$0xff]   ;;  %v8873_v17 = vld [vmem:[%s9792_s19 + $0x888] ss:$16 sps:$4 sm:$0xff]  }
 0x10b   : > { %2293 = vmatprep.subr.bf16.mxu0 %v8794_v18  ;;  %2399 = vmatprep.subr.bf16.mxu1 %v8797_v19  ;;  %v8878_v18 = vld [vmem:[%s9792_s19 + $0x8a4] ss:$16 sps:$4 sm:$0xff]   ;;  %v8881_v19 = vld [vmem:[%s9792_s19 + $0x8ac] ss:$16 sps:$4 sm:$0xff]  }
 0x10e   : > { %2294 = vmatpush1.bf16.msra.mxu0 %v8792_v20  ;;  %2400 = vmatpush1.bf16.msra.mxu1 %v8795_v21  ;;  %v8876_v20 = vld [vmem:[%s9792_s19 + $0x8a0] ss:$16 sps:$4 sm:$0xff]   ;;  %v8879_v21 = vld [vmem:[%s9792_s19 + $0x8a8] ss:$16 sps:$4 sm:$0xff]  }
 0x10f   : > { %2295 = vmatprep.subr.bf16.mxu0 %v8800_v22  ;;  %2401 = vmatprep.subr.bf16.mxu1 %v8803_v23  ;;  %v8884_v22 = vld [vmem:[%s9792_s19 + $0x8c4] ss:$16 sps:$4 sm:$0xff]   ;;  %v8887_v23 = vld [vmem:[%s9792_s19 + $0x8cc] ss:$16 sps:$4 sm:$0xff]  }
 0x112   : > { %2296 = vmatpush1.bf16.msra.mxu0 %v8798_v24  ;;  %2402 = vmatpush1.bf16.msra.mxu1 %v8801_v26  ;;  %v8885_v24 = vld [vmem:[%s9792_s19 + $0x8c8] ss:$16 sps:$4 sm:$0xff]   ;;  %v8890_v26 = vld [vmem:[%s9792_s19 + $0x8e4] ss:$16 sps:$4 sm:$0xff]  }
 0x113   : > { %2297 = vmatprep.subr.bf16.mxu0 %v8806_v27  ;;  %2403 = vmatprep.subr.bf16.mxu1 %v8809_v28  ;;  %v8893_v27 = vld [vmem:[%s9792_s19 + $0x8ec] ss:$16 sps:$4 sm:$0xff]   ;;  %v8888_v28 = vld [vmem:[%s9792_s19 + $0x8e0] ss:$16 sps:$4 sm:$0xff]  }
 0x116   : > { %2298 = vmatpush1.bf16.msra.mxu0 %v8804_v29  ;;  %2404 = vmatpush1.bf16.msra.mxu1 %v8807_v30  ;;  %v8891_v29 = vld [vmem:[%s9792_s19 + $0x8e8] ss:$16 sps:$4 sm:$0xff]   ;;  %v8896_v30 = vld [vmem:[%s9792_s19 + $0x904] ss:$16 sps:$4 sm:$0xff]  }
 0x117   : > { %2299 = vmatprep.subr.bf16.mxu0 %v8812_v31  ;;  %2405 = vmatprep.subr.bf16.mxu1 %v8815_v32  ;;  %v8899_v31 = vld [vmem:[%s9792_s19 + $0x90c] ss:$16 sps:$4 sm:$0xff]   ;;  %v8894_v32 = vld [vmem:[%s9792_s19 + $0x900] ss:$16 sps:$4 sm:$0xff]  }
 0x11a   : > { %2300 = vmatpush1.bf16.msra.mxu0 %v8810_v33  ;;  %2406 = vmatpush1.bf16.msra.mxu1 %v8813_v34  ;;  %v8897_v33 = vld [vmem:[%s9792_s19 + $0x908] ss:$16 sps:$4 sm:$0xff]   ;;  %v8902_v34 = vld [vmem:[%s9792_s19 + $0x924] ss:$16 sps:$4 sm:$0xff]  }
 0x11b   : > { %2301 = vmatprep.subr.bf16.mxu0 %v8818_v35  ;;  %2407 = vmatprep.subr.bf16.mxu1 %v8821_v36  ;;  %v8905_v35 = vld [vmem:[%s9792_s19 + $0x92c] ss:$16 sps:$4 sm:$0xff]   ;;  %v8900_v36 = vld [vmem:[%s9792_s19 + $0x920] ss:$16 sps:$4 sm:$0xff]  }
 0x11e   : > { %2302 = vmatpush1.bf16.msra.mxu0 %v8816_v37  ;;  %2408 = vmatpush1.bf16.msra.mxu1 %v8819_v38  ;;  %v8903_v37 = vld [vmem:[%s9792_s19 + $0x928] ss:$16 sps:$4 sm:$0xff]   ;;  %v8908_v38 = vld [vmem:[%s9792_s19 + $0x944] ss:$16 sps:$4 sm:$0xff]  }
 0x11f   : > { %2303 = vmatprep.subr.bf16.mxu0 %v8824_v40  ;;  %2409 = vmatprep.subr.bf16.mxu1 %v8827_v41  ;;  %v8911_v40 = vld [vmem:[%s9792_s19 + $0x94c] ss:$16 sps:$4 sm:$0xff]   ;;  %v8906_v41 = vld [vmem:[%s9792_s19 + $0x940] ss:$16 sps:$4 sm:$0xff]  }
 0x122   : > { %2304 = vmatpush1.bf16.msra.mxu0 %v8822_v42  ;;  %2410 = vmatpush1.bf16.msra.mxu1 %v8825_v43  ;;  %v8909_v42 = vld [vmem:[%s9792_s19 + $0x948] ss:$16 sps:$4 sm:$0xff]   ;;  %v8914_v43 = vld [vmem:[%s9792_s19 + $0x964] ss:$16 sps:$4 sm:$0xff]  }
 0x123   : > { %2305 = vmatprep.subr.bf16.mxu0 %v8830_v44  ;;  %2411 = vmatprep.subr.bf16.mxu1 %v8833_v45  ;;  %v8917_v44 = vld [vmem:[%s9792_s19 + $0x96c] ss:$16 sps:$4 sm:$0xff]   ;;  %v8912_v45 = vld [vmem:[%s9792_s19 + $0x960] ss:$16 sps:$4 sm:$0xff]  }
 0x126   : > { %2306 = vmatpush1.bf16.msra.mxu0 %v8828_v48  ;;  %2412 = vmatpush1.bf16.msra.mxu1 %v8831_v49  ;;  %v8915_v48 = vld [vmem:[%s9792_s19 + $0x968] ss:$16 sps:$4 sm:$0xff]   ;;  %v8920_v49 = vld [vmem:[%s9792_s19 + $0x984] ss:$16 sps:$4 sm:$0xff]  }
 0x127   : > { %2307 = vmatprep.subr.bf16.mxu0 %v8836_v50  ;;  %2413 = vmatprep.subr.bf16.mxu1 %v8839_v52  ;;  %v8923_v50 = vld [vmem:[%s9792_s19 + $0x98c] ss:$16 sps:$4 sm:$0xff]   ;;  %v8918_v52 = vld [vmem:[%s9792_s19 + $0x980] ss:$16 sps:$4 sm:$0xff]  }
 0x12a   : > { %2308 = vmatpush1.bf16.msra.mxu0 %v8834_v54  ;;  %2414 = vmatpush1.bf16.msra.mxu1 %v8837_v55  ;;  %v8921_v54 = vld [vmem:[%s9792_s19 + $0x988] ss:$16 sps:$4 sm:$0xff]   ;;  %v8926_v55 = vld [vmem:[%s9792_s19 + $0x9a4] ss:$16 sps:$4 sm:$0xff]  }
 0x12b   : > { %2309 = vmatprep.subr.bf16.mxu0 %v8842_v56  ;;  %2415 = vmatprep.subr.bf16.mxu1 %v8845_v57  ;;  %v8929_v56 = vld [vmem:[%s9792_s19 + $0x9ac] ss:$16 sps:$4 sm:$0xff]   ;;  %v8924_v57 = vld [vmem:[%s9792_s19 + $0x9a0] ss:$16 sps:$4 sm:$0xff]  }
 0x12e   : > { %2310 = vmatpush1.bf16.msra.mxu0 %v8840_v58  ;;  %2416 = vmatpush1.bf16.msra.mxu1 %v8843_v59  ;;  %v8927_v58 = vld [vmem:[%s9792_s19 + $0x9a8] ss:$16 sps:$4 sm:$0xff]   ;;  %v8932_v59 = vld [vmem:[%s9792_s19 + $0x9c4] ss:$16 sps:$4 sm:$0xff]  }
 0x12f   : > { %3223 = vmatprep.subr.bf16.mxu0 %v8848_v61  ;;  %3329 = vmatprep.subr.bf16.mxu1 %v8851_v62  ;;  %v8935_v61 = vld [vmem:[%s9792_s19 + $0x9cc] ss:$16 sps:$4 sm:$0xff]   ;;  %v8930_v62 = vld [vmem:[%s9792_s19 + $0x9c0] ss:$16 sps:$4 sm:$0xff]  }
 0x131   : > { %2312 = vmatmul.mubr.bf16.vlgmr.msra.gmra.mrb[8].mxu0 %v9973_v39  ;;  %2418 = vmatmul.mubr.bf16.vlgmr.msra.gmra.mrb[8].mxu1 %v9973_v39 }
 0x132   : > { %3224 = vmatpush1.bf16.msra.mxu0 %v8846_v63  ;;  %3330 = vmatpush1.bf16.msra.mxu1 %v8849_v0  ;;  %v8933_v63 = vld [vmem:[%s9792_s19 + $0x9c8] ss:$16 sps:$4 sm:$0xff]   ;;  %v8938_v0 = vld [vmem:[%s9792_s19 + $0x9e4] ss:$16 sps:$4 sm:$0xff]  }
 0x133   : > { %3225 = vmatprep.subr.bf16.mxu0 %v8854_v1  ;;  %3331 = vmatprep.subr.bf16.mxu1 %v8857_v3  ;;  %v8941_v1 = vld [vmem:[%s9792_s19 + $0x9ec] ss:$16 sps:$4 sm:$0xff]   ;;  %v8936_v3 = vld [vmem:[%s9792_s19 + $0x9e0] ss:$16 sps:$4 sm:$0xff]  }
 0x134   : > { %2321 = vmatprep.mubr.bf16.mxu0 %v9979_v47  ;;  %2427 = vmatprep.mubr.bf16.mxu1 %v9979_v47 }
 0x136   : > { %3226 = vmatpush1.bf16.msra.mxu0 %v8852_v4  ;;  %3332 = vmatpush1.bf16.msra.mxu1 %v8855_v5  ;;  %v8939_v4 = vld [vmem:[%s9792_s19 + $0x9e8] ss:$16 sps:$4 sm:$0xff]   ;;  %v8944_v5 = vld [vmem:[%s9792_s19 + $0xa04] ss:$16 sps:$4 sm:$0xff]  }
 0x137   : > { %3227 = vmatprep.subr.bf16.mxu0 %v8860_v6  ;;  %3333 = vmatprep.subr.bf16.mxu1 %v8863_v7  ;;  %v8947_v6 = vld [vmem:[%s9792_s19 + $0xa0c] ss:$16 sps:$4 sm:$0xff]   ;;  %v8942_v7 = vld [vmem:[%s9792_s19 + $0xa00] ss:$16 sps:$4 sm:$0xff]  }
 0x139   : > { %2322 = vmatmul.mubr.bf16.gmra.mrb[12].mxu0 %v9987_v53  ;;  %2428 = vmatmul.mubr.bf16.gmra.mrb[12].mxu1 %v9987_v53 }
 0x13a   : > { %3228 = vmatpush1.bf16.msra.mxu0 %v8858_v8  ;;  %3334 = vmatpush1.bf16.msra.mxu1 %v8861_v9  ;;  %v8945_v8 = vld [vmem:[%s9792_s19 + $0xa08] ss:$16 sps:$4 sm:$0xff]   ;;  %v8950_v9 = vld [vmem:[%s9792_s19 + $0xa24] ss:$16 sps:$4 sm:$0xff]  }
 0x13b   : > { %3229 = vmatprep.subr.bf16.mxu0 %v8866_v10  ;;  %3335 = vmatprep.subr.bf16.mxu1 %v8869_v11  ;;  %v8953_v10 = vld [vmem:[%s9792_s19 + $0xa2c] ss:$16 sps:$4 sm:$0xff]   ;;  %v8948_v11 = vld [vmem:[%s9792_s19 + $0xa20] ss:$16 sps:$4 sm:$0xff]  }
 0x13c   : > { %3255 = vmatprep.mubr.bf16.mxu0 %v9869_v2  ;;  %3361 = vmatprep.mubr.bf16.mxu1 %v9869_v2  ;;  %v8882_v2 = vld [vmem:[%s9792_s19 + $0x8c0] ss:$16 sps:$4 sm:$0xff]  }
 0x13e   : > { %3230 = vmatpush1.bf16.msra.mxu0 %v8864_v12  ;;  %3336 = vmatpush1.bf16.msra.mxu1 %v8867_v13  ;;  %v8951_v12 = vld [vmem:[%s9792_s19 + $0xa28] ss:$16 sps:$4 sm:$0xff]   ;;  %v8956_v13 = vld [vmem:[%s9792_s19 + $0xa44] ss:$16 sps:$4 sm:$0xff]  }
 0x13f   : > { %3231 = vmatprep.subr.bf16.mxu0 %v8872_v14  ;;  %3337 = vmatprep.subr.bf16.mxu1 %v8875_v15  ;;  %v8959_v14 = vld [vmem:[%s9792_s19 + $0xa4c] ss:$16 sps:$4 sm:$0xff]   ;;  %v8954_v15 = vld [vmem:[%s9792_s19 + $0xa40] ss:$16 sps:$4 sm:$0xff]  }
 0x142   : > { %3232 = vmatpush1.bf16.msra.mxu0 %v8870_v16  ;;  %3338 = vmatpush1.bf16.msra.mxu1 %v8873_v17  ;;  %v8957_v16 = vld [vmem:[%s9792_s19 + $0xa48] ss:$16 sps:$4 sm:$0xff]   ;;  %v8962_v17 = vld [vmem:[%s9792_s19 + $0xa64] ss:$16 sps:$4 sm:$0xff]  }
 0x143   : > { %3233 = vmatprep.subr.bf16.mxu0 %v8878_v18  ;;  %3339 = vmatprep.subr.bf16.mxu1 %v8881_v19  ;;  %v8965_v18 = vld [vmem:[%s9792_s19 + $0xa6c] ss:$16 sps:$4 sm:$0xff]   ;;  %v8963_v19 = vld [vmem:[%s9792_s19 + $0xa68] ss:$16 sps:$4 sm:$0xff]  }
 0x146   : > { %3234 = vmatpush1.bf16.msra.mxu0 %v8876_v20  ;;  %3340 = vmatpush1.bf16.msra.mxu1 %v8879_v21  ;;  %v8968_v20 = vld [vmem:[%s9792_s19 + $0xa84] ss:$16 sps:$4 sm:$0xff]   ;;  %v8971_v21 = vld [vmem:[%s9792_s19 + $0xa8c] ss:$16 sps:$4 sm:$0xff]  }
 0x147   : > { %3235 = vmatprep.subr.bf16.mxu0 %v8884_v22  ;;  %3341 = vmatprep.subr.bf16.mxu1 %v8887_v23  ;;  %v376_v22 = vlaneseq  ;;  %v8969_v23 = vld [vmem:[%s9792_s19 + $0xa88] ss:$16 sps:$4 sm:$0xff]  }
 0x14a   : > { %3236 = vmatpush1.bf16.msra.mxu0 %v8882_v2  ;;  %3342 = vmatpush1.bf16.msra.mxu1 %v8885_v24  ;;  %v8974_v2 = vld [vmem:[%s9792_s19 + $0xaa4] ss:$16 sps:$4 sm:$0xff]   ;;  %v8977_v24 = vld [vmem:[%s9792_s19 + $0xaac] ss:$16 sps:$4 sm:$0xff]  }
 0x14b   : > { %3237 = vmatprep.subr.bf16.mxu0 %v8890_v26  ;;  %3343 = vmatprep.subr.bf16.mxu1 %v8893_v27  ;;  %v10221_v26 = vshrl.u32 %v376_v22, 7  ;;  %v8975_v27 = vld [vmem:[%s9792_s19 + $0xaa8] ss:$16 sps:$4 sm:$0xff]  }
 0x14e   : > { %3238 = vmatpush1.bf16.msra.mxu0 %v8888_v28  ;;  %3344 = vmatpush1.bf16.msra.mxu1 %v8891_v29  ;;  %v10226_v28 = vld [vmem:[%s9782_s15] sm:$0xf]  ;;  %v8980_v29 = vld [vmem:[%s9792_s19 + $0xac4] ss:$16 sps:$4 sm:$0xff]  }
 0x14f   : > { %3239 = vmatprep.subr.bf16.mxu0 %v8896_v30  ;;  %3345 = vmatprep.subr.bf16.mxu1 %v8899_v31  ;;  %v8983_v30 = vld [vmem:[%s9792_s19 + $0xacc] ss:$16 sps:$4 sm:$0xff]   ;;  %v386_v31 = vsub.s32 2, %v10221_v26 }
 0x152   : > { %3240 = vmatpush1.bf16.msra.mxu0 %v8894_v32  ;;  %3346 = vmatpush1.bf16.msra.mxu1 %v8897_v33  ;;  %v8978_v33 = vld [vmem:[%s9792_s19 + $0xac0] ss:$16 sps:$4 sm:$0xff]  }
 0x153   : > { %3241 = vmatprep.subr.bf16.mxu0 %v8902_v34  ;;  %3347 = vmatprep.subr.bf16.mxu1 %v8905_v35  ;;  %v8981_v34 = vld [vmem:[%s9792_s19 + $0xac8] ss:$16 sps:$4 sm:$0xff]  }
 0x156   : > { %3242 = vmatpush1.bf16.msra.mxu0 %v8900_v36  ;;  %3348 = vmatpush1.bf16.msra.mxu1 %v8903_v37 }
 0x157   : > { %3243 = vmatprep.subr.bf16.mxu0 %v8908_v38  ;;  %3349 = vmatprep.subr.bf16.mxu1 %v8911_v40  ;;  %v8986_v38 = vld [vmem:[%s9792_s19 + $0xae4] ss:$16 sps:$4 sm:$0xff]   ;;  %v10243_v40 = vrot.slane %v10226_v28, %v386_v31 }
 0x15a   : > { %3244 = vmatpush1.bf16.msra.mxu0 %v8906_v41  ;;  %3350 = vmatpush1.bf16.msra.mxu1 %v8909_v42 }
 0x15b   : > { %3245 = vmatprep.subr.bf16.mxu0 %v8914_v43  ;;  %3351 = vmatprep.subr.bf16.mxu1 %v8917_v44  ;;  %v8989_v43 = vld [vmem:[%s9792_s19 + $0xaec] ss:$16 sps:$4 sm:$0xff]  }
 0x15e   : > { %3246 = vmatpush1.bf16.msra.mxu0 %v8912_v45  ;;  %3352 = vmatpush1.bf16.msra.mxu1 %v8915_v48 }
 0x15f   : > { %3247 = vmatprep.subr.bf16.mxu0 %v8920_v49  ;;  %3353 = vmatprep.subr.bf16.mxu1 %v8923_v50 }
 0x162   : > { %3248 = vmatpush1.bf16.msra.mxu0 %v8918_v52  ;;  %3354 = vmatpush1.bf16.msra.mxu1 %v8921_v54 }
 0x163   : > { %3249 = vmatprep.subr.bf16.mxu0 %v8926_v55  ;;  %3355 = vmatprep.subr.bf16.mxu1 %v8929_v56 }
 0x166   : > { %3250 = vmatpush1.bf16.msra.mxu0 %v8924_v57  ;;  %3356 = vmatpush1.bf16.msra.mxu1 %v8927_v58  ;;  %v8984_v57 = vld [vmem:[%s9792_s19 + $0xae0] ss:$16 sps:$4 sm:$0xff]   ;;  %v8987_v58 = vld [vmem:[%s9792_s19 + $0xae8] ss:$16 sps:$4 sm:$0xff]  }
 0x167   : > { %3251 = vmatprep.subr.bf16.mxu0 %v8932_v59  ;;  %3357 = vmatprep.subr.bf16.mxu1 %v8935_v61  ;;  %v8992_v59 = vld [vmem:[%s9792_s19 + $0xb04] ss:$16 sps:$4 sm:$0xff]   ;;  %v8995_v61 = vld [vmem:[%s9792_s19 + $0xb0c] ss:$16 sps:$4 sm:$0xff]  }
 0x16a   : > { %3252 = vmatpush1.bf16.msra.mxu0 %v8930_v62  ;;  %3358 = vmatpush1.bf16.msra.mxu1 %v8933_v63 }
 0x16b   : > { %3253 = vmatprep.subr.bf16.mxu0 %v8938_v0  ;;  %3359 = vmatprep.subr.bf16.mxu1 %v8941_v1 }
 0x16e   : > { %3254 = vmatpush1.bf16.msra.mxu0 %v8936_v3  ;;  %3360 = vmatpush1.bf16.msra.mxu1 %v8939_v4 }
 0x16f   : > { %3276 = vmatprep.subr.bf16.mxu0 %v8944_v5  ;;  %3382 = vmatprep.subr.bf16.mxu1 %v8947_v6  ;;  %v8990_v6 = vld [vmem:[%s9792_s19 + $0xb00] ss:$16 sps:$4 sm:$0xff]  }
 0x171   : > { %3256 = vmatmul.mubr.bf16.vlgmr.msra.gmra.mrb[16].mxu0 %v9893_v25  ;;  %3362 = vmatmul.mubr.bf16.vlgmr.msra.gmra.mrb[16].mxu1 %v9893_v25  ;;  %v8960_v25 = vld [vmem:[%s9792_s19 + $0xa60] ss:$16 sps:$4 sm:$0xff]  }
 0x172   : > { %3277 = vmatpush1.bf16.msra.mxu0 %v8942_v7  ;;  %3383 = vmatpush1.bf16.msra.mxu1 %v8945_v8  ;;  %v8993_v7 = vld [vmem:[%s9792_s19 + $0xb08] ss:$16 sps:$4 sm:$0xff]  }
 0x173   : > { %3278 = vmatprep.subr.bf16.mxu0 %v8950_v9  ;;  %3384 = vmatprep.subr.bf16.mxu1 %v8953_v10 }
 0x174   : > { %3265 = vmatprep.mubr.bf16.mxu0 %v9915_v46  ;;  %3371 = vmatprep.mubr.bf16.mxu1 %v9915_v46  ;;  %v8966_v46 = vld [vmem:[%s9792_s19 + $0xa80] ss:$16 sps:$4 sm:$0xff]  }
 0x176   : > { %3279 = vmatpush1.bf16.msra.mxu0 %v8948_v11  ;;  %3385 = vmatpush1.bf16.msra.mxu1 %v8951_v12  ;;  %v8998_v11 = vld [vmem:[%s9792_s19 + $0xb24] ss:$16 sps:$4 sm:$0xff]  }
 0x177   : > { %3280 = vmatprep.subr.bf16.mxu0 %v8956_v13  ;;  %3386 = vmatprep.subr.bf16.mxu1 %v8959_v14 }
 0x179   : > { %3266 = vmatmul.mubr.bf16.gmra.mrb[20].mxu0 %v9919_v51  ;;  %3372 = vmatmul.mubr.bf16.gmra.mrb[20].mxu1 %v9919_v51  ;;  %v8972_v51 = vld [vmem:[%s9792_s19 + $0xaa0] ss:$16 sps:$4 sm:$0xff]  }
 0x17a   : > { %3281 = vmatpush1.bf16.msra.mxu0 %v8954_v15  ;;  %3387 = vmatpush1.bf16.msra.mxu1 %v8957_v16  ;;  %v9001_v15 = vld [vmem:[%s9792_s19 + $0xb2c] ss:$16 sps:$4 sm:$0xff]  }
 0x17b   : > { %3282 = vmatprep.subr.bf16.mxu0 %v8962_v17  ;;  %3388 = vmatprep.subr.bf16.mxu1 %v8965_v18 }
 0x17c   : > { %3308 = vmatprep.mubr.bf16.mxu0 %v9931_v60  ;;  %3414 = vmatprep.mubr.bf16.mxu1 %v9931_v60 }
 0x17e   : > { %3283 = vmatpush1.bf16.msra.mxu0 %v8960_v25  ;;  %3389 = vmatpush1.bf16.msra.mxu1 %v8963_v19 }
 0x17f   : > { %3284 = vmatprep.subr.bf16.mxu0 %v8968_v20  ;;  %3390 = vmatprep.subr.bf16.mxu1 %v8971_v21 }
 0x182   : > { %3285 = vmatpush1.bf16.msra.mxu0 %v8966_v46  ;;  %3391 = vmatpush1.bf16.msra.mxu1 %v8969_v23 }
 0x183   : > { %3286 = vmatprep.subr.bf16.mxu0 %v8974_v2  ;;  %3392 = vmatprep.subr.bf16.mxu1 %v8977_v24 }
 0x184   : > { %v10231_v60 = vpop.f32.mrb[0].mxu0  ;;  %v1357_v32 = vpop.f32.mrb[0].mxu1 }
 0x185   : > { %v1395_v35 = vrot.slane %v1357_v32, 7  ;;  %v10235_v36 = vpop.f32.mrb[1].mxu0  ;;  %v10237_v37 = vpop.f32.mrb[1].mxu1  ;;  %v1393_v52 = vrot.slane %v10231_v60, 7 }
 0x186   : > { %v1255_v41 = vpop.f32.mrb[2].mxu0  ;;  %v1361_v42 = vpop.f32.mrb[2].mxu1  ;;  %3287 = vmatpush1.bf16.msra.mxu0 %v8972_v51  ;;  %3393 = vmatpush1.bf16.msra.mxu1 %v8975_v27  ;;  %v1394_v54 = vrot.slane %v10235_v36, 7  ;;  %v1396_v63 = vrot.slane %v10237_v37, 7  ;;  %v8996_v51 = vld [vmem:[%s9792_s19 + $0xb20] ss:$16 sps:$4 sm:$0xff]  }
 0x187   : > { %v1435_v44 = vsel %vm1392_vm0, 0.0, %v1395_v35  ;;  %v1397_v45 = vrot.slane %v1255_v41, 7  ;;  %v1401_v48 = vrot.slane %v1361_v42, 7  ;;  %v1257_v49 = vpop.f32.mrb[3].mxu0  ;;  %v1363_v50 = vpop.f32.mrb[3].mxu1  ;;  %3288 = vmatprep.subr.bf16.mxu0 %v8980_v29  ;;  %3394 = vmatprep.subr.bf16.mxu1 %v8983_v30 }
 0x188   : > { %v1399_v55 = vrot.slane %v1257_v49, 7  ;;  %v1403_v56 = vrot.slane %v1363_v50, 7  ;;  %v10254_v62 = vadd.f32 %v1435_v44, %v10243_v40  ;;  %v8999_v27 = vld [vmem:[%s9792_s19 + $0xb28] ss:$16 sps:$4 sm:$0xff]   ;;  %v9002_v41 = vld [vmem:[%s9792_s19 + $0xb40] ss:$16 sps:$4 sm:$0xff]  }
 0x189   : > { %v10260_v0 = vsel %vm1392_vm0, %v1393_v52, %v1397_v45  ;;  %v1402_v1 = vsel %vm1392_vm0, %v1395_v35, %v1401_v48  ;;  %v9005_v42 = vld [vmem:[%s9792_s19 + $0xb48] ss:$16 sps:$4 sm:$0xff]   ;;  %v9013_v44 = vld [vmem:[%s9792_s19 + $0xb6c] ss:$16 sps:$4 sm:$0xff]   ;;  %v9016_v48 = vld [vmem:[%s9792_s19 + $0xb84] ss:$16 sps:$4 sm:$0xff]  }
 0x18a   : > { %3289 = vmatpush1.bf16.msra.mxu0 %v8978_v33  ;;  %3395 = vmatpush1.bf16.msra.mxu1 %v8981_v34  ;;  %v10266_v3 = vsel %vm1392_vm0, %v1394_v54, %v1399_v55  ;;  %v10269_v4 = vadd.f32 %v1402_v1, %v10243_v40  ;;  %v10278_v9 = vsel %vm1392_vm0, %v1396_v63, %v1403_v56  ;;  %v9004_v33 = vld [vmem:[%s9792_s19 + $0xb44] ss:$16 sps:$4 sm:$0xff]   ;;  %v9007_v34 = vld [vmem:[%s9792_s19 + $0xb4c] ss:$16 sps:$4 sm:$0xff]   ;;  %v9011_v45 = vld [vmem:[%s9792_s19 + $0xb68] ss:$16 sps:$4 sm:$0xff]  }
 0x18b   : > { %3290 = vmatprep.subr.bf16.mxu0 %v8986_v38  ;;  %3396 = vmatprep.subr.bf16.mxu1 %v8989_v43  ;;  %v9010_v43 = vld [vmem:[%s9792_s19 + $0xb64] ss:$16 sps:$4 sm:$0xff]   ;;  %v9019_v49 = vld [vmem:[%s9792_s19 + $0xb8c] ss:$16 sps:$4 sm:$0xff]   ;;  %v9014_v50 = vld [vmem:[%s9792_s19 + $0xb80] ss:$16 sps:$4 sm:$0xff]  }
 0x18c   : > { %v10271_v5 = vpop.f32.mrb[4].mxu0  ;;  %v1367_v8 = vpop.f32.mrb[4].mxu1  ;;  %v9017_v55 = vld [vmem:[%s9792_s19 + $0xb88] ss:$16 sps:$4 sm:$0xff]   ;;  %v9022_v56 = vld [vmem:[%s9792_s19 + $0xba4] ss:$16 sps:$4 sm:$0xff]  }
 0x18d   : > { %v10280_v10 = vpop.f32.mrb[5].mxu0  ;;  %v1407_v12 = vrot.slane %v1367_v8, 7  ;;  %v10283_v13 = vpop.f32.mrb[5].mxu1  ;;  %v1405_v17 = vrot.slane %v10271_v5, 7  ;;  %v9031_v1 = vld [vmem:[%s9792_s19 + $0xbcc] ss:$16 sps:$4 sm:$0xff]  }
 0x18e   : > { %v1265_v14 = vpop.f32.mrb[6].mxu0  ;;  %3291 = vmatpush1.bf16.msra.mxu0 %v8984_v57  ;;  %3397 = vmatpush1.bf16.msra.mxu1 %v8987_v58  ;;  %v1371_v16 = vpop.f32.mrb[6].mxu1  ;;  %v1406_v22 = vrot.slane %v10280_v10, 7  ;;  %v1408_v23 = vrot.slane %v10283_v13, 7  ;;  %v9025_v57 = vld [vmem:[%s9792_s19 + $0xbac] ss:$16 sps:$4 sm:$0xff]  }
 0x18f   : > { %v1409_v18 = vrot.slane %v1265_v14, 7  ;;  %v1267_v25 = vpop.f32.mrb[7].mxu0  ;;  %3292 = vmatprep.subr.bf16.mxu0 %v8992_v59  ;;  %3398 = vmatprep.subr.bf16.mxu1 %v8995_v61  ;;  %v1439_v19 = vsel %vm1392_vm0, 0.0, %v1407_v12  ;;  %v1413_v20 = vrot.slane %v1371_v16, 7  ;;  %v1373_v21 = vpop.f32.mrb[7].mxu1 }
 0x190   : > { %v1411_v46 = vrot.slane %v1267_v25, 7  ;;  %v1415_v2 = vrot.slane %v1373_v21, 7  ;;  %v10291_v24 = vadd.f32 %v1439_v19, %v10243_v40  ;;  %v9020_v58 = vld [vmem:[%s9792_s19 + $0xba0] ss:$16 sps:$4 sm:$0xff]   ;;  %v9023_v59 = vld [vmem:[%s9792_s19 + $0xba8] ss:$16 sps:$4 sm:$0xff]  }
 0x191   : > { %v10298_v29 = vsel %vm1392_vm0, %v1405_v17, %v1409_v18  ;;  %v1414_v30 = vsel %vm1392_vm0, %v1407_v12, %v1413_v20  ;;  %v9028_v61 = vld [vmem:[%s9792_s19 + $0xbc4] ss:$16 sps:$4 sm:$0xff]   ;;  %v9032_v12 = vld [vmem:[%s9792_s19 + $0xbe0] ss:$16 sps:$4 sm:$0xff]   ;;  %v9035_v14 = vld [vmem:[%s9792_s19 + $0xbe8] ss:$16 sps:$4 sm:$0xff]  }
 0x192   : > { %3293 = vmatpush1.bf16.msra.mxu0 %v8990_v6  ;;  %3399 = vmatpush1.bf16.msra.mxu1 %v8993_v7  ;;  %v10304_v32 = vsel %vm1392_vm0, %v1406_v22, %v1411_v46  ;;  %v10309_v35 = vadd.f32 %v1414_v30, %v10243_v40  ;;  %v10314_v38 = vsel %vm1392_vm0, %v1408_v23, %v1415_v2  ;;  %v9008_v40 = vld [vmem:[%s9792_s19 + $0xb60] ss:$16 sps:$4 sm:$0xff]   ;;  %v9029_v7 = vld [vmem:[%s9792_s19 + $0xbc8] ss:$16 sps:$4 sm:$0xff]   ;;  %v9034_v8 = vld [vmem:[%s9792_s19 + $0xbe4] ss:$16 sps:$4 sm:$0xff]  }
 0x193   : > { %3294 = vmatprep.subr.bf16.mxu0 %v8998_v11  ;;  %3400 = vmatprep.subr.bf16.mxu1 %v9001_v15  ;;  %v9026_v6 = vld [vmem:[%s9792_s19 + $0xbc0] ss:$16 sps:$4 sm:$0xff]   ;;  %v9037_v11 = vld [vmem:[%s9792_s19 + $0xbec] ss:$16 sps:$4 sm:$0xff]   ;;  %v9040_v15 = vld [vmem:[%s9792_s19 + $0xc04] ss:$16 sps:$4 sm:$0xff]  }
 0x194   : > { %v9043_v16 = vld [vmem:[%s9792_s19 + $0xc0c] ss:$16 sps:$4 sm:$0xff]   ;;  %v9038_v18 = vld [vmem:[%s9792_s19 + $0xc00] ss:$16 sps:$4 sm:$0xff]   ;;  %v9041_v25 = vld [vmem:[%s9792_s19 + $0xc08] ss:$16 sps:$4 sm:$0xff]  }
 0x195   : > { %v9046_v19 = vld [vmem:[%s9792_s19 + $0xc24] ss:$16 sps:$4 sm:$0xff]   ;;  %v9049_v20 = vld [vmem:[%s9792_s19 + $0xc2c] ss:$16 sps:$4 sm:$0xff]   ;;  %v9044_v21 = vld [vmem:[%s9792_s19 + $0xc20] ss:$16 sps:$4 sm:$0xff]  }
 0x196   : > { %3295 = vmatpush1.bf16.msra.mxu0 %v8996_v51  ;;  %3401 = vmatpush1.bf16.msra.mxu1 %v8999_v27  ;;  %v9047_v46 = vld [vmem:[%s9792_s19 + $0xc28] ss:$16 sps:$4 sm:$0xff]   ;;  %v9052_v2 = vld [vmem:[%s9792_s19 + $0xc44] ss:$16 sps:$4 sm:$0xff]   ;;  %v9055_v51 = vld [vmem:[%s9792_s19 + $0xc4c] ss:$16 sps:$4 sm:$0xff]  }
 0x197   : > { %3296 = vmatprep.subr.bf16.mxu0 %v9004_v33  ;;  %3402 = vmatprep.subr.bf16.mxu1 %v9007_v34  ;;  %v9050_v27 = vld [vmem:[%s9792_s19 + $0xc40] ss:$16 sps:$4 sm:$0xff]   ;;  %v9053_v30 = vld [vmem:[%s9792_s19 + $0xc48] ss:$16 sps:$4 sm:$0xff]   ;;  %v9058_v33 = vld [vmem:[%s9792_s19 + $0xc64] ss:$16 sps:$4 sm:$0xff]  }
 0x198   : > { %v9059_v34 = vld [vmem:[%s9792_s19 + $0xc68] ss:$16 sps:$4 sm:$0xff]  }
 0x19a   : > { %3297 = vmatpush1.bf16.msra.mxu0 %v9002_v41  ;;  %3403 = vmatpush1.bf16.msra.mxu1 %v9005_v42  ;;  %v9064_v41 = vld [vmem:[%s9792_s19 + $0xc84] ss:$16 sps:$4 sm:$0xff]   ;;  %v9067_v42 = vld [vmem:[%s9792_s19 + $0xc8c] ss:$16 sps:$4 sm:$0xff]  }
 0x19b   : > { %3298 = vmatprep.subr.bf16.mxu0 %v9010_v43  ;;  %3404 = vmatprep.subr.bf16.mxu1 %v9013_v44  ;;  %v9062_v43 = vld [vmem:[%s9792_s19 + $0xc80] ss:$16 sps:$4 sm:$0xff]   ;;  %v9065_v44 = vld [vmem:[%s9792_s19 + $0xc88] ss:$16 sps:$4 sm:$0xff]  }
 0x19e   : > { %3299 = vmatpush1.bf16.msra.mxu0 %v9008_v40  ;;  %3405 = vmatpush1.bf16.msra.mxu1 %v9011_v45  ;;  %v9070_v40 = vld [vmem:[%s9792_s19 + $0xca4] ss:$16 sps:$4 sm:$0xff]   ;;  %v9073_v45 = vld [vmem:[%s9792_s19 + $0xcac] ss:$16 sps:$4 sm:$0xff]  }
 0x19f   : > { %3300 = vmatprep.subr.bf16.mxu0 %v9016_v48  ;;  %3406 = vmatprep.subr.bf16.mxu1 %v9019_v49  ;;  %v9071_v48 = vld [vmem:[%s9792_s19 + $0xca8] ss:$16 sps:$4 sm:$0xff]   ;;  %v9076_v49 = vld [vmem:[%s9792_s19 + $0xcc4] ss:$16 sps:$4 sm:$0xff]  }
 0x1a2   : > { %3301 = vmatpush1.bf16.msra.mxu0 %v9014_v50  ;;  %3407 = vmatpush1.bf16.msra.mxu1 %v9017_v55  ;;  %v9079_v50 = vld [vmem:[%s9792_s19 + $0xccc] ss:$16 sps:$4 sm:$0xff]   ;;  %v9074_v55 = vld [vmem:[%s9792_s19 + $0xcc0] ss:$16 sps:$4 sm:$0xff]  }
 0x1a3   : > { %3302 = vmatprep.subr.bf16.mxu0 %v9022_v56  ;;  %3408 = vmatprep.subr.bf16.mxu1 %v9025_v57  ;;  %v9077_v56 = vld [vmem:[%s9792_s19 + $0xcc8] ss:$16 sps:$4 sm:$0xff]   ;;  %v9082_v57 = vld [vmem:[%s9792_s19 + $0xce4] ss:$16 sps:$4 sm:$0xff]  }
 0x1a6   : > { %3303 = vmatpush1.bf16.msra.mxu0 %v9020_v58  ;;  %3409 = vmatpush1.bf16.msra.mxu1 %v9023_v59  ;;  %v9085_v58 = vld [vmem:[%s9792_s19 + $0xcec] ss:$16 sps:$4 sm:$0xff]   ;;  %v9080_v59 = vld [vmem:[%s9792_s19 + $0xce0] ss:$16 sps:$4 sm:$0xff]  }
 0x1a7   : > { %3304 = vmatprep.subr.bf16.mxu0 %v9028_v61  ;;  %3410 = vmatprep.subr.bf16.mxu1 %v9031_v1  ;;  %v9083_v61 = vld [vmem:[%s9792_s19 + $0xce8] ss:$16 sps:$4 sm:$0xff]   ;;  %v9088_v1 = vld [vmem:[%s9792_s19 + $0xd04] ss:$16 sps:$4 sm:$0xff]  }
 0x1aa   : > { %3305 = vmatpush1.bf16.msra.mxu0 %v9026_v6  ;;  %3411 = vmatpush1.bf16.msra.mxu1 %v9029_v7  ;;  %v9091_v6 = vld [vmem:[%s9792_s19 + $0xd0c] ss:$16 sps:$4 sm:$0xff]   ;;  %v9086_v7 = vld [vmem:[%s9792_s19 + $0xd00] ss:$16 sps:$4 sm:$0xff]  }
 0x1ab   : > { %3306 = vmatprep.subr.bf16.mxu0 %v9034_v8  ;;  %3412 = vmatprep.subr.bf16.mxu1 %v9037_v11  ;;  %v9089_v8 = vld [vmem:[%s9792_s19 + $0xd08] ss:$16 sps:$4 sm:$0xff]   ;;  %v9094_v11 = vld [vmem:[%s9792_s19 + $0xd24] ss:$16 sps:$4 sm:$0xff]  }
 0x1ae   : > { %3307 = vmatpush1.bf16.msra.mxu0 %v9032_v12  ;;  %3413 = vmatpush1.bf16.msra.mxu1 %v9035_v14  ;;  %v9097_v12 = vld [vmem:[%s9792_s19 + $0xd2c] ss:$16 sps:$4 sm:$0xff]   ;;  %v9092_v14 = vld [vmem:[%s9792_s19 + $0xd20] ss:$16 sps:$4 sm:$0xff]  }
 0x1af   : > { %4364 = vmatprep.subr.bf16.mxu0 %v9040_v15  ;;  %4470 = vmatprep.subr.bf16.mxu1 %v9043_v16  ;;  %v9095_v15 = vld [vmem:[%s9792_s19 + $0xd28] ss:$16 sps:$4 sm:$0xff]   ;;  %v9100_v16 = vld [vmem:[%s9792_s19 + $0xd44] ss:$16 sps:$4 sm:$0xff]  }
 0x1b1   : > { %3309 = vmatmul.mubr.bf16.vlgmr.msra.gmra.mrb[16].mxu0 %v9973_v39  ;;  %3415 = vmatmul.mubr.bf16.vlgmr.msra.gmra.mrb[16].mxu1 %v9973_v39  ;;  %v9061_v39 = vld [vmem:[%s9792_s19 + $0xc6c] ss:$16 sps:$4 sm:$0xff]  }
 0x1b2   : > { %3318 = vmatprep.mubr.bf16.mxu0 %v9979_v47  ;;  %3424 = vmatprep.mubr.bf16.mxu1 %v9979_v47  ;;  %v9056_v47 = vld [vmem:[%s9792_s19 + $0xc60] ss:$16 sps:$4 sm:$0xff]  }
 0x1b3   : > { %4365 = vmatpush1.bf16.msra.mxu0 %v9038_v18  ;;  %4471 = vmatpush1.bf16.msra.mxu1 %v9041_v25  ;;  %v9103_v18 = vld [vmem:[%s9792_s19 + $0xd4c] ss:$16 sps:$4 sm:$0xff]   ;;  %v9098_v25 = vld [vmem:[%s9792_s19 + $0xd40] ss:$16 sps:$4 sm:$0xff]  }
 0x1b4   : > { %4366 = vmatprep.subr.bf16.mxu0 %v9046_v19  ;;  %4472 = vmatprep.subr.bf16.mxu1 %v9049_v20  ;;  %v9101_v19 = vld [vmem:[%s9792_s19 + $0xd48] ss:$16 sps:$4 sm:$0xff]   ;;  %v9106_v20 = vld [vmem:[%s9792_s19 + $0xd64] ss:$16 sps:$4 sm:$0xff]  }
 0x1b7   : > { %4367 = vmatpush1.bf16.msra.mxu0 %v9044_v21  ;;  %4473 = vmatpush1.bf16.msra.mxu1 %v9047_v46  ;;  %v9109_v21 = vld [vmem:[%s9792_s19 + $0xd6c] ss:$16 sps:$4 sm:$0xff]   ;;  %v9104_v46 = vld [vmem:[%s9792_s19 + $0xd60] ss:$16 sps:$4 sm:$0xff]  }
 0x1b8   : > { %4368 = vmatprep.subr.bf16.mxu0 %v9052_v2  ;;  %4474 = vmatprep.subr.bf16.mxu1 %v9055_v51  ;;  %v9107_v2 = vld [vmem:[%s9792_s19 + $0xd68] ss:$16 sps:$4 sm:$0xff]   ;;  %v9112_v51 = vld [vmem:[%s9792_s19 + $0xd84] ss:$16 sps:$4 sm:$0xff]  }
 0x1b9   : > { %3319 = vmatmul.mubr.bf16.gmra.mrb[20].mxu0 %v9987_v53  ;;  %3425 = vmatmul.mubr.bf16.gmra.mrb[20].mxu1 %v9987_v53  ;;  %v9068_v53 = vld [vmem:[%s9792_s19 + $0xca0] ss:$16 sps:$4 sm:$0xff]  }
 0x1bb   : > { %4369 = vmatpush1.bf16.msra.mxu0 %v9050_v27  ;;  %4475 = vmatpush1.bf16.msra.mxu1 %v9053_v30  ;;  %v9115_v27 = vld [vmem:[%s9792_s19 + $0xd8c] ss:$16 sps:$4 sm:$0xff]   ;;  %v9110_v30 = vld [vmem:[%s9792_s19 + $0xd80] ss:$16 sps:$4 sm:$0xff]  }
 0x1bc   : > { %4370 = vmatprep.subr.bf16.mxu0 %v9058_v33  ;;  %4476 = vmatprep.subr.bf16.mxu1 %v9061_v39  ;;  %v9113_v33 = vld [vmem:[%s9792_s19 + $0xd88] ss:$16 sps:$4 sm:$0xff]   ;;  %v378_v39 = vsub.s32 0, %v10221_v26 }
 0x1bf   : > { %4371 = vmatpush1.bf16.msra.mxu0 %v9056_v47  ;;  %4477 = vmatpush1.bf16.msra.mxu1 %v9059_v34  ;;  %v382_v47 = vsub.s32 1, %v10221_v26  ;;  %v390_v34 = vsub.s32 3, %v10221_v26 }
 0x1c0   : > { %4372 = vmatprep.subr.bf16.mxu0 %v9064_v41  ;;  %4478 = vmatprep.subr.bf16.mxu1 %v9067_v42  ;;  %v379_v41 = vrot.slane %v10226_v28, %v378_v39  ;;  %v1433_v42 = vsel %vm1392_vm0, 0.0, %v1393_v52 }
 0x1c3   : > { %4373 = vmatpush1.bf16.msra.mxu0 %v9062_v43  ;;  %4479 = vmatpush1.bf16.msra.mxu1 %v9065_v44  ;;  %v383_v43 = vrot.slane %v10226_v28, %v382_v47  ;;  %v391_v44 = vrot.slane %v10226_v28, %v390_v34 }
 0x1c4   : > { %4374 = vmatprep.subr.bf16.mxu0 %v9070_v40  ;;  %4480 = vmatprep.subr.bf16.mxu1 %v9073_v45  ;;  %v1434_v40 = vsel %vm1392_vm0, 0.0, %v1394_v54  ;;  %v1436_v45 = vsel %vm1392_vm0, 0.0, %v1396_v63  ;;  %v1445_v54 = vadd.f32 %v10260_v0, %v379_v41  ;;  %v9116_v0 = vld [vmem:[%s9792_s19 + $0xda0] ss:$16 sps:$4 sm:$0xff]  }
 0x1c7   : > { %4375 = vmatpush1.bf16.msra.mxu0 %v9068_v53  ;;  %4481 = vmatpush1.bf16.msra.mxu1 %v9071_v48  ;;  %v1441_v53 = vadd.f32 %v1433_v42, %v379_v41  ;;  %v1442_v48 = vadd.f32 %v1434_v40, %v383_v43  ;;  %v9122_v42 = vld [vmem:[%s9792_s19 + $0xdc0] ss:$16 sps:$4 sm:$0xff]   ;;  %v9125_v40 = vld [vmem:[%s9792_s19 + $0xdc8] ss:$16 sps:$4 sm:$0xff]  }
 0x1c8   : > { %4376 = vmatprep.subr.bf16.mxu0 %v9076_v49  ;;  %4482 = vmatprep.subr.bf16.mxu1 %v9079_v50  ;;  %v1444_v49 = vadd.f32 %v1436_v45, %v391_v44  ;;  %v9128_v45 = vld [vmem:[%s9792_s19 + $0xde0] ss:$16 sps:$4 sm:$0xff]  }
 0x1cb   : > { %4377 = vmatpush1.bf16.msra.mxu0 %v9074_v55  ;;  %4483 = vmatpush1.bf16.msra.mxu1 %v9077_v56 }
 0x1cc   : > { %4378 = vmatprep.subr.bf16.mxu0 %v9082_v57  ;;  %4484 = vmatprep.subr.bf16.mxu1 %v9085_v58  ;;  %v1446_v58 = vadd.f32 %v10266_v3, %v383_v43  ;;  %v9121_v3 = vld [vmem:[%s9792_s19 + $0xdac] ss:$16 sps:$4 sm:$0xff]  }
 0x1cf   : > { %4379 = vmatpush1.bf16.msra.mxu0 %v9080_v59  ;;  %4485 = vmatpush1.bf16.msra.mxu1 %v9083_v61  ;;  %v1448_v59 = vadd.f32 %v10278_v9, %v391_v44  ;;  %v9118_v61 = vld [vmem:[%s9792_s19 + $0xda4] ss:$16 sps:$4 sm:$0xff]   ;;  %v1438_v9 = vsel %vm1392_vm0, 0.0, %v1406_v22 }
 0x1d0   : > { %4380 = vmatprep.subr.bf16.mxu0 %v9088_v1  ;;  %4486 = vmatprep.subr.bf16.mxu1 %v9091_v6 }
 0x1d3   : > { %4381 = vmatpush1.bf16.msra.mxu0 %v9086_v7  ;;  %4487 = vmatpush1.bf16.msra.mxu1 %v9089_v8  ;;  %v9119_v8 = vld [vmem:[%s9792_s19 + $0xda8] ss:$16 sps:$4 sm:$0xff]  }
 0x1d4   : > { %4382 = vmatprep.subr.bf16.mxu0 %v9094_v11  ;;  %4488 = vmatprep.subr.bf16.mxu1 %v9097_v12  ;;  %v1437_v11 = vsel %vm1392_vm0, 0.0, %v1405_v17 }
 0x1d7   : > { %4383 = vmatpush1.bf16.msra.mxu0 %v9092_v14  ;;  %4489 = vmatpush1.bf16.msra.mxu1 %v9095_v15  ;;  %v1449_v15 = vadd.f32 %v1437_v11, %v379_v41 }
 0x1d8   : > { %4384 = vmatprep.subr.bf16.mxu0 %v9100_v16  ;;  %4490 = vmatprep.subr.bf16.mxu1 %v9103_v18  ;;  %v1450_v16 = vadd.f32 %v1438_v9, %v383_v43 }
 0x1db   : > { %4385 = vmatpush1.bf16.msra.mxu0 %v9098_v25  ;;  %4491 = vmatpush1.bf16.msra.mxu1 %v9101_v19 }
 0x1dc   : > { %4386 = vmatprep.subr.bf16.mxu0 %v9106_v20  ;;  %4492 = vmatprep.subr.bf16.mxu1 %v9109_v21 }
 0x1df   : > { %4387 = vmatpush1.bf16.msra.mxu0 %v9104_v46  ;;  %4493 = vmatpush1.bf16.msra.mxu1 %v9107_v2  ;;  %v1454_v2 = vadd.f32 %v10304_v32, %v383_v43 }
 0x1e0   : > { %4388 = vmatprep.subr.bf16.mxu0 %v9112_v51  ;;  %4494 = vmatprep.subr.bf16.mxu1 %v9115_v27  ;;  %v1456_v51 = vadd.f32 %v10314_v38, %v391_v44  ;;  %v9127_v27 = vld [vmem:[%s9792_s19 + $0xdcc] ss:$16 sps:$4 sm:$0xff]   ;;  %v9130_v38 = vld [vmem:[%s9792_s19 + $0xde4] ss:$16 sps:$4 sm:$0xff]  }
 0x1e3   : > { %4389 = vmatpush1.bf16.msra.mxu0 %v9110_v30  ;;  %4495 = vmatpush1.bf16.msra.mxu1 %v9113_v33 }
 0x1e4   : > { %4390 = vmatprep.subr.bf16.mxu0 %v9118_v61  ;;  %4496 = vmatprep.subr.bf16.mxu1 %v9121_v3 }
 0x1e7   : > { %4391 = vmatpush1.bf16.msra.mxu0 %v9116_v0  ;;  %4497 = vmatpush1.bf16.msra.mxu1 %v9119_v8 }
 0x1e8   : > { %4498 = vmatprep.subr.bf16.mxu1 %v9127_v27 }
 0x1eb   : > { %4499 = vmatpush1.bf16.msra.mxu1 %v9125_v40 }
 0x204   : > { %v2313_v60 = vpop.f32.mrb[8].mxu0  ;;  %v2419_v52 = vpop.f32.mrb[8].mxu1 }
 0x205   : > { %v10417_v50 = vadd.f32 %v2313_v60, %v1441_v53  ;;  %v10420_v55 = vadd.f32 %v2419_v52, %v10254_v62  ;;  %v2315_v28 = vpop.f32.mrb[9].mxu0  ;;  %v2421_v36 = vpop.f32.mrb[9].mxu1  ;;  %v9136_v53 = vld [vmem:[%s9792_s19 + $0xe04] ss:$16 sps:$4 sm:$0xff]   ;;  %v9139_v60 = vld [vmem:[%s9792_s19 + $0xe0c] ss:$16 sps:$4 sm:$0xff]  }
 0x206   : > { %v10423_v37 = vadd.f32 %v2315_v28, %v1442_v48  ;;  %v10425_v63 = vadd.f32 %v2421_v36, %v1444_v49  ;;  %v2317_v56 = vpop.f32.mrb[10].mxu0  ;;  %v2423_v57 = vpop.f32.mrb[10].mxu1 }
 0x207   : > { %v10430_v1 = vadd.f32 %v2317_v56, %v1445_v54  ;;  %v10433_v62 = vadd.f32 %v2423_v57, %v10269_v4  ;;  %v2319_v6 = vpop.f32.mrb[11].mxu0  ;;  %v2425_v7 = vpop.f32.mrb[11].mxu1  ;;  %v1440_v4 = vsel %vm1392_vm0, 0.0, %v1408_v23  ;;  %v1453_v23 = vadd.f32 %v10298_v29, %v379_v41 }
 0x208   : > { %v10440_v12 = vadd.f32 %v2319_v6, %v1446_v58  ;;  %v10442_v14 = vadd.f32 %v2425_v7, %v1448_v59  ;;  %v1452_v18 = vadd.f32 %v1440_v4, %v391_v44  ;;  %v9133_v44 = vld [vmem:[%s9792_s19 + $0xdec] ss:$16 sps:$4 sm:$0xff]   ;;  %v10483_v59 = vstv %s365_s9 }
 0x209   : > { %4500 = vmatprep.subr.bf16.mxu1 %v9133_v44 }
 0x20c   : > { %v2323_v5 = vpop.f32.mrb[12].mxu0  ;;  %v2429_v17 = vpop.f32.mrb[12].mxu1 }
 0x20d   : > { %v10451_v25 = vadd.f32 %v2323_v5, %v1449_v15  ;;  %v10454_v10 = vadd.f32 %v2429_v17, %v10291_v24  ;;  %v2325_v22 = vpop.f32.mrb[13].mxu0  ;;  %v2431_v13 = vpop.f32.mrb[13].mxu1  ;;  %v9124_v24 = vld [vmem:[%s9792_s19 + $0xdc4] ss:$16 sps:$4 sm:$0xff]  }
 0x20e   : > { %v10457_v19 = vadd.f32 %v2325_v22, %v1450_v16  ;;  %v10459_v20 = vadd.f32 %v2431_v13, %v1452_v18  ;;  %v2327_v21 = vpop.f32.mrb[14].mxu0  ;;  %v2433_v46 = vpop.f32.mrb[14].mxu1  ;;  %4392 = vmatprep.subr.bf16.mxu0 %v9124_v24 }
 0x20f   : > { %v10465_v30 = vadd.f32 %v2327_v21, %v1453_v23  ;;  %v10468_v29 = vadd.f32 %v2433_v46, %v10309_v35  ;;  %v2329_v33 = vpop.f32.mrb[15].mxu0  ;;  %v2435_v41 = vpop.f32.mrb[15].mxu1  ;;  %4393 = vmatpush1.bf16.msra.mxu0 %v9122_v42  ;;  %v9131_v35 = vld [vmem:[%s9792_s19 + $0xde8] ss:$16 sps:$4 sm:$0xff]  }
 0x210   : > { %v10472_v32 = vadd.f32 %v2329_v33, %v1454_v2  ;;  %v10474_v43 = vadd.f32 %v2435_v41, %v1456_v51  ;;  %4394 = vmatprep.subr.bf16.mxu0 %v9130_v38  ;;  %4501 = vmatpush1.bf16.msra.mxu1 %v9131_v35 }
 0x211   : > { %4523 = vmatprep.subr.bf16.mxu1 %v9139_v60 }
 0x213   : > { %4395 = vmatpush1.bf16.msra.mxu0 %v9128_v45 }
 0x214   : > { %4417 = vmatprep.subr.bf16.mxu0 %v9136_v53 }
 0x284   : > { %v3310_v52 = vpop.f32.mrb[16].mxu0  ;;  %v3416_v48 = vpop.f32.mrb[16].mxu1 }
 0x285   : > { %v3458_v49 = vrot.slane %v3416_v48, 1  ;;  %v3312_v28 = vpop.f32.mrb[17].mxu0  ;;  %v3418_v36 = vpop.f32.mrb[17].mxu1  ;;  %v3452_v57 = vrot.slane %v3310_v52, 1 }
 0x286   : > { %v3314_v54 = vpop.f32.mrb[18].mxu0  ;;  %v3420_v56 = vpop.f32.mrb[18].mxu1  ;;  %v3455_v0 = vrot.slane %v3312_v28, 1  ;;  %v3461_v8 = vrot.slane %v3418_v36, 1 }
 0x287   : > { %v3453_v58 = vrot.slane %v3314_v54, 1  ;;  %v3459_v61 = vrot.slane %v3420_v56, 1  ;;  %v3316_v6 = vpop.f32.mrb[19].mxu0  ;;  %v3422_v7 = vpop.f32.mrb[19].mxu1 }
 0x288   : > { %v3456_v11 = vrot.slane %v3316_v6, 1  ;;  %v3462_v3 = vrot.slane %v3422_v7, 1  ;;  %v9134_v6 = vld [vmem:[%s9792_s19 + $0xe00] ss:$16 sps:$4 sm:$0xff]   ;;  %v9137_v7 = vld [vmem:[%s9792_s19 + $0xe08] ss:$16 sps:$4 sm:$0xff]  }
 0x289   : > { %v3454_v9 = vsel %vm3451_vm1, %v3452_v57, %v3453_v58  ;;  %v3492_v4 = vsel %vm3451_vm1, %v3453_v58, 0.0  ;;  %v3460_v15 = vsel %vm3451_vm1, %v3458_v49, %v3459_v61  ;;  %v3494_v5 = vsel %vm3451_vm1, %v3459_v61, 0.0 }
 0x28a   : > { %v3500_v17 = vadd.f32 %v3454_v9, %v10417_v50  ;;  %v3504_v16 = vadd.f32 %v3492_v4, %v10430_v1  ;;  %v3502_v18 = vadd.f32 %v3460_v15, %v10420_v55  ;;  %v3506_v22 = vadd.f32 %v3494_v5, %v10433_v62 }
 0x28b   : > { %v3457_v13 = vsel %vm3451_vm1, %v3455_v0, %v3456_v11  ;;  %v3493_v23 = vsel %vm3451_vm1, %v3456_v11, 0.0  ;;  %v3463_v21 = vsel %vm3451_vm1, %v3461_v8, %v3462_v3  ;;  %v3495_v46 = vsel %vm3451_vm1, %v3462_v3, 0.0  ;;  %v9142_v3 = vld [vmem:[%s9792_s19 + $0xe24] ss:$16 sps:$4 sm:$0xff]  }
 0x28c   : > { %vm3516_vm2 = vcmp.ge.f32.partialorder %v3500_v17, 0.0  ;;  %vm3520_vm3 = vcmp.ge.f32.partialorder %v3504_v16, 0.0  ;;  %v3533_v2 = vmul.f32 %v10483_v59, %v3500_v17  ;;  %v3537_v50 = vmul.f32 %v10483_v59, %v3504_v16  ;;  %v3320_v51 = vpop.f32.mrb[20].mxu0  ;;  %v3426_v1 = vpop.f32.mrb[20].mxu1 }
 0x28d   : > { %vm3518_vm4 = vcmp.ge.f32.partialorder %v3502_v18, 0.0  ;;  %vm3522_vm5 = vcmp.ge.f32.partialorder %v3506_v22, 0.0  ;;  %v3535_v55 = vmul.f32 %v10483_v59, %v3502_v18  ;;  %v3539_v62 = vmul.f32 %v10483_v59, %v3506_v22  ;;  %v3322_v24 = vpop.f32.mrb[21].mxu0  ;;  %v3428_v27 = vpop.f32.mrb[21].mxu1 }
 0x28e   : > { %v3549_v33 = vsel %vm3516_vm2, %v3500_v17, %v3533_v2  ;;  %v3553_v41 = vsel %vm3520_vm3, %v3504_v16, %v3537_v50  ;;  %v3501_v42 = vadd.f32 %v3457_v13, %v10423_v37  ;;  %v3505_v40 = vadd.f32 %v3493_v23, %v10440_v12  ;;  %v3324_v38 = vpop.f32.mrb[22].mxu0  ;;  %v3430_v44 = vpop.f32.mrb[22].mxu1  ;;  %v9145_v17 = vld [vmem:[%s9792_s19 + $0xe2c] ss:$16 sps:$4 sm:$0xff]  }
 0x28f   : > { %v10503_v45 = vpack.c.bf16 %v3553_v41, %v3549_v33  ;;  %v3551_v35 = vsel %vm3518_vm4, %v3502_v18, %v3535_v55  ;;  %v3555_v53 = vsel %vm3522_vm5, %v3506_v22, %v3539_v62  ;;  %v3503_v60 = vadd.f32 %v3463_v21, %v10425_v63  ;;  %v3326_v52 = vpop.f32.mrb[23].mxu0  ;;  %v10506_v48 = vpop.f32.mrb[23].mxu1  ;;  %v9143_v55 = vld [vmem:[%s9792_s19 + $0xe28] ss:$16 sps:$4 sm:$0xff]  }
 0x290   : > { %v10508_v49 = vpack.c.bf16 %v3555_v53, %v3551_v35  ;;  %vm3517_vm6 = vcmp.ge.f32.partialorder %v3501_v42, 0.0  ;;  %vm3521_vm7 = vcmp.ge.f32.partialorder %v3505_v40, 0.0  ;;  %v3534_v37 = vmul.f32 %v10483_v59, %v3501_v42 }
 0x291   : > { %v3538_v12 = vmul.f32 %v10483_v59, %v3505_v40  ;;  %v3507_v28 = vadd.f32 %v3495_v46, %v10442_v14  ;;  %vm3519_vm8 = vcmp.ge.f32.partialorder %v3503_v60, 0.0  ;;  %v3536_v36 = vmul.f32 %v10483_v59, %v3503_v60 }
 0x292   : > { %v3550_v63 = vsel %vm3517_vm6, %v3501_v42, %v3534_v37  ;;  %v3464_v54 = vrot.slane %v3320_v51, 1  ;;  %v3470_v56 = vrot.slane %v3426_v1, 1  ;;  %v3473_v8 = vrot.slane %v3428_v27, 1 }
 0x293   : > { %v3554_v57 = vsel %vm3521_vm7, %v3505_v40, %v3538_v12  ;;  %vm3523_vm9 = vcmp.ge.f32.partialorder %v3507_v28, 0.0  ;;  %v3540_v58 = vmul.f32 %v10483_v59, %v3507_v28  ;;  %v3552_v61 = vsel %vm3519_vm8, %v3503_v60, %v3536_v36  ;;  %v9157_v12 = vld [vmem:[%s9792_s19 + $0xe6c] ss:$16 sps:$4 sm:$0xff]  }
 0x294   : > { %v10517_v0 = vpack.c.bf16 %v3554_v57, %v3550_v63  ;;  %v3465_v11 = vrot.slane %v3324_v38, 1  ;;  %v3471_v14 = vrot.slane %v3430_v44, 1  ;;  %v3467_v4 = vrot.slane %v3322_v24, 1  ;;  %v9148_v24 = vld [vmem:[%s9792_s19 + $0xe44] ss:$16 sps:$4 sm:$0xff]  }
 0x295   : > { %v3556_v9 = vsel %vm3523_vm9, %v3507_v28, %v3540_v58  ;;  %v3468_v15 = vrot.slane %v3326_v52, 1  ;;  %v3474_v5 = vrot.slane %v10506_v48, 1  ;;  %v9146_v52 = vld [vmem:[%s9792_s19 + $0xe40] ss:$16 sps:$4 sm:$0xff]   ;;  %v9149_v48 = vld [vmem:[%s9792_s19 + $0xe48] ss:$16 sps:$4 sm:$0xff]  }
 0x296   : > { %v10522_v16 = vpack.c.bf16 %v3556_v9, %v3552_v61  ;;  %v3466_v18 = vsel %vm3451_vm1, %v3464_v54, %v3465_v11  ;;  %v3496_v22 = vsel %vm3451_vm1, %v3465_v11, 0.0  ;;  %v3472_v13 = vsel %vm3451_vm1, %v3470_v56, %v3471_v14  ;;  %4396 = vmatprep.mubr.bf16.mxu0 %v10517_v0  ;;  %4502 = vmatprep.mubr.bf16.mxu1 %v10517_v0  ;;  %v9163_v11 = vld [vmem:[%s9792_s19 + $0xe8c] ss:$16 sps:$4 sm:$0xff]   ;;  %v9166_v9 = vld [vmem:[%s9792_s19 + $0xea4] ss:$16 sps:$4 sm:$0xff]  }
 0x297   : > { %v3508_v23 = vadd.f32 %v3466_v18, %v10451_v25  ;;  %v3512_v21 = vadd.f32 %v3496_v22, %v10465_v30  ;;  %v3498_v46 = vsel %vm3451_vm1, %v3471_v14, 0.0  ;;  %v3510_v2 = vadd.f32 %v3472_v13, %v10454_v10  ;;  %4397 = vmatmul.mubr.bf16.vlgmr.msra.gmra.mrb[24].mxu0 %v10503_v45  ;;  %4503 = vmatmul.mubr.bf16.vlgmr.msra.gmra.mrb[24].mxu1 %v10503_v45  ;;  %v9140_v30 = vld [vmem:[%s9792_s19 + $0xe20] ss:$16 sps:$4 sm:$0xff]   ;;  %v9175_v18 = vld [vmem:[%s9792_s19 + $0xecc] ss:$16 sps:$4 sm:$0xff]  }
 0x298   : > { %v3514_v50 = vadd.f32 %v3498_v46, %v10468_v29  ;;  %v3469_v51 = vsel %vm3451_vm1, %v3467_v4, %v3468_v15  ;;  %v3497_v1 = vsel %vm3451_vm1, %v3468_v15, 0.0  ;;  %v3475_v25 = vsel %vm3451_vm1, %v3473_v8, %v3474_v5  ;;  %4418 = vmatpush1.bf16.msra.mxu0 %v9134_v6  ;;  %4524 = vmatpush1.bf16.msra.mxu1 %v9137_v7  ;;  %v9151_v29 = vld [vmem:[%s9792_s19 + $0xe4c] ss:$16 sps:$4 sm:$0xff]   ;;  %v9155_v6 = vld [vmem:[%s9792_s19 + $0xe68] ss:$16 sps:$4 sm:$0xff]  }
 0x299   : > { %vm3524_vm10 = vcmp.ge.f32.partialorder %v3508_v23, 0.0  ;;  %vm3528_vm11 = vcmp.ge.f32.partialorder %v3512_v21, 0.0  ;;  %v3541_v10 = vmul.f32 %v10483_v59, %v3508_v23  ;;  %v3545_v62 = vmul.f32 %v10483_v59, %v3512_v21  ;;  %4419 = vmatprep.subr.bf16.mxu0 %v9142_v3  ;;  %4525 = vmatprep.subr.bf16.mxu1 %v9145_v17  ;;  %v9160_v8 = vld [vmem:[%s9792_s19 + $0xe84] ss:$16 sps:$4 sm:$0xff]   ;;  %v9161_v3 = vld [vmem:[%s9792_s19 + $0xe88] ss:$16 sps:$4 sm:$0xff]  }
 0x29a   : > { %vm3526_vm12 = vcmp.ge.f32.partialorder %v3510_v2, 0.0  ;;  %vm3530_vm13 = vcmp.ge.f32.partialorder %v3514_v50, 0.0  ;;  %v3543_v27 = vmul.f32 %v10483_v59, %v3510_v2  ;;  %v3547_v33 = vmul.f32 %v10483_v59, %v3514_v50  ;;  %v9169_v4 = vld [vmem:[%s9792_s19 + $0xeac] ss:$16 sps:$4 sm:$0xff]   ;;  %v9164_v15 = vld [vmem:[%s9792_s19 + $0xea0] ss:$16 sps:$4 sm:$0xff]  }
 0x29b   : > { %v3557_v41 = vsel %vm3524_vm10, %v3508_v23, %v3541_v10  ;;  %v3561_v42 = vsel %vm3528_vm11, %v3512_v21, %v3545_v62  ;;  %v3509_v40 = vadd.f32 %v3469_v51, %v10457_v19  ;;  %v3513_v38 = vadd.f32 %v3497_v1, %v10472_v32  ;;  %v9154_v32 = vld [vmem:[%s9792_s19 + $0xe64] ss:$16 sps:$4 sm:$0xff]   ;;  %v9170_v22 = vld [vmem:[%s9792_s19 + $0xec0] ss:$16 sps:$4 sm:$0xff]   ;;  %v9173_v13 = vld [vmem:[%s9792_s19 + $0xec8] ss:$16 sps:$4 sm:$0xff]  }
 0x29c   : > { %v10549_v44 = vpack.c.bf16 %v3561_v42, %v3557_v41  ;;  %v3559_v35 = vsel %vm3526_vm12, %v3510_v2, %v3543_v27  ;;  %v3563_v53 = vsel %vm3530_vm13, %v3514_v50, %v3547_v33  ;;  %v3499_v60 = vsel %vm3451_vm1, %v3474_v5, 0.0  ;;  %4420 = vmatpush1.bf16.msra.mxu0 %v9140_v30  ;;  %4526 = vmatpush1.bf16.msra.mxu1 %v9143_v55  ;;  %v9167_v5 = vld [vmem:[%s9792_s19 + $0xea8] ss:$16 sps:$4 sm:$0xff]   ;;  %v9172_v17 = vld [vmem:[%s9792_s19 + $0xec4] ss:$16 sps:$4 sm:$0xff]  }
 0x29d   : > { %v10554_v37 = vpack.c.bf16 %v3563_v53, %v3559_v35  ;;  %vm3525_vm14 = vcmp.ge.f32.partialorder %v3509_v40, 0.0  ;;  %vm3529_vm15 = vcmp.ge.f32.partialorder %v3513_v38, 0.0  ;;  %v3542_v19 = vmul.f32 %v10483_v59, %v3509_v40  ;;  %4421 = vmatprep.subr.bf16.mxu0 %v9148_v24  ;;  %4527 = vmatprep.subr.bf16.mxu1 %v9151_v29  ;;  %v9178_v23 = vld [vmem:[%s9792_s19 + $0xee4] ss:$16 sps:$4 sm:$0xff]   ;;  %v9181_v21 = vld [vmem:[%s9792_s19 + $0xeec] ss:$16 sps:$4 sm:$0xff]  }
 0x29e   : > { %v3546_v28 = vmul.f32 %v10483_v59, %v3513_v38  ;;  %v3511_v36 = vadd.f32 %v3475_v25, %v10459_v20  ;;  %v3515_v63 = vadd.f32 %v3499_v60, %v10474_v43  ;;  %v9152_v43 = vld [vmem:[%s9792_s19 + $0xe60] ss:$16 sps:$4 sm:$0xff]   ;;  %v9179_v2 = vld [vmem:[%s9792_s19 + $0xee8] ss:$16 sps:$4 sm:$0xff]   ;;  %v9184_v50 = vld [vmem:[%s9792_s19 + $0xf04] ss:$16 sps:$4 sm:$0xff]  }
 0x29f   : > { %v3558_v54 = vsel %vm3525_vm14, %v3509_v40, %v3542_v19  ;;  %v9176_v46 = vld [vmem:[%s9792_s19 + $0xee0] ss:$16 sps:$4 sm:$0xff]   ;;  %v9187_v51 = vld [vmem:[%s9792_s19 + $0xf0c] ss:$16 sps:$4 sm:$0xff]   ;;  %v9185_v25 = vld [vmem:[%s9792_s19 + $0xf08] ss:$16 sps:$4 sm:$0xff]  }
 0x2a0   : > { %v3562_v56 = vsel %vm3529_vm15, %v3513_v38, %v3546_v28  ;;  %vm3527_vm2 = vcmp.ge.f32.partialorder %v3511_v36, 0.0  ;;  %vm3531_vm3 = vcmp.ge.f32.partialorder %v3515_v63, 0.0  ;;  %v3544_v57 = vmul.f32 %v10483_v59, %v3511_v36  ;;  %4422 = vmatpush1.bf16.msra.mxu0 %v9146_v52  ;;  %4528 = vmatpush1.bf16.msra.mxu1 %v9149_v48  ;;  %v9182_v1 = vld [vmem:[%s9792_s19 + $0xf00] ss:$16 sps:$4 sm:$0xff]   ;;  %v9190_v30 = vld [vmem:[%s9792_s19 + $0xf24] ss:$16 sps:$4 sm:$0xff]  }
 0x2a1   : > { %v10563_v58 = vpack.c.bf16 %v3562_v56, %v3558_v54  ;;  %v3548_v61 = vmul.f32 %v10483_v59, %v3515_v63  ;;  %4423 = vmatprep.subr.bf16.mxu0 %v9154_v32  ;;  %4529 = vmatprep.subr.bf16.mxu1 %v9157_v12  ;;  %v9158_v59 = vld [vmem:[%s9792_s19 + $0xe80] ss:$16 sps:$4 sm:$0xff]   ;;  %v9193_v55 = vld [vmem:[%s9792_s19 + $0xf2c] ss:$16 sps:$4 sm:$0xff]   ;;  %v9191_v62 = vld [vmem:[%s9792_s19 + $0xf28] ss:$16 sps:$4 sm:$0xff]  }
 0x2a2   : > { %v3560_v20 = vsel %vm3527_vm2, %v3511_v36, %v3544_v57  ;;  %v9188_v10 = vld [vmem:[%s9792_s19 + $0xf20] ss:$16 sps:$4 sm:$0xff]   ;;  %v9196_v24 = vld [vmem:[%s9792_s19 + $0xf44] ss:$16 sps:$4 sm:$0xff]   ;;  %v9199_v29 = vld [vmem:[%s9792_s19 + $0xf4c] ss:$16 sps:$4 sm:$0xff]  }
 0x2a3   : > { %v3564_v7 = vsel %vm3531_vm3, %v3515_v63, %v3548_v61  ;;  %4406 = vmatprep.mubr.bf16.mxu0 %v10563_v58  ;;  %4512 = vmatprep.mubr.bf16.mxu1 %v10563_v58  ;;  %v9194_v27 = vld [vmem:[%s9792_s19 + $0xf40] ss:$16 sps:$4 sm:$0xff]   ;;  %v9197_v33 = vld [vmem:[%s9792_s19 + $0xf48] ss:$16 sps:$4 sm:$0xff]   ;;  %v9202_v41 = vld [vmem:[%s9792_s19 + $0xf64] ss:$16 sps:$4 sm:$0xff]  }
 0x2a4   : > { %v10572_v14 = vpack.c.bf16 %v3564_v7, %v3560_v20  ;;  %4407 = vmatmul.mubr.bf16.gmra.mrb[28].mxu0 %v10549_v44  ;;  %4513 = vmatmul.mubr.bf16.gmra.mrb[28].mxu1 %v10549_v44  ;;  %v9205_v42 = vld [vmem:[%s9792_s19 + $0xf6c] ss:$16 sps:$4 sm:$0xff]   ;;  %v9200_v40 = vld [vmem:[%s9792_s19 + $0xf60] ss:$16 sps:$4 sm:$0xff]   ;;  %v9203_v38 = vld [vmem:[%s9792_s19 + $0xf68] ss:$16 sps:$4 sm:$0xff]  }
 0x2a5   : > { %4449 = vmatprep.mubr.bf16.mxu0 %v10522_v16  ;;  %4555 = vmatprep.mubr.bf16.mxu1 %v10522_v16  ;;  %v9208_v35 = vld [vmem:[%s9792_s19 + $0xf84] ss:$16 sps:$4 sm:$0xff]   ;;  %v9211_v53 = vld [vmem:[%s9792_s19 + $0xf8c] ss:$16 sps:$4 sm:$0xff]   ;;  %v9206_v60 = vld [vmem:[%s9792_s19 + $0xf80] ss:$16 sps:$4 sm:$0xff]  }
 0x2a6   : > { %4424 = vmatpush1.bf16.msra.mxu0 %v9152_v43  ;;  %4530 = vmatpush1.bf16.msra.mxu1 %v9155_v6  ;;  %v9209_v52 = vld [vmem:[%s9792_s19 + $0xf88] ss:$16 sps:$4 sm:$0xff]   ;;  %v9214_v48 = vld [vmem:[%s9792_s19 + $0xfa4] ss:$16 sps:$4 sm:$0xff]   ;;  %v9217_v19 = vld [vmem:[%s9792_s19 + $0xfac] ss:$16 sps:$4 sm:$0xff]  }
 0x2a7   : > { %4425 = vmatprep.subr.bf16.mxu0 %v9160_v8  ;;  %4531 = vmatprep.subr.bf16.mxu1 %v9163_v11  ;;  %v9212_v32 = vld [vmem:[%s9792_s19 + $0xfa0] ss:$16 sps:$4 sm:$0xff]   ;;  %v9215_v12 = vld [vmem:[%s9792_s19 + $0xfa8] ss:$16 sps:$4 sm:$0xff]   ;;  %v9220_v28 = vld [vmem:[%s9792_s19 + $0xfc4] ss:$16 sps:$4 sm:$0xff]  }
 0x2a8   : > { %v9223_v36 = vld [vmem:[%s9792_s19 + $0xfcc] ss:$16 sps:$4 sm:$0xff]   ;;  %v9218_v63 = vld [vmem:[%s9792_s19 + $0xfc0] ss:$16 sps:$4 sm:$0xff]   ;;  %v9221_v54 = vld [vmem:[%s9792_s19 + $0xfc8] ss:$16 sps:$4 sm:$0xff]  }
 0x2a9   : > { %v9226_v56 = vld [vmem:[%s9792_s19 + $0xfe4] ss:$16 sps:$4 sm:$0xff]   ;;  %v9229_v57 = vld [vmem:[%s9792_s19 + $0xfec] ss:$16 sps:$4 sm:$0xff]   ;;  %v9224_v61 = vld [vmem:[%s9792_s19 + $0xfe0] ss:$16 sps:$4 sm:$0xff]  }
 0x2aa   : > { %4426 = vmatpush1.bf16.msra.mxu0 %v9158_v59  ;;  %4532 = vmatpush1.bf16.msra.mxu1 %v9161_v3  ;;  %v9227_v20 = vld [vmem:[%s9792_s19 + $0xfe8] ss:$16 sps:$4 sm:$0xff]   ;;  %v9232_v43 = vld [vmem:[%s9792_s19 + $0x1004] ss:$16 sps:$4 sm:$0xff]   ;;  %v9235_v6 = vld [vmem:[%s9792_s19 + $0x100c] ss:$16 sps:$4 sm:$0xff]  }
 0x2ab   : > { %4427 = vmatprep.subr.bf16.mxu0 %v9166_v9  ;;  %4533 = vmatprep.subr.bf16.mxu1 %v9169_v4  ;;  %v9230_v7 = vld [vmem:[%s9792_s19 + $0x1000] ss:$16 sps:$4 sm:$0xff]   ;;  %v9233_v8 = vld [vmem:[%s9792_s19 + $0x1008] ss:$16 sps:$4 sm:$0xff]   ;;  %v9238_v11 = vld [vmem:[%s9792_s19 + $0x1024] ss:$16 sps:$4 sm:$0xff]  }
 0x2ac   : > { %v9241_v59 = vld [vmem:[%s9792_s19 + $0x102c] ss:$16 sps:$4 sm:$0xff]   ;;  %v9236_v3 = vld [vmem:[%s9792_s19 + $0x1020] ss:$16 sps:$4 sm:$0xff]   ;;  %v9239_v9 = vld [vmem:[%s9792_s19 + $0x1028] ss:$16 sps:$4 sm:$0xff]  }
 0x2ad   : > { %v9244_v4 = vld [vmem:[%s9792_s19 + $0x1044] ss:$16 sps:$4 sm:$0xff]  }
 0x2ae   : > { %4428 = vmatpush1.bf16.msra.mxu0 %v9164_v15  ;;  %4534 = vmatpush1.bf16.msra.mxu1 %v9167_v5  ;;  %v9247_v15 = vld [vmem:[%s9792_s19 + $0x104c] ss:$16 sps:$4 sm:$0xff]   ;;  %v9242_v5 = vld [vmem:[%s9792_s19 + $0x1040] ss:$16 sps:$4 sm:$0xff]  }
 0x2af   : > { %4429 = vmatprep.subr.bf16.mxu0 %v9172_v17  ;;  %4535 = vmatprep.subr.bf16.mxu1 %v9175_v18  ;;  %v9245_v17 = vld [vmem:[%s9792_s19 + $0x1048] ss:$16 sps:$4 sm:$0xff]   ;;  %v9250_v18 = vld [vmem:[%s9792_s19 + $0x1064] ss:$16 sps:$4 sm:$0xff]  }
 0x2b2   : > { %4430 = vmatpush1.bf16.msra.mxu0 %v9170_v22  ;;  %4536 = vmatpush1.bf16.msra.mxu1 %v9173_v13  ;;  %v9253_v22 = vld [vmem:[%s9792_s19 + $0x106c] ss:$16 sps:$4 sm:$0xff]   ;;  %v9248_v13 = vld [vmem:[%s9792_s19 + $0x1060] ss:$16 sps:$4 sm:$0xff]  }
 0x2b3   : > { %4431 = vmatprep.subr.bf16.mxu0 %v9178_v23  ;;  %4537 = vmatprep.subr.bf16.mxu1 %v9181_v21  ;;  %v9251_v23 = vld [vmem:[%s9792_s19 + $0x1068] ss:$16 sps:$4 sm:$0xff]   ;;  %v9256_v21 = vld [vmem:[%s9792_s19 + $0x1084] ss:$16 sps:$4 sm:$0xff]  }
 0x2b6   : > { %4432 = vmatpush1.bf16.msra.mxu0 %v9176_v46  ;;  %4538 = vmatpush1.bf16.msra.mxu1 %v9179_v2  ;;  %v9259_v46 = vld [vmem:[%s9792_s19 + $0x108c] ss:$16 sps:$4 sm:$0xff]   ;;  %v9254_v2 = vld [vmem:[%s9792_s19 + $0x1080] ss:$16 sps:$4 sm:$0xff]  }
 0x2b7   : > { %4433 = vmatprep.subr.bf16.mxu0 %v9184_v50  ;;  %4539 = vmatprep.subr.bf16.mxu1 %v9187_v51  ;;  %v9257_v50 = vld [vmem:[%s9792_s19 + $0x1088] ss:$16 sps:$4 sm:$0xff]   ;;  %v9262_v51 = vld [vmem:[%s9792_s19 + $0x10a4] ss:$16 sps:$4 sm:$0xff]  }
 0x2ba   : > { %4434 = vmatpush1.bf16.msra.mxu0 %v9182_v1  ;;  %4540 = vmatpush1.bf16.msra.mxu1 %v9185_v25  ;;  %v9265_v1 = vld [vmem:[%s9792_s19 + $0x10ac] ss:$16 sps:$4 sm:$0xff]   ;;  %v9260_v25 = vld [vmem:[%s9792_s19 + $0x10a0] ss:$16 sps:$4 sm:$0xff]  }
 0x2bb   : > { %4435 = vmatprep.subr.bf16.mxu0 %v9190_v30  ;;  %4541 = vmatprep.subr.bf16.mxu1 %v9193_v55  ;;  %v9263_v30 = vld [vmem:[%s9792_s19 + $0x10a8] ss:$16 sps:$4 sm:$0xff]   ;;  %v9268_v55 = vld [vmem:[%s9792_s19 + $0x10c4] ss:$16 sps:$4 sm:$0xff]  }
 0x2be   : > { %4436 = vmatpush1.bf16.msra.mxu0 %v9188_v10  ;;  %4542 = vmatpush1.bf16.msra.mxu1 %v9191_v62  ;;  %v9271_v10 = vld [vmem:[%s9792_s19 + $0x10cc] ss:$16 sps:$4 sm:$0xff]   ;;  %v9266_v62 = vld [vmem:[%s9792_s19 + $0x10c0] ss:$16 sps:$4 sm:$0xff]  }
 0x2bf   : > { %4437 = vmatprep.subr.bf16.mxu0 %v9196_v24  ;;  %4543 = vmatprep.subr.bf16.mxu1 %v9199_v29  ;;  %v9269_v24 = vld [vmem:[%s9792_s19 + $0x10c8] ss:$16 sps:$4 sm:$0xff]   ;;  %v9274_v29 = vld [vmem:[%s9792_s19 + $0x10e4] ss:$16 sps:$4 sm:$0xff]  }
 0x2c2   : > { %4438 = vmatpush1.bf16.msra.mxu0 %v9194_v27  ;;  %4544 = vmatpush1.bf16.msra.mxu1 %v9197_v33  ;;  %v9277_v27 = vld [vmem:[%s9792_s19 + $0x10ec] ss:$16 sps:$4 sm:$0xff]   ;;  %v9272_v33 = vld [vmem:[%s9792_s19 + $0x10e0] ss:$16 sps:$4 sm:$0xff]  }
 0x2c3   : > { %4439 = vmatprep.subr.bf16.mxu0 %v9202_v41  ;;  %4545 = vmatprep.subr.bf16.mxu1 %v9205_v42  ;;  %v9275_v41 = vld [vmem:[%s9792_s19 + $0x10e8] ss:$16 sps:$4 sm:$0xff]   ;;  %v9280_v42 = vld [vmem:[%s9792_s19 + $0x1104] ss:$16 sps:$4 sm:$0xff]  }
 0x2c6   : > { %4440 = vmatpush1.bf16.msra.mxu0 %v9200_v40  ;;  %4546 = vmatpush1.bf16.msra.mxu1 %v9203_v38  ;;  %v9283_v40 = vld [vmem:[%s9792_s19 + $0x110c] ss:$16 sps:$4 sm:$0xff]   ;;  %v9278_v38 = vld [vmem:[%s9792_s19 + $0x1100] ss:$16 sps:$4 sm:$0xff]  }
 0x2c7   : > { %4441 = vmatprep.subr.bf16.mxu0 %v9208_v35  ;;  %4547 = vmatprep.subr.bf16.mxu1 %v9211_v53  ;;  %v9281_v35 = vld [vmem:[%s9792_s19 + $0x1108] ss:$16 sps:$4 sm:$0xff]   ;;  %v9286_v53 = vld [vmem:[%s9792_s19 + $0x1124] ss:$16 sps:$4 sm:$0xff]  }
 0x2ca   : > { %4442 = vmatpush1.bf16.msra.mxu0 %v9206_v60  ;;  %4548 = vmatpush1.bf16.msra.mxu1 %v9209_v52  ;;  %v9289_v60 = vld [vmem:[%s9792_s19 + $0x112c] ss:$16 sps:$4 sm:$0xff]   ;;  %v9284_v52 = vld [vmem:[%s9792_s19 + $0x1120] ss:$16 sps:$4 sm:$0xff]  }
 0x2cb   : > { %4443 = vmatprep.subr.bf16.mxu0 %v9214_v48  ;;  %4549 = vmatprep.subr.bf16.mxu1 %v9217_v19  ;;  %v9287_v48 = vld [vmem:[%s9792_s19 + $0x1128] ss:$16 sps:$4 sm:$0xff]   ;;  %v9292_v19 = vld [vmem:[%s9792_s19 + $0x1144] ss:$16 sps:$4 sm:$0xff]  }
 0x2ce   : > { %4444 = vmatpush1.bf16.msra.mxu0 %v9212_v32  ;;  %4550 = vmatpush1.bf16.msra.mxu1 %v9215_v12  ;;  %v9295_v32 = vld [vmem:[%s9792_s19 + $0x114c] ss:$16 sps:$4 sm:$0xff]   ;;  %v9290_v12 = vld [vmem:[%s9792_s19 + $0x1140] ss:$16 sps:$4 sm:$0xff]  }
 0x2cf   : > { %4445 = vmatprep.subr.bf16.mxu0 %v9220_v28  ;;  %4551 = vmatprep.subr.bf16.mxu1 %v9223_v36  ;;  %v9293_v28 = vld [vmem:[%s9792_s19 + $0x1148] ss:$16 sps:$4 sm:$0xff]   ;;  %v9298_v36 = vld [vmem:[%s9792_s19 + $0x1164] ss:$16 sps:$4 sm:$0xff]  }
 0x2d2   : > { %4446 = vmatpush1.bf16.msra.mxu0 %v9218_v63  ;;  %4552 = vmatpush1.bf16.msra.mxu1 %v9221_v54  ;;  %v9301_v63 = vld [vmem:[%s9792_s19 + $0x116c] ss:$16 sps:$4 sm:$0xff]   ;;  %v9296_v54 = vld [vmem:[%s9792_s19 + $0x1160] ss:$16 sps:$4 sm:$0xff]  }
 0x2d3   : > { %4447 = vmatprep.subr.bf16.mxu0 %v9226_v56  ;;  %4553 = vmatprep.subr.bf16.mxu1 %v9229_v57  ;;  %v9299_v56 = vld [vmem:[%s9792_s19 + $0x1168] ss:$16 sps:$4 sm:$0xff]   ;;  %v9304_v57 = vld [vmem:[%s9792_s19 + $0x1184] ss:$16 sps:$4 sm:$0xff]  }
 0x2d6   : > { %4448 = vmatpush1.bf16.msra.mxu0 %v9224_v61  ;;  %4554 = vmatpush1.bf16.msra.mxu1 %v9227_v20  ;;  %v9307_v61 = vld [vmem:[%s9792_s19 + $0x118c] ss:$16 sps:$4 sm:$0xff]   ;;  %v9302_v20 = vld [vmem:[%s9792_s19 + $0x1180] ss:$16 sps:$4 sm:$0xff]  }
 0x2d7   : > { %5425 = vmatprep.subr.bf16.mxu0 %v9232_v43  ;;  %5531 = vmatprep.subr.bf16.mxu1 %v9235_v6  ;;  %v9305_v43 = vld [vmem:[%s9792_s19 + $0x1188] ss:$16 sps:$4 sm:$0xff]   ;;  %v9310_v6 = vld [vmem:[%s9792_s19 + $0x11a4] ss:$16 sps:$4 sm:$0xff]  }
 0x2d9   : > { %4450 = vmatmul.mubr.bf16.vlgmr.msra.gmra.mrb[24].mxu0 %v10508_v49  ;;  %4556 = vmatmul.mubr.bf16.vlgmr.msra.gmra.mrb[24].mxu1 %v10508_v49 }
 0x2da   : > { %4459 = vmatprep.mubr.bf16.mxu0 %v10572_v14  ;;  %4565 = vmatprep.mubr.bf16.mxu1 %v10572_v14 }
 0x2db   : > { %5426 = vmatpush1.bf16.msra.mxu0 %v9230_v7  ;;  %5532 = vmatpush1.bf16.msra.mxu1 %v9233_v8  ;;  %v9313_v7 = vld [vmem:[%s9792_s19 + $0x11ac] ss:$16 sps:$4 sm:$0xff]   ;;  %v9308_v8 = vld [vmem:[%s9792_s19 + $0x11a0] ss:$16 sps:$4 sm:$0xff]  }
 0x2dc   : > { %5427 = vmatprep.subr.bf16.mxu0 %v9238_v11  ;;  %5533 = vmatprep.subr.bf16.mxu1 %v9241_v59  ;;  %v9311_v11 = vld [vmem:[%s9792_s19 + $0x11a8] ss:$16 sps:$4 sm:$0xff]   ;;  %v9316_v59 = vld [vmem:[%s9792_s19 + $0x11c4] ss:$16 sps:$4 sm:$0xff]  }
 0x2df   : > { %5428 = vmatpush1.bf16.msra.mxu0 %v9236_v3  ;;  %5534 = vmatpush1.bf16.msra.mxu1 %v9239_v9  ;;  %v9319_v3 = vld [vmem:[%s9792_s19 + $0x11cc] ss:$16 sps:$4 sm:$0xff]   ;;  %v9314_v9 = vld [vmem:[%s9792_s19 + $0x11c0] ss:$16 sps:$4 sm:$0xff]  }
 0x2e0   : > { %5429 = vmatprep.subr.bf16.mxu0 %v9244_v4  ;;  %5535 = vmatprep.subr.bf16.mxu1 %v9247_v15  ;;  %v9317_v4 = vld [vmem:[%s9792_s19 + $0x11c8] ss:$16 sps:$4 sm:$0xff]   ;;  %v9322_v15 = vld [vmem:[%s9792_s19 + $0x11e4] ss:$16 sps:$4 sm:$0xff]  }
 0x2e1   : > { %4460 = vmatmul.mubr.bf16.gmra.mrb[28].mxu0 %v10554_v37  ;;  %4566 = vmatmul.mubr.bf16.gmra.mrb[28].mxu1 %v10554_v37 }
 0x2e2   : > { %5457 = vmatprep.mubr.bf16.mxu0 %v10517_v0  ;;  %5563 = vmatprep.mubr.bf16.mxu1 %v10517_v0 }
 0x2e3   : > { %5430 = vmatpush1.bf16.msra.mxu0 %v9242_v5  ;;  %5536 = vmatpush1.bf16.msra.mxu1 %v9245_v17  ;;  %v9325_v5 = vld [vmem:[%s9792_s19 + $0x11ec] ss:$16 sps:$4 sm:$0xff]   ;;  %v9320_v17 = vld [vmem:[%s9792_s19 + $0x11e0] ss:$16 sps:$4 sm:$0xff]  }
 0x2e4   : > { %5431 = vmatprep.subr.bf16.mxu0 %v9250_v18  ;;  %5537 = vmatprep.subr.bf16.mxu1 %v9253_v22  ;;  %v9323_v18 = vld [vmem:[%s9792_s19 + $0x11e8] ss:$16 sps:$4 sm:$0xff]   ;;  %v9328_v22 = vld [vmem:[%s9792_s19 + $0x1204] ss:$16 sps:$4 sm:$0xff]  }
 0x2e7   : > { %5432 = vmatpush1.bf16.msra.mxu0 %v9248_v13  ;;  %5538 = vmatpush1.bf16.msra.mxu1 %v9251_v23  ;;  %v9331_v13 = vld [vmem:[%s9792_s19 + $0x120c] ss:$16 sps:$4 sm:$0xff]   ;;  %v9326_v23 = vld [vmem:[%s9792_s19 + $0x1200] ss:$16 sps:$4 sm:$0xff]  }
 0x2e8   : > { %5433 = vmatprep.subr.bf16.mxu0 %v9256_v21  ;;  %5539 = vmatprep.subr.bf16.mxu1 %v9259_v46  ;;  %v9329_v21 = vld [vmem:[%s9792_s19 + $0x1208] ss:$16 sps:$4 sm:$0xff]   ;;  %v9334_v46 = vld [vmem:[%s9792_s19 + $0x1224] ss:$16 sps:$4 sm:$0xff]  }
 0x2eb   : > { %5434 = vmatpush1.bf16.msra.mxu0 %v9254_v2  ;;  %5540 = vmatpush1.bf16.msra.mxu1 %v9257_v50  ;;  %v9337_v2 = vld [vmem:[%s9792_s19 + $0x122c] ss:$16 sps:$4 sm:$0xff]   ;;  %v9332_v50 = vld [vmem:[%s9792_s19 + $0x1220] ss:$16 sps:$4 sm:$0xff]  }
 0x2ec   : > { %5435 = vmatprep.subr.bf16.mxu0 %v9262_v51  ;;  %5541 = vmatprep.subr.bf16.mxu1 %v9265_v1  ;;  %v9335_v51 = vld [vmem:[%s9792_s19 + $0x1228] ss:$16 sps:$4 sm:$0xff]   ;;  %v9340_v1 = vld [vmem:[%s9792_s19 + $0x1244] ss:$16 sps:$4 sm:$0xff]  }
 0x2ef   : > { %5436 = vmatpush1.bf16.msra.mxu0 %v9260_v25  ;;  %5542 = vmatpush1.bf16.msra.mxu1 %v9263_v30  ;;  %v9343_v25 = vld [vmem:[%s9792_s19 + $0x124c] ss:$16 sps:$4 sm:$0xff]   ;;  %v9338_v30 = vld [vmem:[%s9792_s19 + $0x1240] ss:$16 sps:$4 sm:$0xff]  }
 0x2f0   : > { %5437 = vmatprep.subr.bf16.mxu0 %v9268_v55  ;;  %5543 = vmatprep.subr.bf16.mxu1 %v9271_v10  ;;  %v9341_v55 = vld [vmem:[%s9792_s19 + $0x1248] ss:$16 sps:$4 sm:$0xff]   ;;  %v9346_v10 = vld [vmem:[%s9792_s19 + $0x1264] ss:$16 sps:$4 sm:$0xff]  }
 0x2f3   : > { %5438 = vmatpush1.bf16.msra.mxu0 %v9266_v62  ;;  %5544 = vmatpush1.bf16.msra.mxu1 %v9269_v24  ;;  %v9349_v62 = vld [vmem:[%s9792_s19 + $0x126c] ss:$16 sps:$4 sm:$0xff]   ;;  %v9344_v24 = vld [vmem:[%s9792_s19 + $0x1260] ss:$16 sps:$4 sm:$0xff]  }
 0x2f4   : > { %5439 = vmatprep.subr.bf16.mxu0 %v9274_v29  ;;  %5545 = vmatprep.subr.bf16.mxu1 %v9277_v27  ;;  %v9347_v29 = vld [vmem:[%s9792_s19 + $0x1268] ss:$16 sps:$4 sm:$0xff]   ;;  %v9352_v27 = vld [vmem:[%s9792_s19 + $0x1284] ss:$16 sps:$4 sm:$0xff]  }
 0x2f7   : > { %5440 = vmatpush1.bf16.msra.mxu0 %v9272_v33  ;;  %5546 = vmatpush1.bf16.msra.mxu1 %v9275_v41  ;;  %v9355_v33 = vld [vmem:[%s9792_s19 + $0x128c] ss:$16 sps:$4 sm:$0xff]   ;;  %v9350_v41 = vld [vmem:[%s9792_s19 + $0x1280] ss:$16 sps:$4 sm:$0xff]  }
 0x2f8   : > { %5441 = vmatprep.subr.bf16.mxu0 %v9280_v42  ;;  %5547 = vmatprep.subr.bf16.mxu1 %v9283_v40  ;;  %v9353_v42 = vld [vmem:[%s9792_s19 + $0x1288] ss:$16 sps:$4 sm:$0xff]   ;;  %v9358_v40 = vld [vmem:[%s9792_s19 + $0x12a4] ss:$16 sps:$4 sm:$0xff]  }
 0x2fb   : > { %5442 = vmatpush1.bf16.msra.mxu0 %v9278_v38  ;;  %5548 = vmatpush1.bf16.msra.mxu1 %v9281_v35  ;;  %v9361_v38 = vld [vmem:[%s9792_s19 + $0x12ac] ss:$16 sps:$4 sm:$0xff]   ;;  %v9356_v35 = vld [vmem:[%s9792_s19 + $0x12a0] ss:$16 sps:$4 sm:$0xff]  }
 0x2fc   : > { %5443 = vmatprep.subr.bf16.mxu0 %v9286_v53  ;;  %5549 = vmatprep.subr.bf16.mxu1 %v9289_v60  ;;  %v9359_v53 = vld [vmem:[%s9792_s19 + $0x12a8] ss:$16 sps:$4 sm:$0xff]   ;;  %v9364_v60 = vld [vmem:[%s9792_s19 + $0x12c4] ss:$16 sps:$4 sm:$0xff]  }
 0x2ff   : > { %5444 = vmatpush1.bf16.msra.mxu0 %v9284_v52  ;;  %5550 = vmatpush1.bf16.msra.mxu1 %v9287_v48  ;;  %v9367_v52 = vld [vmem:[%s9792_s19 + $0x12cc] ss:$16 sps:$4 sm:$0xff]   ;;  %v9362_v48 = vld [vmem:[%s9792_s19 + $0x12c0] ss:$16 sps:$4 sm:$0xff]  }
 0x300   : > { %5445 = vmatprep.subr.bf16.mxu0 %v9292_v19  ;;  %5551 = vmatprep.subr.bf16.mxu1 %v9295_v32  ;;  %v9365_v19 = vld [vmem:[%s9792_s19 + $0x12c8] ss:$16 sps:$4 sm:$0xff]   ;;  %v9370_v32 = vld [vmem:[%s9792_s19 + $0x12e4] ss:$16 sps:$4 sm:$0xff]  }
 0x303   : > { %5446 = vmatpush1.bf16.msra.mxu0 %v9290_v12  ;;  %5552 = vmatpush1.bf16.msra.mxu1 %v9293_v28  ;;  %v9373_v12 = vld [vmem:[%s9792_s19 + $0x12ec] ss:$16 sps:$4 sm:$0xff]   ;;  %v9368_v28 = vld [vmem:[%s9792_s19 + $0x12e0] ss:$16 sps:$4 sm:$0xff]  }
 0x304   : > { %5447 = vmatprep.subr.bf16.mxu0 %v9298_v36  ;;  %5553 = vmatprep.subr.bf16.mxu1 %v9301_v63  ;;  %v9371_v36 = vld [vmem:[%s9792_s19 + $0x12e8] ss:$16 sps:$4 sm:$0xff]   ;;  %v9376_v63 = vld [vmem:[%s9792_s19 + $0x1304] ss:$16 sps:$4 sm:$0xff]  }
 0x307   : > { %5448 = vmatpush1.bf16.msra.mxu0 %v9296_v54  ;;  %5554 = vmatpush1.bf16.msra.mxu1 %v9299_v56  ;;  %v9379_v54 = vld [vmem:[%s9792_s19 + $0x130c] ss:$16 sps:$4 sm:$0xff]   ;;  %v9374_v56 = vld [vmem:[%s9792_s19 + $0x1300] ss:$16 sps:$4 sm:$0xff]  }
 0x308   : > { %5449 = vmatprep.subr.bf16.mxu0 %v9304_v57  ;;  %5555 = vmatprep.subr.bf16.mxu1 %v9307_v61  ;;  %v9377_v57 = vld [vmem:[%s9792_s19 + $0x1308] ss:$16 sps:$4 sm:$0xff]   ;;  %v9382_v61 = vld [vmem:[%s9792_s19 + $0x1324] ss:$16 sps:$4 sm:$0xff]  }
 0x30b   : > { %5450 = vmatpush1.bf16.msra.mxu0 %v9302_v20  ;;  %5556 = vmatpush1.bf16.msra.mxu1 %v9305_v43  ;;  %v9385_v20 = vld [vmem:[%s9792_s19 + $0x132c] ss:$16 sps:$4 sm:$0xff]   ;;  %v9380_v43 = vld [vmem:[%s9792_s19 + $0x1320] ss:$16 sps:$4 sm:$0xff]  }
 0x30c   : > { %5451 = vmatprep.subr.bf16.mxu0 %v9310_v6  ;;  %5557 = vmatprep.subr.bf16.mxu1 %v9313_v7  ;;  %v9383_v6 = vld [vmem:[%s9792_s19 + $0x1328] ss:$16 sps:$4 sm:$0xff]   ;;  %v9388_v7 = vld [vmem:[%s9792_s19 + $0x1344] ss:$16 sps:$4 sm:$0xff]  }
 0x30f   : > { %5452 = vmatpush1.bf16.msra.mxu0 %v9308_v8  ;;  %5558 = vmatpush1.bf16.msra.mxu1 %v9311_v11  ;;  %v9391_v8 = vld [vmem:[%s9792_s19 + $0x134c] ss:$16 sps:$4 sm:$0xff]   ;;  %v9386_v11 = vld [vmem:[%s9792_s19 + $0x1340] ss:$16 sps:$4 sm:$0xff]  }
 0x310   : > { %5453 = vmatprep.subr.bf16.mxu0 %v9316_v59  ;;  %5559 = vmatprep.subr.bf16.mxu1 %v9319_v3  ;;  %v9389_v59 = vld [vmem:[%s9792_s19 + $0x1348] ss:$16 sps:$4 sm:$0xff]   ;;  %v9394_v3 = vld [vmem:[%s9792_s19 + $0x1364] ss:$16 sps:$4 sm:$0xff]  }
 0x313   : > { %5454 = vmatpush1.bf16.msra.mxu0 %v9314_v9  ;;  %5560 = vmatpush1.bf16.msra.mxu1 %v9317_v4  ;;  %v9397_v9 = vld [vmem:[%s9792_s19 + $0x136c] ss:$16 sps:$4 sm:$0xff]   ;;  %v9392_v4 = vld [vmem:[%s9792_s19 + $0x1360] ss:$16 sps:$4 sm:$0xff]  }
 0x314   : > { %5455 = vmatprep.subr.bf16.mxu0 %v9322_v15  ;;  %5561 = vmatprep.subr.bf16.mxu1 %v9325_v5  ;;  %v9395_v15 = vld [vmem:[%s9792_s19 + $0x1368] ss:$16 sps:$4 sm:$0xff]   ;;  %v9400_v5 = vld [vmem:[%s9792_s19 + $0x1384] ss:$16 sps:$4 sm:$0xff]  }
 0x317   : > { %5456 = vmatpush1.bf16.msra.mxu0 %v9320_v17  ;;  %5562 = vmatpush1.bf16.msra.mxu1 %v9323_v18  ;;  %v9403_v17 = vld [vmem:[%s9792_s19 + $0x138c] ss:$16 sps:$4 sm:$0xff]   ;;  %v9398_v18 = vld [vmem:[%s9792_s19 + $0x1380] ss:$16 sps:$4 sm:$0xff]  }
 0x318   : > { %5478 = vmatprep.subr.bf16.mxu0 %v9328_v22  ;;  %5584 = vmatprep.subr.bf16.mxu1 %v9331_v13  ;;  %v9401_v22 = vld [vmem:[%s9792_s19 + $0x1388] ss:$16 sps:$4 sm:$0xff]   ;;  %v9406_v13 = vld [vmem:[%s9792_s19 + $0x13a4] ss:$16 sps:$4 sm:$0xff]  }
 0x31a   : > { %5458 = vmatmul.mubr.bf16.vlgmr.msra.gmra.mrb[32].mxu0 %v10503_v45  ;;  %5564 = vmatmul.mubr.bf16.vlgmr.msra.gmra.mrb[32].mxu1 %v10503_v45 }
 0x31b   : > { %5467 = vmatprep.mubr.bf16.mxu0 %v10563_v58  ;;  %5479 = vmatpush1.bf16.msra.mxu0 %v9326_v23  ;;  %v9409_v23 = vld [vmem:[%s9792_s19 + $0x13ac] ss:$16 sps:$4 sm:$0xff]  }
 0x31c   : > { %5573 = vmatprep.mubr.bf16.mxu1 %v10563_v58  ;;  %5585 = vmatpush1.bf16.msra.mxu1 %v9329_v21  ;;  %v9404_v21 = vld [vmem:[%s9792_s19 + $0x13a0] ss:$16 sps:$4 sm:$0xff]  }
 0x31d   : > { %5480 = vmatprep.subr.bf16.mxu0 %v9334_v46  ;;  %5586 = vmatprep.subr.bf16.mxu1 %v9337_v2  ;;  %v9407_v46 = vld [vmem:[%s9792_s19 + $0x13a8] ss:$16 sps:$4 sm:$0xff]   ;;  %v9412_v2 = vld [vmem:[%s9792_s19 + $0x13c4] ss:$16 sps:$4 sm:$0xff]  }
 0x31f   : > { %5481 = vmatpush1.bf16.msra.mxu0 %v9332_v50  ;;  %v9415_v50 = vld [vmem:[%s9792_s19 + $0x13cc] ss:$16 sps:$4 sm:$0xff]  }
 0x320   : > { %5587 = vmatpush1.bf16.msra.mxu1 %v9335_v51  ;;  %5482 = vmatprep.subr.bf16.mxu0 %v9340_v1  ;;  %v9410_v51 = vld [vmem:[%s9792_s19 + $0x13c0] ss:$16 sps:$4 sm:$0xff]   ;;  %v9413_v1 = vld [vmem:[%s9792_s19 + $0x13c8] ss:$16 sps:$4 sm:$0xff]  }
 0x321   : > { %5588 = vmatprep.subr.bf16.mxu1 %v9343_v25  ;;  %v9418_v25 = vld [vmem:[%s9792_s19 + $0x13e4] ss:$16 sps:$4 sm:$0xff]  }
 0x322   : > { %5468 = vmatmul.mubr.bf16.gmra.mrb[36].mxu0 %v10549_v44  ;;  %5574 = vmatmul.mubr.bf16.gmra.mrb[36].mxu1 %v10549_v44 }
 0x323   : > { %5483 = vmatpush1.bf16.msra.mxu0 %v9338_v30  ;;  %5510 = vmatprep.mubr.bf16.mxu0 %v10522_v16  ;;  %v9421_v30 = vld [vmem:[%s9792_s19 + $0x13ec] ss:$16 sps:$4 sm:$0xff]  }
 0x324   : > { %5589 = vmatpush1.bf16.msra.mxu1 %v9341_v55  ;;  %5616 = vmatprep.mubr.bf16.mxu1 %v10522_v16  ;;  %v9416_v55 = vld [vmem:[%s9792_s19 + $0x13e0] ss:$16 sps:$4 sm:$0xff]  }
 0x325   : > { %5484 = vmatprep.subr.bf16.mxu0 %v9346_v10  ;;  %5590 = vmatprep.subr.bf16.mxu1 %v9349_v62  ;;  %v9419_v10 = vld [vmem:[%s9792_s19 + $0x13e8] ss:$16 sps:$4 sm:$0xff]   ;;  %v9424_v62 = vld [vmem:[%s9792_s19 + $0x1404] ss:$16 sps:$4 sm:$0xff]  }
 0x327   : > { %5485 = vmatpush1.bf16.msra.mxu0 %v9344_v24  ;;  %v9427_v24 = vld [vmem:[%s9792_s19 + $0x140c] ss:$16 sps:$4 sm:$0xff]  }
 0x328   : > { %5591 = vmatpush1.bf16.msra.mxu1 %v9347_v29  ;;  %5486 = vmatprep.subr.bf16.mxu0 %v9352_v27  ;;  %v9422_v29 = vld [vmem:[%s9792_s19 + $0x1400] ss:$16 sps:$4 sm:$0xff]   ;;  %v9425_v27 = vld [vmem:[%s9792_s19 + $0x1408] ss:$16 sps:$4 sm:$0xff]  }
 0x329   : > { %5592 = vmatprep.subr.bf16.mxu1 %v9355_v33  ;;  %v9430_v33 = vld [vmem:[%s9792_s19 + $0x1424] ss:$16 sps:$4 sm:$0xff]  }
 0x32b   : > { %5487 = vmatpush1.bf16.msra.mxu0 %v9350_v41  ;;  %v9433_v41 = vld [vmem:[%s9792_s19 + $0x142c] ss:$16 sps:$4 sm:$0xff]  }
 0x32c   : > { %5593 = vmatpush1.bf16.msra.mxu1 %v9353_v42  ;;  %5488 = vmatprep.subr.bf16.mxu0 %v9358_v40  ;;  %v9428_v42 = vld [vmem:[%s9792_s19 + $0x1420] ss:$16 sps:$4 sm:$0xff]   ;;  %v9431_v40 = vld [vmem:[%s9792_s19 + $0x1428] ss:$16 sps:$4 sm:$0xff]  }
 0x32d   : > { %5594 = vmatprep.subr.bf16.mxu1 %v9361_v38  ;;  %v9436_v38 = vld [vmem:[%s9792_s19 + $0x1444] ss:$16 sps:$4 sm:$0xff]  }
 0x32f   : > { %5489 = vmatpush1.bf16.msra.mxu0 %v9356_v35  ;;  %v9439_v35 = vld [vmem:[%s9792_s19 + $0x144c] ss:$16 sps:$4 sm:$0xff]  }
 0x330   : > { %5595 = vmatpush1.bf16.msra.mxu1 %v9359_v53  ;;  %5490 = vmatprep.subr.bf16.mxu0 %v9364_v60  ;;  %v9434_v53 = vld [vmem:[%s9792_s19 + $0x1440] ss:$16 sps:$4 sm:$0xff]   ;;  %v9437_v60 = vld [vmem:[%s9792_s19 + $0x1448] ss:$16 sps:$4 sm:$0xff]  }
 0x331   : > { %5596 = vmatprep.subr.bf16.mxu1 %v9367_v52  ;;  %v9442_v52 = vld [vmem:[%s9792_s19 + $0x1464] ss:$16 sps:$4 sm:$0xff]  }
 0x333   : > { %5491 = vmatpush1.bf16.msra.mxu0 %v9362_v48  ;;  %v9445_v48 = vld [vmem:[%s9792_s19 + $0x146c] ss:$16 sps:$4 sm:$0xff]  }
 0x334   : > { %5597 = vmatpush1.bf16.msra.mxu1 %v9365_v19  ;;  %5492 = vmatprep.subr.bf16.mxu0 %v9370_v32  ;;  %v9440_v19 = vld [vmem:[%s9792_s19 + $0x1460] ss:$16 sps:$4 sm:$0xff]   ;;  %v9443_v32 = vld [vmem:[%s9792_s19 + $0x1468] ss:$16 sps:$4 sm:$0xff]  }
 0x335   : > { %5598 = vmatprep.subr.bf16.mxu1 %v9373_v12  ;;  %v9448_v12 = vld [vmem:[%s9792_s19 + $0x1484] ss:$16 sps:$4 sm:$0xff]  }
 0x337   : > { %5493 = vmatpush1.bf16.msra.mxu0 %v9368_v28  ;;  %v9451_v28 = vld [vmem:[%s9792_s19 + $0x148c] ss:$16 sps:$4 sm:$0xff]  }
 0x338   : > { %5599 = vmatpush1.bf16.msra.mxu1 %v9371_v36  ;;  %5494 = vmatprep.subr.bf16.mxu0 %v9376_v63  ;;  %v9446_v36 = vld [vmem:[%s9792_s19 + $0x1480] ss:$16 sps:$4 sm:$0xff]   ;;  %v9449_v63 = vld [vmem:[%s9792_s19 + $0x1488] ss:$16 sps:$4 sm:$0xff]  }
 0x339   : > { %5600 = vmatprep.subr.bf16.mxu1 %v9379_v54  ;;  %v9454_v54 = vld [vmem:[%s9792_s19 + $0x14a4] ss:$16 sps:$4 sm:$0xff]  }
 0x33b   : > { %5495 = vmatpush1.bf16.msra.mxu0 %v9374_v56  ;;  %v9452_v56 = vld [vmem:[%s9792_s19 + $0x14a0] ss:$16 sps:$4 sm:$0xff]  }
 0x33c   : > { %5601 = vmatpush1.bf16.msra.mxu1 %v9377_v57  ;;  %5496 = vmatprep.subr.bf16.mxu0 %v9382_v61  ;;  %v9455_v57 = vld [vmem:[%s9792_s19 + $0x14a8] ss:$16 sps:$4 sm:$0xff]   ;;  %v9460_v61 = vld [vmem:[%s9792_s19 + $0x14c4] ss:$16 sps:$4 sm:$0xff]  }
 0x33d   : > { %5602 = vmatprep.subr.bf16.mxu1 %v9385_v20  ;;  %v9463_v20 = vld [vmem:[%s9792_s19 + $0x14cc] ss:$16 sps:$4 sm:$0xff]  }
 0x33f   : > { %5497 = vmatpush1.bf16.msra.mxu0 %v9380_v43  ;;  %v9458_v43 = vld [vmem:[%s9792_s19 + $0x14c0] ss:$16 sps:$4 sm:$0xff]  }
 0x340   : > { %5603 = vmatpush1.bf16.msra.mxu1 %v9383_v6  ;;  %5498 = vmatprep.subr.bf16.mxu0 %v9388_v7  ;;  %v9461_v6 = vld [vmem:[%s9792_s19 + $0x14c8] ss:$16 sps:$4 sm:$0xff]   ;;  %v9466_v7 = vld [vmem:[%s9792_s19 + $0x14e4] ss:$16 sps:$4 sm:$0xff]  }
 0x341   : > { %5604 = vmatprep.subr.bf16.mxu1 %v9391_v8  ;;  %v9469_v8 = vld [vmem:[%s9792_s19 + $0x14ec] ss:$16 sps:$4 sm:$0xff]  }
 0x343   : > { %5499 = vmatpush1.bf16.msra.mxu0 %v9386_v11  ;;  %v9464_v11 = vld [vmem:[%s9792_s19 + $0x14e0] ss:$16 sps:$4 sm:$0xff]  }
 0x344   : > { %5605 = vmatpush1.bf16.msra.mxu1 %v9389_v59  ;;  %5500 = vmatprep.subr.bf16.mxu0 %v9394_v3  ;;  %v9467_v59 = vld [vmem:[%s9792_s19 + $0x14e8] ss:$16 sps:$4 sm:$0xff]   ;;  %v9472_v3 = vld [vmem:[%s9792_s19 + $0x1504] ss:$16 sps:$4 sm:$0xff]  }
 0x345   : > { %5606 = vmatprep.subr.bf16.mxu1 %v9397_v9  ;;  %v9475_v9 = vld [vmem:[%s9792_s19 + $0x150c] ss:$16 sps:$4 sm:$0xff]  }
 0x347   : > { %5501 = vmatpush1.bf16.msra.mxu0 %v9392_v4  ;;  %v9470_v4 = vld [vmem:[%s9792_s19 + $0x1500] ss:$16 sps:$4 sm:$0xff]  }
 0x348   : > { %5607 = vmatpush1.bf16.msra.mxu1 %v9395_v15  ;;  %5502 = vmatprep.subr.bf16.mxu0 %v9400_v5  ;;  %v9473_v15 = vld [vmem:[%s9792_s19 + $0x1508] ss:$16 sps:$4 sm:$0xff]   ;;  %v9478_v5 = vld [vmem:[%s9792_s19 + $0x1524] ss:$16 sps:$4 sm:$0xff]  }
 0x349   : > { %5608 = vmatprep.subr.bf16.mxu1 %v9403_v17  ;;  %v9481_v17 = vld [vmem:[%s9792_s19 + $0x152c] ss:$16 sps:$4 sm:$0xff]  }
 0x34b   : > { %5503 = vmatpush1.bf16.msra.mxu0 %v9398_v18  ;;  %v9476_v18 = vld [vmem:[%s9792_s19 + $0x1520] ss:$16 sps:$4 sm:$0xff]  }
 0x34c   : > { %5609 = vmatpush1.bf16.msra.mxu1 %v9401_v22  ;;  %5504 = vmatprep.subr.bf16.mxu0 %v9406_v13  ;;  %v9479_v22 = vld [vmem:[%s9792_s19 + $0x1528] ss:$16 sps:$4 sm:$0xff]   ;;  %v9484_v13 = vld [vmem:[%s9792_s19 + $0x1544] ss:$16 sps:$4 sm:$0xff]  }
 0x34d   : > { %5610 = vmatprep.subr.bf16.mxu1 %v9409_v23  ;;  %v9487_v23 = vld [vmem:[%s9792_s19 + $0x154c] ss:$16 sps:$4 sm:$0xff]  }
 0x34f   : > { %5505 = vmatpush1.bf16.msra.mxu0 %v9404_v21  ;;  %v9482_v21 = vld [vmem:[%s9792_s19 + $0x1540] ss:$16 sps:$4 sm:$0xff]  }
 0x350   : > { %5611 = vmatpush1.bf16.msra.mxu1 %v9407_v46  ;;  %5506 = vmatprep.subr.bf16.mxu0 %v9412_v2  ;;  %v9485_v46 = vld [vmem:[%s9792_s19 + $0x1548] ss:$16 sps:$4 sm:$0xff]   ;;  %v9490_v2 = vld [vmem:[%s9792_s19 + $0x1564] ss:$16 sps:$4 sm:$0xff]  }
 0x351   : > { %5612 = vmatprep.subr.bf16.mxu1 %v9415_v50  ;;  %v9493_v50 = vld [vmem:[%s9792_s19 + $0x156c] ss:$16 sps:$4 sm:$0xff]  }
 0x353   : > { %5507 = vmatpush1.bf16.msra.mxu0 %v9410_v51  ;;  %v9488_v51 = vld [vmem:[%s9792_s19 + $0x1560] ss:$16 sps:$4 sm:$0xff]  }
 0x354   : > { %5613 = vmatpush1.bf16.msra.mxu1 %v9413_v1  ;;  %5508 = vmatprep.subr.bf16.mxu0 %v9418_v25  ;;  %v9491_v1 = vld [vmem:[%s9792_s19 + $0x1568] ss:$16 sps:$4 sm:$0xff]   ;;  %v9496_v25 = vld [vmem:[%s9792_s19 + $0x1584] ss:$16 sps:$4 sm:$0xff]  }
 0x355   : > { %5614 = vmatprep.subr.bf16.mxu1 %v9421_v30  ;;  %v9499_v30 = vld [vmem:[%s9792_s19 + $0x158c] ss:$16 sps:$4 sm:$0xff]  }
 0x357   : > { %5509 = vmatpush1.bf16.msra.mxu0 %v9416_v55  ;;  %v9494_v55 = vld [vmem:[%s9792_s19 + $0x1580] ss:$16 sps:$4 sm:$0xff]  }
 0x358   : > { %5615 = vmatpush1.bf16.msra.mxu1 %v9419_v10  ;;  %6422 = vmatprep.subr.bf16.mxu0 %v9424_v62  ;;  %v9497_v10 = vld [vmem:[%s9792_s19 + $0x1588] ss:$16 sps:$4 sm:$0xff]   ;;  %v9502_v62 = vld [vmem:[%s9792_s19 + $0x15a4] ss:$16 sps:$4 sm:$0xff]  }
 0x359   : > { %6528 = vmatprep.subr.bf16.mxu1 %v9427_v24  ;;  %v9505_v24 = vld [vmem:[%s9792_s19 + $0x15ac] ss:$16 sps:$4 sm:$0xff]  }
 0x35a   : > { %5511 = vmatmul.mubr.bf16.vlgmr.msra.gmra.mrb[32].mxu0 %v10508_v49 }
 0x35b   : > { %5617 = vmatmul.mubr.bf16.vlgmr.msra.gmra.mrb[32].mxu1 %v10508_v49  ;;  %5520 = vmatprep.mubr.bf16.mxu0 %v10572_v14 }
 0x35c   : > { %5626 = vmatprep.mubr.bf16.mxu1 %v10572_v14  ;;  %6423 = vmatpush1.bf16.msra.mxu0 %v9422_v29  ;;  %v9500_v29 = vld [vmem:[%s9792_s19 + $0x15a0] ss:$16 sps:$4 sm:$0xff]  }
 0x35d   : > { %6529 = vmatpush1.bf16.msra.mxu1 %v9425_v27  ;;  %6424 = vmatprep.subr.bf16.mxu0 %v9430_v33  ;;  %v9503_v27 = vld [vmem:[%s9792_s19 + $0x15a8] ss:$16 sps:$4 sm:$0xff]   ;;  %v9508_v33 = vld [vmem:[%s9792_s19 + $0x15c4] ss:$16 sps:$4 sm:$0xff]  }
 0x35e   : > { %6530 = vmatprep.subr.bf16.mxu1 %v9433_v41  ;;  %v9511_v41 = vld [vmem:[%s9792_s19 + $0x15cc] ss:$16 sps:$4 sm:$0xff]  }
 0x360   : > { %6425 = vmatpush1.bf16.msra.mxu0 %v9428_v42  ;;  %v9506_v42 = vld [vmem:[%s9792_s19 + $0x15c0] ss:$16 sps:$4 sm:$0xff]  }
 0x361   : > { %6531 = vmatpush1.bf16.msra.mxu1 %v9431_v40  ;;  %6426 = vmatprep.subr.bf16.mxu0 %v9436_v38  ;;  %v9509_v40 = vld [vmem:[%s9792_s19 + $0x15c8] ss:$16 sps:$4 sm:$0xff]   ;;  %v9514_v38 = vld [vmem:[%s9792_s19 + $0x15e4] ss:$16 sps:$4 sm:$0xff]  }
 0x362   : > { %5521 = vmatmul.mubr.bf16.gmra.mrb[36].mxu0 %v10554_v37  ;;  %6532 = vmatprep.subr.bf16.mxu1 %v9439_v35  ;;  %v9517_v35 = vld [vmem:[%s9792_s19 + $0x15ec] ss:$16 sps:$4 sm:$0xff]  }
 0x363   : > { %5627 = vmatmul.mubr.bf16.gmra.mrb[36].mxu1 %v10554_v37  ;;  %6454 = vmatprep.mubr.bf16.mxu0 %v10517_v0 }
 0x364   : > { %6427 = vmatpush1.bf16.msra.mxu0 %v9434_v53  ;;  %6560 = vmatprep.mubr.bf16.mxu1 %v10517_v0  ;;  %v9457_v0 = vld [vmem:[%s9792_s19 + $0x14ac] ss:$16 sps:$4 sm:$0xff]   ;;  %v9512_v53 = vld [vmem:[%s9792_s19 + $0x15e0] ss:$16 sps:$4 sm:$0xff]  }
 0x365   : > { %6533 = vmatpush1.bf16.msra.mxu1 %v9437_v60  ;;  %6428 = vmatprep.subr.bf16.mxu0 %v9442_v52  ;;  %v9515_v60 = vld [vmem:[%s9792_s19 + $0x15e8] ss:$16 sps:$4 sm:$0xff]   ;;  %v9520_v52 = vld [vmem:[%s9792_s19 + $0x1604] ss:$16 sps:$4 sm:$0xff]  }
 0x366   : > { %6534 = vmatprep.subr.bf16.mxu1 %v9445_v48  ;;  %v9523_v48 = vld [vmem:[%s9792_s19 + $0x160c] ss:$16 sps:$4 sm:$0xff]  }
 0x368   : > { %6429 = vmatpush1.bf16.msra.mxu0 %v9440_v19  ;;  %v9518_v19 = vld [vmem:[%s9792_s19 + $0x1600] ss:$16 sps:$4 sm:$0xff]  }
 0x369   : > { %6535 = vmatpush1.bf16.msra.mxu1 %v9443_v32  ;;  %6430 = vmatprep.subr.bf16.mxu0 %v9448_v12  ;;  %v9521_v32 = vld [vmem:[%s9792_s19 + $0x1608] ss:$16 sps:$4 sm:$0xff]   ;;  %v9526_v12 = vld [vmem:[%s9792_s19 + $0x1624] ss:$16 sps:$4 sm:$0xff]  }
 0x36a   : > { %6536 = vmatprep.subr.bf16.mxu1 %v9451_v28  ;;  %v9529_v28 = vld [vmem:[%s9792_s19 + $0x162c] ss:$16 sps:$4 sm:$0xff]  }
 0x36c   : > { %6431 = vmatpush1.bf16.msra.mxu0 %v9446_v36  ;;  %v9524_v36 = vld [vmem:[%s9792_s19 + $0x1620] ss:$16 sps:$4 sm:$0xff]  }
 0x36d   : > { %6537 = vmatpush1.bf16.msra.mxu1 %v9449_v63  ;;  %6432 = vmatprep.subr.bf16.mxu0 %v9454_v54  ;;  %v9527_v63 = vld [vmem:[%s9792_s19 + $0x1628] ss:$16 sps:$4 sm:$0xff]   ;;  %v9532_v54 = vld [vmem:[%s9792_s19 + $0x1644] ss:$16 sps:$4 sm:$0xff]  }
 0x36e   : > { %6538 = vmatprep.subr.bf16.mxu1 %v9457_v0  ;;  %v9535_v0 = vld [vmem:[%s9792_s19 + $0x164c] ss:$16 sps:$4 sm:$0xff]  }
 0x370   : > { %6433 = vmatpush1.bf16.msra.mxu0 %v9452_v56  ;;  %v9530_v56 = vld [vmem:[%s9792_s19 + $0x1640] ss:$16 sps:$4 sm:$0xff]  }
 0x371   : > { %6539 = vmatpush1.bf16.msra.mxu1 %v9455_v57  ;;  %6434 = vmatprep.subr.bf16.mxu0 %v9460_v61  ;;  %v9538_v57 = vld [vmem:[%s9792_s19 + $0x1664] ss:$16 sps:$4 sm:$0xff]   ;;  %v9536_v61 = vld [vmem:[%s9792_s19 + $0x1660] ss:$16 sps:$4 sm:$0xff]  }
 0x372   : > { %6540 = vmatprep.subr.bf16.mxu1 %v9463_v20  ;;  %v9539_v20 = vld [vmem:[%s9792_s19 + $0x1668] ss:$16 sps:$4 sm:$0xff]  }
 0x374   : > { %6435 = vmatpush1.bf16.msra.mxu0 %v9458_v43  ;;  %v9544_v43 = vld [vmem:[%s9792_s19 + $0x1684] ss:$16 sps:$4 sm:$0xff]  }
 0x375   : > { %6541 = vmatpush1.bf16.msra.mxu1 %v9461_v6  ;;  %6436 = vmatprep.subr.bf16.mxu0 %v9466_v7  ;;  %v9547_v6 = vld [vmem:[%s9792_s19 + $0x168c] ss:$16 sps:$4 sm:$0xff]   ;;  %v9542_v7 = vld [vmem:[%s9792_s19 + $0x1680] ss:$16 sps:$4 sm:$0xff]  }
 0x376   : > { %6542 = vmatprep.subr.bf16.mxu1 %v9469_v8  ;;  %v9550_v8 = vld [vmem:[%s9792_s19 + $0x16a4] ss:$16 sps:$4 sm:$0xff]  }
 0x378   : > { %6437 = vmatpush1.bf16.msra.mxu0 %v9464_v11  ;;  %v9553_v11 = vld [vmem:[%s9792_s19 + $0x16ac] ss:$16 sps:$4 sm:$0xff]  }
 0x379   : > { %6543 = vmatpush1.bf16.msra.mxu1 %v9467_v59  ;;  %6438 = vmatprep.subr.bf16.mxu0 %v9472_v3 }
 0x37a   : > { %6544 = vmatprep.subr.bf16.mxu1 %v9475_v9 }
 0x37c   : > { %6439 = vmatpush1.bf16.msra.mxu0 %v9470_v4  ;;  %v9548_v4 = vld [vmem:[%s9792_s19 + $0x16a0] ss:$16 sps:$4 sm:$0xff]  }
 0x37d   : > { %6545 = vmatpush1.bf16.msra.mxu1 %v9473_v15  ;;  %6440 = vmatprep.subr.bf16.mxu0 %v9478_v5  ;;  %v9551_v15 = vld [vmem:[%s9792_s19 + $0x16a8] ss:$16 sps:$4 sm:$0xff]  }
 0x37e   : > { %6546 = vmatprep.subr.bf16.mxu1 %v9481_v17 }
 0x380   : > { %6441 = vmatpush1.bf16.msra.mxu0 %v9476_v18  ;;  %v9556_v18 = vld [vmem:[%s9792_s19 + $0x16c4] ss:$16 sps:$4 sm:$0xff]  }
 0x381   : > { %6547 = vmatpush1.bf16.msra.mxu1 %v9479_v22  ;;  %6442 = vmatprep.subr.bf16.mxu0 %v9484_v13  ;;  %v9559_v22 = vld [vmem:[%s9792_s19 + $0x16cc] ss:$16 sps:$4 sm:$0xff]  }
 0x382   : > { %6548 = vmatprep.subr.bf16.mxu1 %v9487_v23 }
 0x384   : > { %6443 = vmatpush1.bf16.msra.mxu0 %v9482_v21 }
 0x385   : > { %6549 = vmatpush1.bf16.msra.mxu1 %v9485_v46  ;;  %6444 = vmatprep.subr.bf16.mxu0 %v9490_v2 }
 0x386   : > { %6550 = vmatprep.subr.bf16.mxu1 %v9493_v50 }
 0x388   : > { %6445 = vmatpush1.bf16.msra.mxu0 %v9488_v51 }
 0x389   : > { %6551 = vmatpush1.bf16.msra.mxu1 %v9491_v1  ;;  %6446 = vmatprep.subr.bf16.mxu0 %v9496_v25 }
 0x38a   : > { %6552 = vmatprep.subr.bf16.mxu1 %v9499_v30 }
 0x38c   : > { %6447 = vmatpush1.bf16.msra.mxu0 %v9494_v55  ;;  %v9554_v55 = vld [vmem:[%s9792_s19 + $0x16c0] ss:$16 sps:$4 sm:$0xff]  }
 0x38d   : > { %6553 = vmatpush1.bf16.msra.mxu1 %v9497_v10  ;;  %6448 = vmatprep.subr.bf16.mxu0 %v9502_v62  ;;  %v9557_v10 = vld [vmem:[%s9792_s19 + $0x16c8] ss:$16 sps:$4 sm:$0xff]   ;;  %v9562_v62 = vld [vmem:[%s9792_s19 + $0x16e4] ss:$16 sps:$4 sm:$0xff]  }
 0x38e   : > { %6554 = vmatprep.subr.bf16.mxu1 %v9505_v24 }
 0x390   : > { %6449 = vmatpush1.bf16.msra.mxu0 %v9500_v29 }
 0x391   : > { %6555 = vmatpush1.bf16.msra.mxu1 %v9503_v27  ;;  %6450 = vmatprep.subr.bf16.mxu0 %v9508_v33  ;;  %v9565_v33 = vld [vmem:[%s9792_s19 + $0x16ec] ss:$16 sps:$4 sm:$0xff]  }
 0x392   : > { %6556 = vmatprep.subr.bf16.mxu1 %v9511_v41 }
 0x394   : > { %6451 = vmatpush1.bf16.msra.mxu0 %v9506_v42 }
 0x395   : > { %6557 = vmatpush1.bf16.msra.mxu1 %v9509_v40  ;;  %6452 = vmatprep.subr.bf16.mxu0 %v9514_v38 }
 0x396   : > { %6558 = vmatprep.subr.bf16.mxu1 %v9517_v35 }
 0x398   : > { %6453 = vmatpush1.bf16.msra.mxu0 %v9512_v53  ;;  %v9560_v53 = vld [vmem:[%s9792_s19 + $0x16e0] ss:$16 sps:$4 sm:$0xff]  }
 0x399   : > { %6559 = vmatpush1.bf16.msra.mxu1 %v9515_v60  ;;  %6475 = vmatprep.subr.bf16.mxu0 %v9520_v52  ;;  %v9563_v60 = vld [vmem:[%s9792_s19 + $0x16e8] ss:$16 sps:$4 sm:$0xff]  }
 0x39a   : > { %6581 = vmatprep.subr.bf16.mxu1 %v9523_v48 }
 0x39b   : > { %6455 = vmatmul.mubr.bf16.vlgmr.msra.gmra.mrb[40].mxu0 %v10503_v45 }
 0x39c   : > { %6561 = vmatmul.mubr.bf16.vlgmr.msra.gmra.mrb[40].mxu1 %v10503_v45  ;;  %6464 = vmatprep.mubr.bf16.mxu0 %v10563_v58  ;;  %v9533_v45 = vld [vmem:[%s9792_s19 + $0x1648] ss:$16 sps:$4 sm:$0xff]  }
 0x39d   : > { %6476 = vmatpush1.bf16.msra.mxu0 %v9518_v19  ;;  %6570 = vmatprep.mubr.bf16.mxu1 %v10563_v58  ;;  %v9541_v58 = vld [vmem:[%s9792_s19 + $0x166c] ss:$16 sps:$4 sm:$0xff]   ;;  %v9568_v19 = vld [vmem:[%s9792_s19 + $0x1704] ss:$16 sps:$4 sm:$0xff]  }
 0x39e   : > { %6582 = vmatpush1.bf16.msra.mxu1 %v9521_v32  ;;  %6477 = vmatprep.subr.bf16.mxu0 %v9526_v12  ;;  %v9571_v32 = vld [vmem:[%s9792_s19 + $0x170c] ss:$16 sps:$4 sm:$0xff]  }
 0x39f   : > { %6583 = vmatprep.subr.bf16.mxu1 %v9529_v28 }
 0x3a1   : > { %6478 = vmatpush1.bf16.msra.mxu0 %v9524_v36 }
 0x3a2   : > { %6584 = vmatpush1.bf16.msra.mxu1 %v9527_v63  ;;  %6479 = vmatprep.subr.bf16.mxu0 %v9532_v54 }
 0x3a3   : > { %6465 = vmatmul.mubr.bf16.gmra.mrb[44].mxu0 %v10549_v44  ;;  %6585 = vmatprep.subr.bf16.mxu1 %v9535_v0 }
 0x3a4   : > { %6571 = vmatmul.mubr.bf16.gmra.mrb[44].mxu1 %v10549_v44  ;;  %6507 = vmatprep.mubr.bf16.mxu0 %v10522_v16  ;;  %v9545_v44 = vld [vmem:[%s9792_s19 + $0x1688] ss:$16 sps:$4 sm:$0xff]  }
 0x3a5   : > { %6480 = vmatpush1.bf16.msra.mxu0 %v9530_v56  ;;  %6613 = vmatprep.mubr.bf16.mxu1 %v10522_v16 }
 0x3a6   : > { %6586 = vmatpush1.bf16.msra.mxu1 %v9533_v45  ;;  %6481 = vmatprep.subr.bf16.mxu0 %v9538_v57 }
 0x3a7   : > { %6587 = vmatprep.subr.bf16.mxu1 %v9541_v58 }
 0x3a9   : > { %6482 = vmatpush1.bf16.msra.mxu0 %v9536_v61  ;;  %v9566_v61 = vld [vmem:[%s9792_s19 + $0x1700] ss:$16 sps:$4 sm:$0xff]  }
 0x3aa   : > { %6588 = vmatpush1.bf16.msra.mxu1 %v9539_v20  ;;  %6483 = vmatprep.subr.bf16.mxu0 %v9544_v43  ;;  %v9569_v20 = vld [vmem:[%s9792_s19 + $0x1708] ss:$16 sps:$4 sm:$0xff]   ;;  %v9574_v43 = vld [vmem:[%s9792_s19 + $0x1724] ss:$16 sps:$4 sm:$0xff]  }
 0x3ab   : > { %6589 = vmatprep.subr.bf16.mxu1 %v9547_v6 }
 0x3ac   : > { %v10870_v16 = vpop.f32.mrb[24].mxu0  ;;  %v10872_v59 = vpop.f32.mrb[24].mxu1 }
 0x3ad   : > { %6484 = vmatpush1.bf16.msra.mxu0 %v9542_v7  ;;  %v10874_v3 = vpop.f32.mrb[25].mxu0  ;;  %v10876_v9 = vpop.f32.mrb[25].mxu1  ;;  %v4592_v13 = vrot.slane %v10870_v16, 7  ;;  %v4594_v50 = vrot.slane %v10872_v59, 7 }
 0x3ae   : > { %6590 = vmatpush1.bf16.msra.mxu1 %v9545_v44  ;;  %6485 = vmatprep.subr.bf16.mxu0 %v9550_v8  ;;  %v4455_v5 = vpop.f32.mrb[26].mxu0  ;;  %v4561_v17 = vpop.f32.mrb[26].mxu1  ;;  %v4593_v51 = vrot.slane %v10874_v3, 7  ;;  %v4595_v30 = vrot.slane %v10876_v9, 7  ;;  %v9577_v8 = vld [vmem:[%s9792_s19 + $0x172c] ss:$16 sps:$4 sm:$0xff]  }
 0x3af   : > { %6591 = vmatprep.subr.bf16.mxu1 %v9553_v11  ;;  %v4596_v23 = vrot.slane %v4455_v5, 7  ;;  %v4600_v21 = vrot.slane %v4561_v17, 7  ;;  %v4457_v46 = vpop.f32.mrb[27].mxu0  ;;  %v4563_v2 = vpop.f32.mrb[27].mxu1  ;;  %v9580_v5 = vld [vmem:[%s9792_s19 + $0x1744] ss:$16 sps:$4 sm:$0xff]  }
 0x3b0   : > { %v4598_v1 = vrot.slane %v4457_v46, 7  ;;  %v4602_v25 = vrot.slane %v4563_v2, 7  ;;  %v9583_v17 = vld [vmem:[%s9792_s19 + $0x174c] ss:$16 sps:$4 sm:$0xff]   ;;  %v9584_v46 = vld [vmem:[%s9792_s19 + $0x1760] ss:$16 sps:$4 sm:$0xff]  }
 0x3b1   : > { %6486 = vmatpush1.bf16.msra.mxu0 %v9548_v4  ;;  %v10892_v24 = vsel %vm1392_vm0, %v4592_v13, %v4596_v23  ;;  %v10897_v29 = vsel %vm1392_vm0, %v4594_v50, %v4600_v21  ;;  %v9572_v4 = vld [vmem:[%s9792_s19 + $0x1720] ss:$16 sps:$4 sm:$0xff]   ;;  %v9586_v23 = vld [vmem:[%s9792_s19 + $0x1764] ss:$16 sps:$4 sm:$0xff]   ;;  %v9589_v21 = vld [vmem:[%s9792_s19 + $0x176c] ss:$16 sps:$4 sm:$0xff]  }
 0x3b2   : > { %6592 = vmatpush1.bf16.msra.mxu1 %v9551_v15  ;;  %6487 = vmatprep.subr.bf16.mxu0 %v9556_v18  ;;  %v10902_v27 = vsel %vm1392_vm0, %v4593_v51, %v4598_v1  ;;  %v10908_v41 = vsel %vm1392_vm0, %v4595_v30, %v4602_v25  ;;  %v9575_v15 = vld [vmem:[%s9792_s19 + $0x1728] ss:$16 sps:$4 sm:$0xff]   ;;  %v9578_v18 = vld [vmem:[%s9792_s19 + $0x1740] ss:$16 sps:$4 sm:$0xff]   ;;  %v9592_v1 = vld [vmem:[%s9792_s19 + $0x1784] ss:$16 sps:$4 sm:$0xff]  }
 0x3b3   : > { %6593 = vmatprep.subr.bf16.mxu1 %v9559_v22  ;;  %v9581_v22 = vld [vmem:[%s9792_s19 + $0x1748] ss:$16 sps:$4 sm:$0xff]   ;;  %v9595_v25 = vld [vmem:[%s9792_s19 + $0x178c] ss:$16 sps:$4 sm:$0xff]   ;;  %v4635_v16 = vsel %vm1392_vm0, 0.0, %v4595_v30 }
 0x3b4   : > { %v10910_v42 = vpop.f32.mrb[28].mxu0  ;;  %v10912_v40 = vpop.f32.mrb[28].mxu1  ;;  %v9587_v2 = vld [vmem:[%s9792_s19 + $0x1768] ss:$16 sps:$4 sm:$0xff]  }
 0x3b5   : > { %6488 = vmatpush1.bf16.msra.mxu0 %v9554_v55  ;;  %v10914_v38 = vpop.f32.mrb[29].mxu0  ;;  %v10916_v35 = vpop.f32.mrb[29].mxu1  ;;  %v4604_v12 = vrot.slane %v10910_v42, 7  ;;  %v4606_v0 = vrot.slane %v10912_v40, 7  ;;  %v9590_v55 = vld [vmem:[%s9792_s19 + $0x1780] ss:$16 sps:$4 sm:$0xff]  }
 0x3b6   : > { %6594 = vmatpush1.bf16.msra.mxu1 %v9557_v10  ;;  %6489 = vmatprep.subr.bf16.mxu0 %v9562_v62  ;;  %v4465_v52 = vpop.f32.mrb[30].mxu0  ;;  %v4571_v48 = vpop.f32.mrb[30].mxu1  ;;  %v4605_v56 = vrot.slane %v10914_v38, 7  ;;  %v4607_v58 = vrot.slane %v10916_v35, 7  ;;  %v9593_v10 = vld [vmem:[%s9792_s19 + $0x1788] ss:$16 sps:$4 sm:$0xff]  }
 0x3b7   : > { %6595 = vmatprep.subr.bf16.mxu1 %v9565_v33  ;;  %v4608_v28 = vrot.slane %v4465_v52, 7  ;;  %v4612_v36 = vrot.slane %v4571_v48, 7  ;;  %v4467_v63 = vpop.f32.mrb[31].mxu0  ;;  %v4573_v54 = vpop.f32.mrb[31].mxu1  ;;  %v9598_v62 = vld [vmem:[%s9792_s19 + $0x17a4] ss:$16 sps:$4 sm:$0xff]  }
 0x3b8   : > { %v4610_v45 = vrot.slane %v4467_v63, 7  ;;  %v4614_v57 = vrot.slane %v4573_v54, 7  ;;  %v9601_v33 = vld [vmem:[%s9792_s19 + $0x17ac] ss:$16 sps:$4 sm:$0xff]   ;;  %v9604_v52 = vld [vmem:[%s9792_s19 + $0x17c4] ss:$16 sps:$4 sm:$0xff]  }
 0x3b9   : > { %6490 = vmatpush1.bf16.msra.mxu0 %v9560_v53  ;;  %v10932_v6 = vsel %vm1392_vm0, %v4604_v12, %v4608_v28  ;;  %v10937_v7 = vsel %vm1392_vm0, %v4606_v0, %v4612_v36  ;;  %v9596_v53 = vld [vmem:[%s9792_s19 + $0x17a0] ss:$16 sps:$4 sm:$0xff]   ;;  %v9607_v48 = vld [vmem:[%s9792_s19 + $0x17cc] ss:$16 sps:$4 sm:$0xff]   ;;  %v9610_v28 = vld [vmem:[%s9792_s19 + $0x17e4] ss:$16 sps:$4 sm:$0xff]  }
 0x3ba   : > { %6596 = vmatpush1.bf16.msra.mxu1 %v9563_v60  ;;  %6491 = vmatprep.subr.bf16.mxu0 %v9568_v19  ;;  %v10942_v44 = vsel %vm1392_vm0, %v4605_v56, %v4610_v45  ;;  %v10948_v11 = vsel %vm1392_vm0, %v4607_v58, %v4614_v57  ;;  %v9599_v60 = vld [vmem:[%s9792_s19 + $0x17a8] ss:$16 sps:$4 sm:$0xff]   ;;  %v9602_v19 = vld [vmem:[%s9792_s19 + $0x17c0] ss:$16 sps:$4 sm:$0xff]   ;;  %v9613_v36 = vld [vmem:[%s9792_s19 + $0x17ec] ss:$16 sps:$4 sm:$0xff]  }
 0x3bb   : > { %6597 = vmatprep.subr.bf16.mxu1 %v9571_v32  ;;  %v9605_v32 = vld [vmem:[%s9792_s19 + $0x17c8] ss:$16 sps:$4 sm:$0xff]   ;;  %v9608_v63 = vld [vmem:[%s9792_s19 + $0x17e0] ss:$16 sps:$4 sm:$0xff]  }
 0x3bc   : > { %v9611_v54 = vld [vmem:[%s9792_s19 + $0x17e8] ss:$16 sps:$4 sm:$0xff]   ;;  %v3565_v45 = vld [vmem:[%s9797_s30] sm:$0xf] }
 0x3bd   : > { %6492 = vmatpush1.bf16.msra.mxu0 %v9566_v61  ;;  %v3578_v57 = vrot.slane %v3565_v45, %v378_v39  ;;  %v4632_v61 = vsel %vm1392_vm0, 0.0, %v4592_v13  ;;  %v3590_v39 = vrot.slane %v3565_v45, %v390_v34 }
 0x3be   : > { %6598 = vmatpush1.bf16.msra.mxu1 %v9569_v20  ;;  %6493 = vmatprep.subr.bf16.mxu0 %v9574_v43  ;;  %v3586_v20 = vrot.slane %v3565_v45, %v386_v31 }
 0x3bf   : > { %6599 = vmatprep.subr.bf16.mxu1 %v9577_v8  ;;  %v4640_v13 = vadd.f32 %v4632_v61, %v3578_v57  ;;  %v4644_v3 = vadd.f32 %v10892_v24, %v3578_v57  ;;  %v4636_v24 = vsel %vm1392_vm0, 0.0, %v4604_v12 }
 0x3c0   : > { %v4646_v9 = vadd.f32 %v10897_v29, %v3586_v20  ;;  %v4638_v29 = vsel %vm1392_vm0, 0.0, %v4606_v0  ;;  %v4648_v42 = vadd.f32 %v4636_v24, %v3578_v57  ;;  %v4652_v0 = vadd.f32 %v10932_v6, %v3578_v57 }
 0x3c1   : > { %6494 = vmatpush1.bf16.msra.mxu0 %v9572_v4  ;;  %v4650_v12 = vadd.f32 %v4638_v29, %v3586_v20  ;;  %v4654_v35 = vadd.f32 %v10937_v7, %v3586_v20 }
 0x3c2   : > { %6600 = vmatpush1.bf16.msra.mxu1 %v9575_v15  ;;  %6495 = vmatprep.subr.bf16.mxu0 %v9580_v5 }
 0x3c3   : > { %6601 = vmatprep.subr.bf16.mxu1 %v9583_v17 }
 0x3c5   : > { %6496 = vmatpush1.bf16.msra.mxu0 %v9578_v18 }
 0x3c6   : > { %6602 = vmatpush1.bf16.msra.mxu1 %v9581_v22  ;;  %6497 = vmatprep.subr.bf16.mxu0 %v9586_v23  ;;  %v4647_v23 = vadd.f32 %v10908_v41, %v3590_v39  ;;  %v4639_v41 = vsel %vm1392_vm0, 0.0, %v4607_v58 }
 0x3c7   : > { %6603 = vmatprep.subr.bf16.mxu1 %v9589_v21 }
 0x3c9   : > { %6498 = vmatpush1.bf16.msra.mxu0 %v9584_v46 }
 0x3ca   : > { %6604 = vmatpush1.bf16.msra.mxu1 %v9587_v2  ;;  %6499 = vmatprep.subr.bf16.mxu0 %v9592_v1 }
 0x3cb   : > { %6605 = vmatprep.subr.bf16.mxu1 %v9595_v25 }
 0x3cd   : > { %6500 = vmatpush1.bf16.msra.mxu0 %v9590_v55 }
 0x3ce   : > { %6606 = vmatpush1.bf16.msra.mxu1 %v9593_v10  ;;  %6501 = vmatprep.subr.bf16.mxu0 %v9598_v62 }
 0x3cf   : > { %6607 = vmatprep.subr.bf16.mxu1 %v9601_v33  ;;  %v4651_v33 = vadd.f32 %v4639_v41, %v3590_v39  ;;  %v9616_v41 = vld [vmem:[#allocation2 + $0x10] sm:$0xff] }
 0x3d1   : > { %6502 = vmatpush1.bf16.msra.mxu0 %v9596_v53 }
 0x3d2   : > { %6608 = vmatpush1.bf16.msra.mxu1 %v9599_v60  ;;  %6503 = vmatprep.subr.bf16.mxu0 %v9604_v52 }
 0x3d3   : > { %6609 = vmatprep.subr.bf16.mxu1 %v9607_v48 }
 0x3d5   : > { %6504 = vmatpush1.bf16.msra.mxu0 %v9602_v19 }
 0x3d6   : > { %6610 = vmatpush1.bf16.msra.mxu1 %v9605_v32  ;;  %6505 = vmatprep.subr.bf16.mxu0 %v9610_v28  ;;  %v4655_v28 = vadd.f32 %v10948_v11, %v3590_v39 }
 0x3d7   : > { %6611 = vmatprep.subr.bf16.mxu1 %v9613_v36 }
 0x3d9   : > { %6506 = vmatpush1.bf16.msra.mxu0 %v9608_v63 }
 0x3da   : > { %6612 = vmatpush1.bf16.msra.mxu1 %v9611_v54 }
 0x3dc   : > { %6508 = vmatmul.mubr.bf16.vlgmr.msra.gmra.mrb[40].mxu0 %v10508_v49 }
 0x3dd   : > { %6614 = vmatmul.mubr.bf16.vlgmr.msra.gmra.mrb[40].mxu1 %v10508_v49  ;;  %6517 = vmatprep.mubr.bf16.mxu0 %v10572_v14  ;;  %v3582_v49 = vrot.slane %v3565_v45, %v382_v47 }
 0x3de   : > { %6623 = vmatprep.mubr.bf16.mxu1 %v10572_v14  ;;  %v4634_v14 = vsel %vm1392_vm0, 0.0, %v4594_v50  ;;  %v4643_v50 = vadd.f32 %v4635_v16, %v3590_v39 }
 0x3df   : > { %v4642_v43 = vadd.f32 %v4634_v14, %v3586_v20  ;;  %v4645_v30 = vadd.f32 %v10902_v27, %v3582_v49  ;;  %v4637_v27 = vsel %vm1392_vm0, 0.0, %v4605_v56  ;;  %v4653_v58 = vadd.f32 %v10942_v44, %v3582_v49 }
 0x3e0   : > { %v4649_v55 = vadd.f32 %v4637_v27, %v3582_v49 }
 0x3e4   : > { %6518 = vmatmul.mubr.bf16.gmra.mrb[44].mxu0 %v10554_v37 }
 0x3e5   : > { %6624 = vmatmul.mubr.bf16.gmra.mrb[44].mxu1 %v10554_v37  ;;  %v4633_v37 = vsel %vm1392_vm0, 0.0, %v4593_v51 }
 0x3e6   : > { %v4641_v8 = vadd.f32 %v4633_v37, %v3582_v49 }
 0x42d   : > { %v5512_v31 = vpop.f32.mrb[32].mxu0 }
 0x42e   : > { %v11003_v47 = vadd.f32 %v5512_v31, %v4640_v13  ;;  %v5618_v59 = vpop.f32.mrb[32].mxu1  ;;  %v5514_v4 = vpop.f32.mrb[33].mxu0 }
 0x42f   : > { %v11006_v15 = vadd.f32 %v5618_v59, %v4642_v43  ;;  %v11008_v51 = vadd.f32 %v5514_v4, %v4641_v8  ;;  %v5620_v26 = vpop.f32.mrb[33].mxu1  ;;  %v5516_v34 = vpop.f32.mrb[34].mxu0 }
 0x430   : > { %v11012_v5 = vadd.f32 %v5620_v26, %v4643_v50  ;;  %v5641_v17 = vadd.f32 %v5516_v34, %v4644_v3  ;;  %v5622_v18 = vpop.f32.mrb[34].mxu1  ;;  %v5518_v22 = vpop.f32.mrb[35].mxu0 }
 0x431   : > { %v5643_v21 = vadd.f32 %v5622_v18, %v4646_v9  ;;  %v5642_v46 = vadd.f32 %v5518_v22, %v4645_v30  ;;  %v5624_v2 = vpop.f32.mrb[35].mxu1 }
 0x432   : > { %v11024_v1 = vadd.f32 %v5624_v2, %v4647_v23  ;;  %v9614_v23 = vld [vmem:[#allocation2] sm:$0xff] }
 0x433   : > { %v9615_v2 = vld [vmem:[#allocation2 + $0x20] sm:$0xff] }
 0x435   : > { %v5522_v25 = vpop.f32.mrb[36].mxu0 }
 0x436   : > { %v11029_v10 = vadd.f32 %v5522_v25, %v4648_v42  ;;  %v5628_v62 = vpop.f32.mrb[36].mxu1  ;;  %v5524_v40 = vpop.f32.mrb[37].mxu0  ;;  %v9617_v25 = vld [vmem:[#allocation2 + $0x30] sm:$0xff] }
 0x437   : > { %v11032_v38 = vadd.f32 %v5628_v62, %v4650_v12  ;;  %v11034_v56 = vadd.f32 %v5524_v40, %v4649_v55  ;;  %v5630_v53 = vpop.f32.mrb[37].mxu1  ;;  %v5526_v60 = vpop.f32.mrb[38].mxu0  ;;  %v9618_v40 = vld [vmem:[#allocation2 + $0x8] sm:$0xff] }
 0x438   : > { %v11038_v52 = vadd.f32 %v5630_v53, %v4651_v33  ;;  %v11040_v48 = vadd.f32 %v5526_v60, %v4652_v0  ;;  %v5632_v19 = vpop.f32.mrb[38].mxu1  ;;  %v5528_v32 = vpop.f32.mrb[39].mxu0 }
 0x439   : > { %v11043_v36 = vadd.f32 %v5632_v19, %v4654_v35  ;;  %v11045_v6 = vadd.f32 %v5528_v32, %v4653_v58  ;;  %v5634_v63 = vpop.f32.mrb[39].mxu1 }
 0x43a   : > { %v11047_v54 = vadd.f32 %v5634_v63, %v4655_v28  ;;  %v9620_v63 = vld [vmem:[#allocation2 + $0x18] sm:$0xff] }
 0x4af   : > { %v6509_v45 = vpop.f32.mrb[40].mxu0 }
 0x4b0   : > { %v6615_v57 = vpop.f32.mrb[40].mxu1  ;;  %v6511_v7 = vpop.f32.mrb[41].mxu0  ;;  %v6650_v20 = vrot.slane %v6509_v45, 1 }
 0x4b1   : > { %v6617_v61 = vpop.f32.mrb[41].mxu1  ;;  %v6513_v44 = vpop.f32.mrb[42].mxu0  ;;  %v6656_v16 = vrot.slane %v6615_v57, 1  ;;  %v6653_v13 = vrot.slane %v6511_v7, 1  ;;  %v9621_v57 = vld [vmem:[#allocation2 + $0x38] sm:$0xff] }
 0x4b2   : > { %v6651_v49 = vrot.slane %v6513_v44, 1  ;;  %v6619_v14 = vpop.f32.mrb[42].mxu1  ;;  %v6515_v37 = vpop.f32.mrb[43].mxu0  ;;  %v6659_v43 = vrot.slane %v6617_v61, 1 }
 0x4b3   : > { %v6657_v31 = vrot.slane %v6619_v14, 1  ;;  %v6654_v11 = vrot.slane %v6515_v37, 1  ;;  %v6621_v39 = vpop.f32.mrb[43].mxu1 }
 0x4b4   : > { %v6652_v8 = vsel %vm3451_vm1, %v6650_v20, %v6651_v49  ;;  %v6690_v59 = vsel %vm3451_vm1, %v6651_v49, 0.0  ;;  %v6660_v4 = vrot.slane %v6621_v39, 1 }
 0x4b5   : > { %v6698_v50 = vadd.f32 %v6652_v8, %v11003_v47  ;;  %v6702_v3 = vadd.f32 %v6690_v59, %v5641_v17  ;;  %v6658_v26 = vsel %vm3451_vm1, %v6656_v16, %v6657_v31  ;;  %v6692_v34 = vsel %vm3451_vm1, %v6657_v31, 0.0 }
 0x4b6   : > { %v6700_v9 = vadd.f32 %v6658_v26, %v11006_v15  ;;  %v6704_v30 = vadd.f32 %v6692_v34, %v5643_v21  ;;  %v6655_v18 = vsel %vm3451_vm1, %v6653_v13, %v6654_v11  ;;  %v6691_v22 = vsel %vm3451_vm1, %v6654_v11, 0.0  ;;  %v9622_v26 = vld [vmem:[#allocation2 + $0x40] sm:$0xff] }
 0x4b7   : > { %v11057_v24 = vadd.f32 %v9614_v23, %v6698_v50  ;;  %v11059_v29 = vadd.f32 %v9615_v2, %v6702_v3  ;;  %v6699_v47 = vadd.f32 %v6655_v18, %v11008_v51  ;;  %v6703_v17 = vadd.f32 %v6691_v22, %v5642_v46  ;;  %v6519_v27 = vpop.f32.mrb[44].mxu0  ;;  %v9619_v46 = vld [vmem:[#allocation2 + $0x28] sm:$0xff]  ;;  %v9624_v18 = vld [vmem:[#allocation2 + $0x50] sm:$0xff] }
 0x4b8   : > { %v11062_v42 = vadd.f32 %v9616_v41, %v6700_v9  ;;  %v11064_v15 = vadd.f32 %v9617_v25, %v6704_v30  ;;  %v6661_v21 = vsel %vm3451_vm1, %v6659_v43, %v6660_v4  ;;  %v6693_v12 = vsel %vm3451_vm1, %v6660_v4, 0.0  ;;  %v6625_v55 = vpop.f32.mrb[44].mxu1  ;;  %v6521_v62 = vpop.f32.mrb[45].mxu0  ;;  %v9623_v9 = vld [vmem:[#allocation2 + $0x60] sm:$0xff]  ;;  %v9625_v22 = vld [vmem:[#allocation2 + $0x70] sm:$0xff]  ;;  %v9628_v25 = vld [vmem:[#allocation2 + $0x58] sm:$0xff] }
 0x4b9   : > { %6730 = vst [vmem:[#allocation2] sm:$0xff] %v11057_v24  ;;  %6734 = vst [vmem:[#allocation2 + $0x20] sm:$0xff] %v11059_v29  ;;  %v11070_v51 = vadd.f32 %v9618_v40, %v6699_v47  ;;  %v11072_v33 = vadd.f32 %v9619_v46, %v6703_v17  ;;  %v6701_v0 = vadd.f32 %v6661_v21, %v11012_v5  ;;  %v6627_v60 = vpop.f32.mrb[45].mxu1  ;;  %v6523_v35 = vpop.f32.mrb[46].mxu0  ;;  %v6662_v58 = vrot.slane %v6519_v27, 1  ;;  %v9626_v47 = vld [vmem:[#allocation2 + $0x48] sm:$0xff] }
 0x4ba   : > { %v6705_v53 = vadd.f32 %v6693_v12, %v11024_v1  ;;  %6732 = vst [vmem:[#allocation2 + $0x10] sm:$0xff] %v11062_v42  ;;  %6736 = vst [vmem:[#allocation2 + $0x30] sm:$0xff] %v11064_v15  ;;  %v6668_v19 = vrot.slane %v6625_v55, 1  ;;  %v6629_v32 = vpop.f32.mrb[46].mxu1  ;;  %v6525_v28 = vpop.f32.mrb[47].mxu0  ;;  %v6663_v7 = vrot.slane %v6523_v35, 1 }
 0x4bb   : > { %6731 = vst [vmem:[#allocation2 + $0x8] sm:$0xff] %v11070_v51  ;;  %6735 = vst [vmem:[#allocation2 + $0x28] sm:$0xff] %v11072_v33  ;;  %v6717_v45 = vadd.f32 %v9620_v63, %v6701_v0  ;;  %v6669_v1 = vrot.slane %v6629_v32, 1  ;;  %v6631_v61 = vpop.f32.mrb[47].mxu1  ;;  %v6665_v44 = vrot.slane %v6521_v62, 1  ;;  %v6671_v20 = vrot.slane %v6627_v60, 1 }
 0x4bc   : > { %v6721_v5 = vadd.f32 %v9621_v57, %v6705_v53  ;;  %v6666_v49 = vrot.slane %v6525_v28, 1  ;;  %v6672_v14 = vrot.slane %v6631_v61, 1  ;;  %v6664_v37 = vsel %vm3451_vm1, %v6662_v58, %v6663_v7  ;;  %v9627_v27 = vld [vmem:[#allocation2 + $0x68] sm:$0xff]  ;;  %v9629_v12 = vld [vmem:[#allocation2 + $0x78] sm:$0xff]  ;;  %6750 = vst [vmem:[%s9802_s8] sm:$0xff] (!%p8309_p5), %v11057_v24  ;;  %6751 = vst [vmem:[%s9802_s8 + $0x8] sm:$0xff] (!%p8309_p5), %v11070_v51 }
 0x4bd   : > { %6733 = vst [vmem:[#allocation2 + $0x18] sm:$0xff] %v6717_v45  ;;  %v6694_v16 = vsel %vm3451_vm1, %v6663_v7, 0.0  ;;  %v6670_v13 = vsel %vm3451_vm1, %v6668_v19, %v6669_v1  ;;  %v6696_v31 = vsel %vm3451_vm1, %v6669_v1, 0.0  ;;  %v6706_v11 = vadd.f32 %v6664_v37, %v11029_v10  ;;  %6752 = vst [vmem:[%s9802_s8 + $0x10] sm:$0xff] (!%p8309_p5), %v11062_v42 }
 0x4be   : > { %6737 = vst [vmem:[#allocation2 + $0x38] sm:$0xff] %v6721_v5  ;;  %v6710_v39 = vadd.f32 %v6694_v16, %v11040_v48  ;;  %v6708_v43 = vadd.f32 %v6670_v13, %v11032_v38  ;;  %v6712_v8 = vadd.f32 %v6696_v31, %v11043_v36  ;;  %v6667_v59 = vsel %vm3451_vm1, %v6665_v44, %v6666_v49 }
 0x4bf   : > { %v6695_v4 = vsel %vm3451_vm1, %v6666_v49, 0.0  ;;  %v6673_v50 = vsel %vm3451_vm1, %v6671_v20, %v6672_v14  ;;  %v6697_v3 = vsel %vm3451_vm1, %v6672_v14, 0.0  ;;  %v6722_v34 = vadd.f32 %v9622_v26, %v6706_v11  ;;  %6753 = vst [vmem:[%s9802_s8 + $0x18] sm:$0xff] (!%p8309_p5), %v6717_v45  ;;  %6754 = vst [vmem:[%s9802_s8 + $0x20] sm:$0xff] (!%p8309_p5), %v11059_v29 }
 0x4c0   : > { %v6726_v30 = vadd.f32 %v9623_v9, %v6710_v39  ;;  %v6724_v10 = vadd.f32 %v9624_v18, %v6708_v43  ;;  %v6728_v48 = vadd.f32 %v9625_v22, %v6712_v8  ;;  %v6707_v38 = vadd.f32 %v6667_v59, %v11034_v56  ;;  %6749 = sbr.rel (%p8309_p5) target bundleno = 1226 (0x4ca), region = 52  ;;  %6755 = vst [vmem:[%s9802_s8 + $0x28] sm:$0xff] (!%p8309_p5), %v11072_v33 }
 0x4c1   : > { %v6711_v36 = vadd.f32 %v6695_v4, %v11045_v6  ;;  %v6709_v23 = vadd.f32 %v6673_v50, %v11038_v52  ;;  %v6713_v2 = vadd.f32 %v6697_v3, %v11047_v54  ;;  %6738 = vst [vmem:[#allocation2 + $0x40] sm:$0xff] %v6722_v34  ;;  %6756 = vst [vmem:[%s9802_s8 + $0x30] sm:$0xff] (!%p8309_p5), %v11064_v15 }
 0x4c2   : > { %6742 = vst [vmem:[#allocation2 + $0x60] sm:$0xff] %v6726_v30  ;;  %6740 = vst [vmem:[#allocation2 + $0x50] sm:$0xff] %v6724_v10  ;;  %v6723_v17 = vadd.f32 %v9626_v47, %v6707_v38 }
 0x4c3   : > { %6744 = vst [vmem:[#allocation2 + $0x70] sm:$0xff] %v6728_v48  ;;  %v6727_v41 = vadd.f32 %v9627_v27, %v6711_v36  ;;  %v6725_v21 = vadd.f32 %v9628_v25, %v6709_v23  ;;  %v6729_v55 = vadd.f32 %v9629_v12, %v6713_v2  ;;  %6757 = vst [vmem:[%s9802_s8 + $0x38] sm:$0xff] (!%p8309_p5), %v6721_v5 }
 0x4c4   : > { %6739 = vst [vmem:[#allocation2 + $0x48] sm:$0xff] %v6723_v17  ;;  %6758 = vst [vmem:[%s9802_s8 + $0x40] sm:$0xff] (!%p8309_p5), %v6722_v34 }
 0x4c5   : > { %6743 = vst [vmem:[#allocation2 + $0x68] sm:$0xff] %v6727_v41  ;;  %6741 = vst [vmem:[#allocation2 + $0x58] sm:$0xff] %v6725_v21 }
 0x4c6   : > { %6745 = vst [vmem:[#allocation2 + $0x78] sm:$0xff] %v6729_v55  ;;  %6759 = vst [vmem:[%s9802_s8 + $0x48] sm:$0xff] (!%p8309_p5), %v6723_v17 }
 0x4c7   : > { %6760 = vst [vmem:[%s9802_s8 + $0x50] sm:$0xff] %v6724_v10  ;;  %6761 = vst [vmem:[%s9802_s8 + $0x58] sm:$0xff] %v6725_v21 }
 0x4c8   : > { %6762 = vst [vmem:[%s9802_s8 + $0x60] sm:$0xff] %v6726_v30  ;;  %6763 = vst [vmem:[%s9802_s8 + $0x68] sm:$0xff] %v6727_v41 }
 0x4c9   : > { %6764 = vst [vmem:[%s9802_s8 + $0x70] sm:$0xff] %v6728_v48  ;;  %6765 = vst [vmem:[%s9802_s8 + $0x78] sm:$0xff] %v6729_v55 }
 0x4ca PF: > { %s16_s22 = sadd.s32 1, %s9687_s22   ;;  %s11142_s18 = smov %s9679_s20 }
 0x4cb   : > { %p13_p6 = scmp.ge.s32.totalorder %s16_s22, 6   ;;  %s11143_s19 = smov %s9683_s21 }
 0x4cc   : > { %s11144_s20 = smov %s11147_s24  ;;  %s11145_s21 = smov %s11151_s25 }
 0x4cd   :  { %15 = sbr.rel (!%p13_p6) target bundleno = 3 (0x3), region = 97 }
 0x4d4   :  { %6790 = vsyncpa [#allocation4], 1 }
 0x4d5   :  { %6792 = vsyncpa [#allocation4 + $0x1], 1 }

</bundles_post_ra>
